<compile_context>
chip_gen: v7x
topology: tpu7x:2x2x1
jax: 0.10.0
libtpu: 0.0.40
codegen_flags: <defaults>
</compile_context>

<pallas_src>
import jax
import jax.numpy as jnp
from jax.experimental import pallas as pl
from jax.experimental.pallas import tpu as pltpu


def _gru_kernel(gi_ref, whh_ref, bhn_ref, y_ref, h_scratch):
    """One grid step == one chunk of TT timesteps of the GRU recurrence.

    gi_ref:    (TT, BB, 3*Hp)  precomputed input projections (r, z, n gate order;
                               b_ih and the r/z parts of b_hh already folded in)
    whh_ref:   (Hp, 3*Hp)      hidden->hidden weights, transposed
    bhn_ref:   (1, Hp)         b_hn (kept separate: multiplied by the reset gate)
    y_ref:     (BB, TT, Hp)    output slice, written directly in (B, T, H) layout
    h_scratch: (BB, Hp) f32    hidden state carried across time chunks
    """
    # New batch block => time restarts => re-init the hidden state (h_0 = 0).
    @pl.when(pl.program_id(1) == 0)
    def _():
        h_scratch[...] = jnp.zeros_like(h_scratch)

    Hp = h_scratch.shape[-1]
    TT = gi_ref.shape[0]

    whh = whh_ref[...]            # (Hp, 3Hp), loaded once per chunk
    bhn = bhn_ref[...]            # (1, Hp)

    h = h_scratch[...]            # (BB, Hp) f32
    for step in range(TT):        # fully unrolled: TT is a small static constant
        gi = gi_ref[step].astype(jnp.float32)                       # (BB, 3Hp)
        gh = jnp.dot(h, whh, preferred_element_type=jnp.float32)    # (BB, 3Hp)

        r = jax.nn.sigmoid(gi[:, :Hp] + gh[:, :Hp])                 # EUP
        z = jax.nn.sigmoid(gi[:, Hp:2 * Hp] + gh[:, Hp:2 * Hp])     # EUP
        n = jnp.tanh(gi[:, 2 * Hp:] + r * (gh[:, 2 * Hp:] + bhn))   # EUP
        h = (1.0 - z) * n + z * h                                   # (BB, Hp)

        y_ref[:, step, :] = h.astype(y_ref.dtype)                   # lane-dense store

    h_scratch[...] = h


def _round_up(n, m):
    return ((n + m - 1) // m) * m


def _pad_gate_rows(w, H, Hp):
    """Pad a gate-stacked (3H, ...) array to (3Hp, ...), keeping gate g's block
    at offset g*Hp (zeros elsewhere)."""
    r, z, n = jnp.split(w, 3, axis=0)
    pad = [(0, Hp - H)] + [(0, 0)] * (w.ndim - 1)
    return jnp.concatenate([jnp.pad(r, pad), jnp.pad(z, pad), jnp.pad(n, pad)],
                           axis=0)


def gru_forward(x, w_ih, w_hh, b_ih, b_hh, *, tt=None, block_b=None):
    """x: (B, T, I).  Returns (y, hidden) matching nn.GRU(batch_first=True):
       y: (B, T, H), hidden: (1, B, H) with h_0 = 0 (as in the reference module)."""
    B, T, I = x.shape
    H = w_hh.shape[1]
    assert w_ih.shape == (3 * H, I) and w_hh.shape == (3 * H, H)

    # Time-chunk size: multiple of 8 (sublane tiling); big enough to amortize
    # per-grid-step overhead, capped so the unrolled body stays small.
    if tt is None:
        tt = min(_round_up(T, 8), 32)
    assert tt % 8 == 0, "time chunk must be a multiple of 8 (sublane tiling)"

    # Lane/sublane-friendly padding: H -> multiple of 128, B -> multiple of 8,
    # T -> multiple of the time chunk.  Padded hidden units stay exactly zero.
    Hp = _round_up(H, 128)
    Bp = _round_up(B, 8)
    BB = Bp if block_b is None else _round_up(block_b, 8)
    Bp = _round_up(Bp, BB)
    Tp = _round_up(T, tt)

    # ---- Parameter prep (gate-block padded) -------------------------------
    w_ih_p = _pad_gate_rows(w_ih, H, Hp)                                   # (3Hp, I)
    w_hh_p = _pad_gate_rows(jnp.pad(w_hh, ((0, 0), (0, Hp - H))), H, Hp)   # (3Hp, Hp)
    # Fold the r/z parts of b_hh into the hoisted input-side bias; only b_hn
    # must stay separate (it is multiplied by the reset gate).
    b_comb = jnp.concatenate([b_ih[:2 * H] + b_hh[:2 * H], b_ih[2 * H:]])  # (3H,)
    b_comb_p = _pad_gate_rows(b_comb, H, Hp)                               # (3Hp,)
    b_hn_p = jnp.pad(b_hh[2 * H:], (0, Hp - H)).reshape(1, Hp)             # (1, Hp)
    whh_t = jnp.transpose(w_hh_p)                                          # (Hp, 3Hp)

    # ---- Hoisted input projection: one big matmul over all timesteps ------
    x_p = jnp.pad(x, ((0, Bp - B), (0, Tp - T), (0, 0)))
    x_tm = jnp.transpose(x_p, (1, 0, 2))                                   # (Tp, Bp, I)
    gi_all = (jnp.einsum('tbi,gi->tbg', x_tm, w_ih_p,
                         preferred_element_type=jnp.float32)
              + b_comb_p).astype(jnp.float32)                              # (Tp, Bp, 3Hp)

    n_b = Bp // BB
    n_t = Tp // tt

    y_p = pl.pallas_call(
        _gru_kernel,
        out_shape=jax.ShapeDtypeStruct((Bp, Tp, Hp), x.dtype),
        grid_spec=pltpu.PrefetchScalarGridSpec(
            num_scalar_prefetch=0,
            grid=(n_b, n_t),
            in_specs=[
                pl.BlockSpec((tt, BB, 3 * Hp), lambda b, t: (t, b, 0)),  # gi chunk
                pl.BlockSpec((Hp, 3 * Hp), lambda b, t: (0, 0)),         # W_hh^T
                pl.BlockSpec((1, Hp), lambda b, t: (0, 0)),              # b_hn
            ],
            out_specs=pl.BlockSpec((BB, tt, Hp), lambda b, t: (b, t, 0)),
            scratch_shapes=[pltpu.VMEM((BB, Hp), jnp.float32)],
        ),
        compiler_params=pltpu.CompilerParams(
            # batch blocks are independent (megacore-shardable on v7x);
            # time is a sequential recurrence.
            dimension_semantics=("parallel", "arbitrary"),
        ),
    )(gi_all, whh_t, b_hn_p)

    y = y_p[:B, :T, :H]                    # strip batch/time/hidden padding
    hidden = y[:, T - 1, :][None]          # (1, B, H); no per-step hn store needed
    return y, hidden


def _gru_reference(x, w_ih, w_hh, b_ih, b_hh):
    """Pure-JAX reference matching torch.nn.GRU semantics (gate order r, z, n)."""
    B, T, I = x.shape
    H = w_hh.shape[1]
    h = jnp.zeros((B, H), jnp.float32)

    def step(h, x_t):
        gi = x_t @ w_ih.T + b_ih
        gh = h @ w_hh.T + b_hh
        i_r, i_z, i_n = gi[:, :H], gi[:, H:2 * H], gi[:, 2 * H:]
        h_r, h_z, h_n = gh[:, :H], gh[:, H:2 * H], gh[:, 2 * H:]
        r = jax.nn.sigmoid(i_r + h_r)
        z = jax.nn.sigmoid(i_z + h_z)
        n = jnp.tanh(i_n + r * h_n)
        h_new = (1.0 - z) * n + z * h
        return h_new, h_new

    h_T, ys = jax.lax.scan(step, h, jnp.transpose(x, (1, 0, 2)))
    return jnp.transpose(ys, (1, 0, 2)), h_T[None]


if __name__ == "__main__":
    # Small shapes consistent with GRU(input_num, hidden_num), batch_first input.
    B, T, I, H = 4, 16, 16, 32

    key = jax.random.PRNGKey(0)
    k_x, k_wih, k_whh, k_bih, k_bhh = jax.random.split(key, 5)

    # Deterministic synthetic parameters (same init range as nn.GRU: U(-1/sqrt(H), 1/sqrt(H))).
    bound = 1.0 / jnp.sqrt(jnp.float32(H))
    x = jax.random.normal(k_x, (B, T, I), jnp.float32)
    w_ih = jax.random.uniform(k_wih, (3 * H, I), jnp.float32, -bound, bound)
    w_hh = jax.random.uniform(k_whh, (3 * H, H), jnp.float32, -bound, bound)
    b_ih = jax.random.uniform(k_bih, (3 * H,), jnp.float32, -bound, bound)
    b_hh = jax.random.uniform(k_bhh, (3 * H,), jnp.float32, -bound, bound)

    y, hidden = jax.jit(gru_forward)(x, w_ih, w_hh, b_ih, b_hh)
    jax.block_until_ready((y, hidden))

    y_ref, h_ref = _gru_reference(x, w_ih, w_hh, b_ih, b_hh)
    assert y.shape == (B, T, H) and hidden.shape == (1, B, H)
    assert jnp.allclose(y, y_ref, atol=1e-4, rtol=1e-4), \
        float(jnp.max(jnp.abs(y - y_ref)))
    assert jnp.allclose(hidden, h_ref, atol=1e-4, rtol=1e-4)

    print("KERNEL_OK")
</pallas_src>

<mosaic_0001>
module attributes {stable_mosaic.version = 11 : i64} {
  func.func @_gru_kernel(%arg0: i32, %arg1: i32, %arg2: memref<16x8x384xf32, #tpu.memory_space<vmem>>, %arg3: memref<128x384xf32, #tpu.memory_space<vmem>>, %arg4: memref<1x128xf32, #tpu.memory_space<vmem>>, %arg5: memref<8x16x128xf32, #tpu.memory_space<vmem>>, %arg6: memref<8x128xf32, #tpu.memory_space<vmem>>) attributes {dimension_semantics = [#tpu.dimension_semantics<parallel>, #tpu.dimension_semantics<arbitrary>], iteration_bounds = array<i64: 1, 1>, scalar_prefetch = 0 : i64, scratch_operands = 1 : i64, tpu.core_type = #tpu.core_type<tc>, window_params = [{transform_indices = @transform_0, window_bounds = array<i64: 16, 8, 384>}, {pipeline_mode = #tpu.pipeline_mode<synchronous>, transform_indices = @transform_1, window_bounds = array<i64: 128, 384>}, {pipeline_mode = #tpu.pipeline_mode<synchronous>, transform_indices = @transform_2, window_bounds = array<i64: 1, 128>}, {transform_indices = @transform_3, window_bounds = array<i64: 8, 16, 128>}]} {
    %c0_i32 = arith.constant 0 : i32
    %0 = arith.cmpi eq, %arg1, %c0_i32 : i32
    %1 = arith.extui %0 : i1 to i32
    %c0_i32_0 = arith.constant 0 : i32
    %2 = arith.cmpi ne, %1, %c0_i32_0 : i32
    scf.if %2 {
      %cst_152 = arith.constant 0.000000e+00 : f32
      %551 = vector.broadcast %cst_152 : f32 to vector<8x128xf32>
      %c0_153 = arith.constant 0 : index
      %c0_154 = arith.constant 0 : index
      %552 = vector.load %arg6[%c0_153, %c0_154] : memref<8x128xf32, #tpu.memory_space<vmem>>, vector<8x128xf32>
      tpu.vector_store %arg6[%c0_153, %c0_154], %551 {strides = array<i32>} : memref<8x128xf32, #tpu.memory_space<vmem>>, vector<8x128xf32>,
    } else {
    }
    %c0 = arith.constant 0 : index
    %c0_1 = arith.constant 0 : index
    %3 = vector.load %arg3[%c0, %c0_1] : memref<128x384xf32, #tpu.memory_space<vmem>>, vector<128x384xf32>
    %c0_2 = arith.constant 0 : index
    %c0_3 = arith.constant 0 : index
    %4 = vector.load %arg4[%c0_2, %c0_3] : memref<1x128xf32, #tpu.memory_space<vmem>>, vector<1x128xf32>
    %c0_4 = arith.constant 0 : index
    %c0_5 = arith.constant 0 : index
    %5 = vector.load %arg6[%c0_4, %c0_5] : memref<8x128xf32, #tpu.memory_space<vmem>>, vector<8x128xf32>
    %c0_6 = arith.constant 0 : index
    %c0_7 = arith.constant 0 : index
    %c0_8 = arith.constant 0 : index
    %6 = vector.load %arg2[%c0_6, %c0_7, %c0_8] : memref<16x8x384xf32, #tpu.memory_space<vmem>>, vector<1x8x384xf32>
    %7 = vector.shape_cast %6 : vector<1x8x384xf32> to vector<8x384xf32>
    %cst = arith.constant dense<0.000000e+00> : vector<8x384xf32>
    %8 = tpu.matmul %5, %3, %cst {dimension_numbers = #tpu.dot_dimension_numbers<[1], [0], [0], [1], [0, 0, 1, 1], [], []>} : vector<8x128xf32>, vector<128x384xf32>, vector<8x384xf32> -> vector<8x384xf32>
    %9 = vector.extract_strided_slice %7 {offsets = [0, 0], sizes = [8, 128], strides = [1, 1]} : vector<8x384xf32> to vector<8x128xf32>
    %10 = vector.extract_strided_slice %8 {offsets = [0, 0], sizes = [8, 128], strides = [1, 1]} : vector<8x384xf32> to vector<8x128xf32>
    %11 = arith.addf %9, %10 : vector<8x128xf32>
    %12 = arith.negf %11 : vector<8x128xf32>
    %13 = math.exp %12 : vector<8x128xf32>
    %cst_9 = arith.constant 1.000000e+00 : f32
    %14 = vector.broadcast %cst_9 : f32 to vector<8x128xf32>
    %15 = arith.addf %14, %13 : vector<8x128xf32>
    %16 = arith.divf %14, %15 : vector<8x128xf32>
    %17 = vector.extract_strided_slice %7 {offsets = [0, 128], sizes = [8, 128], strides = [1, 1]} : vector<8x384xf32> to vector<8x128xf32>
    %18 = vector.extract_strided_slice %8 {offsets = [0, 128], sizes = [8, 128], strides = [1, 1]} : vector<8x384xf32> to vector<8x128xf32>
    %19 = arith.addf %17, %18 : vector<8x128xf32>
    %20 = arith.negf %19 : vector<8x128xf32>
    %21 = math.exp %20 : vector<8x128xf32>
    %cst_10 = arith.constant 1.000000e+00 : f32
    %22 = vector.broadcast %cst_10 : f32 to vector<8x128xf32>
    %23 = arith.addf %22, %21 : vector<8x128xf32>
    %24 = arith.divf %22, %23 : vector<8x128xf32>
    %25 = vector.extract_strided_slice %7 {offsets = [0, 256], sizes = [8, 128], strides = [1, 1]} : vector<8x384xf32> to vector<8x128xf32>
    %26 = vector.extract_strided_slice %8 {offsets = [0, 256], sizes = [8, 128], strides = [1, 1]} : vector<8x384xf32> to vector<8x128xf32>
    %27 = vector.broadcast %4 : vector<1x128xf32> to vector<8x128xf32>
    %28 = arith.addf %26, %27 : vector<8x128xf32>
    %29 = arith.mulf %16, %28 : vector<8x128xf32>
    %30 = arith.addf %25, %29 : vector<8x128xf32>
    %31 = math.tanh %30 : vector<8x128xf32>
    %cst_11 = arith.constant 1.000000e+00 : f32
    %32 = vector.broadcast %cst_11 : f32 to vector<8x128xf32>
    %33 = arith.subf %32, %24 : vector<8x128xf32>
    %34 = arith.mulf %33, %31 : vector<8x128xf32>
    %35 = arith.mulf %24, %5 : vector<8x128xf32>
    %36 = arith.addf %34, %35 : vector<8x128xf32>
    %c0_12 = arith.constant 0 : index
    %c0_13 = arith.constant 0 : index
    %c0_14 = arith.constant 0 : index
    %37 = vector.load %arg5[%c0_12, %c0_13, %c0_14] : memref<8x16x128xf32, #tpu.memory_space<vmem>>, vector<8x1x128xf32>
    %38 = vector.shape_cast %37 : vector<8x1x128xf32> to vector<8x128xf32>
    %39 = vector.shape_cast %36 : vector<8x128xf32> to vector<8x1x128xf32>
    tpu.vector_store %arg5[%c0_12, %c0_13, %c0_14], %39 {strides = array<i32>} : memref<8x16x128xf32, #tpu.memory_space<vmem>>, vector<8x1x128xf32>,
    %c1 = arith.constant 1 : index
    %c0_15 = arith.constant 0 : index
    %c0_16 = arith.constant 0 : index
    %40 = vector.load %arg2[%c1, %c0_15, %c0_16] : memref<16x8x384xf32, #tpu.memory_space<vmem>>, vector<1x8x384xf32>
    %41 = vector.shape_cast %40 : vector<1x8x384xf32> to vector<8x384xf32>
    %cst_17 = arith.constant dense<0.000000e+00> : vector<8x384xf32>
    %42 = tpu.matmul %36, %3, %cst_17 {dimension_numbers = #tpu.dot_dimension_numbers<[1], [0], [0], [1], [0, 0, 1, 1], [], []>} : vector<8x128xf32>, vector<128x384xf32>, vector<8x384xf32> -> vector<8x384xf32>
    %43 = vector.extract_strided_slice %41 {offsets = [0, 0], sizes = [8, 128], strides = [1, 1]} : vector<8x384xf32> to vector<8x128xf32>
    %44 = vector.extract_strided_slice %42 {offsets = [0, 0], sizes = [8, 128], strides = [1, 1]} : vector<8x384xf32> to vector<8x128xf32>
    %45 = arith.addf %43, %44 : vector<8x128xf32>
    %46 = arith.negf %45 : vector<8x128xf32>
    %47 = math.exp %46 : vector<8x128xf32>
    %cst_18 = arith.constant 1.000000e+00 : f32
    %48 = vector.broadcast %cst_18 : f32 to vector<8x128xf32>
    %49 = arith.addf %48, %47 : vector<8x128xf32>
    %50 = arith.divf %48, %49 : vector<8x128xf32>
    %51 = vector.extract_strided_slice %41 {offsets = [0, 128], sizes = [8, 128], strides = [1, 1]} : vector<8x384xf32> to vector<8x128xf32>
    %52 = vector.extract_strided_slice %42 {offsets = [0, 128], sizes = [8, 128], strides = [1, 1]} : vector<8x384xf32> to vector<8x128xf32>
    %53 = arith.addf %51, %52 : vector<8x128xf32>
    %54 = arith.negf %53 : vector<8x128xf32>
    %55 = math.exp %54 : vector<8x128xf32>
    %cst_19 = arith.constant 1.000000e+00 : f32
    %56 = vector.broadcast %cst_19 : f32 to vector<8x128xf32>
    %57 = arith.addf %56, %55 : vector<8x128xf32>
    %58 = arith.divf %56, %57 : vector<8x128xf32>
    %59 = vector.extract_strided_slice %41 {offsets = [0, 256], sizes = [8, 128], strides = [1, 1]} : vector<8x384xf32> to vector<8x128xf32>
    %60 = vector.extract_strided_slice %42 {offsets = [0, 256], sizes = [8, 128], strides = [1, 1]} : vector<8x384xf32> to vector<8x128xf32>
    %61 = vector.broadcast %4 : vector<1x128xf32> to vector<8x128xf32>
    %62 = arith.addf %60, %61 : vector<8x128xf32>
    %63 = arith.mulf %50, %62 : vector<8x128xf32>
    %64 = arith.addf %59, %63 : vector<8x128xf32>
    %65 = math.tanh %64 : vector<8x128xf32>
    %cst_20 = arith.constant 1.000000e+00 : f32
    %66 = vector.broadcast %cst_20 : f32 to vector<8x128xf32>
    %67 = arith.subf %66, %58 : vector<8x128xf32>
    %68 = arith.mulf %67, %65 : vector<8x128xf32>
    %69 = arith.mulf %58, %36 : vector<8x128xf32>
    %70 = arith.addf %68, %69 : vector<8x128xf32>
    %c0_21 = arith.constant 0 : index
    %c1_22 = arith.constant 1 : index
    %c0_23 = arith.constant 0 : index
    %71 = vector.load %arg5[%c0_21, %c1_22, %c0_23] : memref<8x16x128xf32, #tpu.memory_space<vmem>>, vector<8x1x128xf32>
    %72 = vector.shape_cast %71 : vector<8x1x128xf32> to vector<8x128xf32>
    %73 = vector.shape_cast %70 : vector<8x128xf32> to vector<8x1x128xf32>
    tpu.vector_store %arg5[%c0_21, %c1_22, %c0_23], %73 {strides = array<i32>} : memref<8x16x128xf32, #tpu.memory_space<vmem>>, vector<8x1x128xf32>,
    %c2 = arith.constant 2 : index
    %c0_24 = arith.constant 0 : index
    %c0_25 = arith.constant 0 : index
    %74 = vector.load %arg2[%c2, %c0_24, %c0_25] : memref<16x8x384xf32, #tpu.memory_space<vmem>>, vector<1x8x384xf32>
    %75 = vector.shape_cast %74 : vector<1x8x384xf32> to vector<8x384xf32>
    %cst_26 = arith.constant dense<0.000000e+00> : vector<8x384xf32>
    %76 = tpu.matmul %70, %3, %cst_26 {dimension_numbers = #tpu.dot_dimension_numbers<[1], [0], [0], [1], [0, 0, 1, 1], [], []>} : vector<8x128xf32>, vector<128x384xf32>, vector<8x384xf32> -> vector<8x384xf32>
    %77 = vector.extract_strided_slice %75 {offsets = [0, 0], sizes = [8, 128], strides = [1, 1]} : vector<8x384xf32> to vector<8x128xf32>
    %78 = vector.extract_strided_slice %76 {offsets = [0, 0], sizes = [8, 128], strides = [1, 1]} : vector<8x384xf32> to vector<8x128xf32>
    %79 = arith.addf %77, %78 : vector<8x128xf32>
    %80 = arith.negf %79 : vector<8x128xf32>
    %81 = math.exp %80 : vector<8x128xf32>
    %cst_27 = arith.constant 1.000000e+00 : f32
    %82 = vector.broadcast %cst_27 : f32 to vector<8x128xf32>
    %83 = arith.addf %82, %81 : vector<8x128xf32>
    %84 = arith.divf %82, %83 : vector<8x128xf32>
    %85 = vector.extract_strided_slice %75 {offsets = [0, 128], sizes = [8, 128], strides = [1, 1]} : vector<8x384xf32> to vector<8x128xf32>
    %86 = vector.extract_strided_slice %76 {offsets = [0, 128], sizes = [8, 128], strides = [1, 1]} : vector<8x384xf32> to vector<8x128xf32>
    %87 = arith.addf %85, %86 : vector<8x128xf32>
    %88 = arith.negf %87 : vector<8x128xf32>
    %89 = math.exp %88 : vector<8x128xf32>
    %cst_28 = arith.constant 1.000000e+00 : f32
    %90 = vector.broadcast %cst_28 : f32 to vector<8x128xf32>
    %91 = arith.addf %90, %89 : vector<8x128xf32>
    %92 = arith.divf %90, %91 : vector<8x128xf32>
    %93 = vector.extract_strided_slice %75 {offsets = [0, 256], sizes = [8, 128], strides = [1, 1]} : vector<8x384xf32> to vector<8x128xf32>
    %94 = vector.extract_strided_slice %76 {offsets = [0, 256], sizes = [8, 128], strides = [1, 1]} : vector<8x384xf32> to vector<8x128xf32>
    %95 = vector.broadcast %4 : vector<1x128xf32> to vector<8x128xf32>
    %96 = arith.addf %94, %95 : vector<8x128xf32>
    %97 = arith.mulf %84, %96 : vector<8x128xf32>
    %98 = arith.addf %93, %97 : vector<8x128xf32>
    %99 = math.tanh %98 : vector<8x128xf32>
    %cst_29 = arith.constant 1.000000e+00 : f32
    %100 = vector.broadcast %cst_29 : f32 to vector<8x128xf32>
    %101 = arith.subf %100, %92 : vector<8x128xf32>
    %102 = arith.mulf %101, %99 : vector<8x128xf32>
    %103 = arith.mulf %92, %70 : vector<8x128xf32>
    %104 = arith.addf %102, %103 : vector<8x128xf32>
    %c0_30 = arith.constant 0 : index
    %c2_31 = arith.constant 2 : index
    %c0_32 = arith.constant 0 : index
    %105 = vector.load %arg5[%c0_30, %c2_31, %c0_32] : memref<8x16x128xf32, #tpu.memory_space<vmem>>, vector<8x1x128xf32>
    %106 = vector.shape_cast %105 : vector<8x1x128xf32> to vector<8x128xf32>
    %107 = vector.shape_cast %104 : vector<8x128xf32> to vector<8x1x128xf32>
    tpu.vector_store %arg5[%c0_30, %c2_31, %c0_32], %107 {strides = array<i32>} : memref<8x16x128xf32, #tpu.memory_space<vmem>>, vector<8x1x128xf32>,
    %c3 = arith.constant 3 : index
    %c0_33 = arith.constant 0 : index
    %c0_34 = arith.constant 0 : index
    %108 = vector.load %arg2[%c3, %c0_33, %c0_34] : memref<16x8x384xf32, #tpu.memory_space<vmem>>, vector<1x8x384xf32>
    %109 = vector.shape_cast %108 : vector<1x8x384xf32> to vector<8x384xf32>
    %cst_35 = arith.constant dense<0.000000e+00> : vector<8x384xf32>
    %110 = tpu.matmul %104, %3, %cst_35 {dimension_numbers = #tpu.dot_dimension_numbers<[1], [0], [0], [1], [0, 0, 1, 1], [], []>} : vector<8x128xf32>, vector<128x384xf32>, vector<8x384xf32> -> vector<8x384xf32>
    %111 = vector.extract_strided_slice %109 {offsets = [0, 0], sizes = [8, 128], strides = [1, 1]} : vector<8x384xf32> to vector<8x128xf32>
    %112 = vector.extract_strided_slice %110 {offsets = [0, 0], sizes = [8, 128], strides = [1, 1]} : vector<8x384xf32> to vector<8x128xf32>
    %113 = arith.addf %111, %112 : vector<8x128xf32>
    %114 = arith.negf %113 : vector<8x128xf32>
    %115 = math.exp %114 : vector<8x128xf32>
    %cst_36 = arith.constant 1.000000e+00 : f32
    %116 = vector.broadcast %cst_36 : f32 to vector<8x128xf32>
    %117 = arith.addf %116, %115 : vector<8x128xf32>
    %118 = arith.divf %116, %117 : vector<8x128xf32>
    %119 = vector.extract_strided_slice %109 {offsets = [0, 128], sizes = [8, 128], strides = [1, 1]} : vector<8x384xf32> to vector<8x128xf32>
    %120 = vector.extract_strided_slice %110 {offsets = [0, 128], sizes = [8, 128], strides = [1, 1]} : vector<8x384xf32> to vector<8x128xf32>
    %121 = arith.addf %119, %120 : vector<8x128xf32>
    %122 = arith.negf %121 : vector<8x128xf32>
    %123 = math.exp %122 : vector<8x128xf32>
    %cst_37 = arith.constant 1.000000e+00 : f32
    %124 = vector.broadcast %cst_37 : f32 to vector<8x128xf32>
    %125 = arith.addf %124, %123 : vector<8x128xf32>
    %126 = arith.divf %124, %125 : vector<8x128xf32>
    %127 = vector.extract_strided_slice %109 {offsets = [0, 256], sizes = [8, 128], strides = [1, 1]} : vector<8x384xf32> to vector<8x128xf32>
    %128 = vector.extract_strided_slice %110 {offsets = [0, 256], sizes = [8, 128], strides = [1, 1]} : vector<8x384xf32> to vector<8x128xf32>
    %129 = vector.broadcast %4 : vector<1x128xf32> to vector<8x128xf32>
    %130 = arith.addf %128, %129 : vector<8x128xf32>
    %131 = arith.mulf %118, %130 : vector<8x128xf32>
    %132 = arith.addf %127, %131 : vector<8x128xf32>
    %133 = math.tanh %132 : vector<8x128xf32>
    %cst_38 = arith.constant 1.000000e+00 : f32
    %134 = vector.broadcast %cst_38 : f32 to vector<8x128xf32>
    %135 = arith.subf %134, %126 : vector<8x128xf32>
    %136 = arith.mulf %135, %133 : vector<8x128xf32>
    %137 = arith.mulf %126, %104 : vector<8x128xf32>
    %138 = arith.addf %136, %137 : vector<8x128xf32>
    %c0_39 = arith.constant 0 : index
    %c3_40 = arith.constant 3 : index
    %c0_41 = arith.constant 0 : index
    %139 = vector.load %arg5[%c0_39, %c3_40, %c0_41] : memref<8x16x128xf32, #tpu.memory_space<vmem>>, vector<8x1x128xf32>
    %140 = vector.shape_cast %139 : vector<8x1x128xf32> to vector<8x128xf32>
    %141 = vector.shape_cast %138 : vector<8x128xf32> to vector<8x1x128xf32>
    tpu.vector_store %arg5[%c0_39, %c3_40, %c0_41], %141 {strides = array<i32>} : memref<8x16x128xf32, #tpu.memory_space<vmem>>, vector<8x1x128xf32>,
    %c4 = arith.constant 4 : index
    %c0_42 = arith.constant 0 : index
    %c0_43 = arith.constant 0 : index
    %142 = vector.load %arg2[%c4, %c0_42, %c0_43] : memref<16x8x384xf32, #tpu.memory_space<vmem>>, vector<1x8x384xf32>
    %143 = vector.shape_cast %142 : vector<1x8x384xf32> to vector<8x384xf32>
    %cst_44 = arith.constant dense<0.000000e+00> : vector<8x384xf32>
    %144 = tpu.matmul %138, %3, %cst_44 {dimension_numbers = #tpu.dot_dimension_numbers<[1], [0], [0], [1], [0, 0, 1, 1], [], []>} : vector<8x128xf32>, vector<128x384xf32>, vector<8x384xf32> -> vector<8x384xf32>
    %145 = vector.extract_strided_slice %143 {offsets = [0, 0], sizes = [8, 128], strides = [1, 1]} : vector<8x384xf32> to vector<8x128xf32>
    %146 = vector.extract_strided_slice %144 {offsets = [0, 0], sizes = [8, 128], strides = [1, 1]} : vector<8x384xf32> to vector<8x128xf32>
    %147 = arith.addf %145, %146 : vector<8x128xf32>
    %148 = arith.negf %147 : vector<8x128xf32>
    %149 = math.exp %148 : vector<8x128xf32>
    %cst_45 = arith.constant 1.000000e+00 : f32
    %150 = vector.broadcast %cst_45 : f32 to vector<8x128xf32>
    %151 = arith.addf %150, %149 : vector<8x128xf32>
    %152 = arith.divf %150, %151 : vector<8x128xf32>
    %153 = vector.extract_strided_slice %143 {offsets = [0, 128], sizes = [8, 128], strides = [1, 1]} : vector<8x384xf32> to vector<8x128xf32>
    %154 = vector.extract_strided_slice %144 {offsets = [0, 128], sizes = [8, 128], strides = [1, 1]} : vector<8x384xf32> to vector<8x128xf32>
    %155 = arith.addf %153, %154 : vector<8x128xf32>
    %156 = arith.negf %155 : vector<8x128xf32>
    %157 = math.exp %156 : vector<8x128xf32>
    %cst_46 = arith.constant 1.000000e+00 : f32
    %158 = vector.broadcast %cst_46 : f32 to vector<8x128xf32>
    %159 = arith.addf %158, %157 : vector<8x128xf32>
    %160 = arith.divf %158, %159 : vector<8x128xf32>
    %161 = vector.extract_strided_slice %143 {offsets = [0, 256], sizes = [8, 128], strides = [1, 1]} : vector<8x384xf32> to vector<8x128xf32>
    %162 = vector.extract_strided_slice %144 {offsets = [0, 256], sizes = [8, 128], strides = [1, 1]} : vector<8x384xf32> to vector<8x128xf32>
    %163 = vector.broadcast %4 : vector<1x128xf32> to vector<8x128xf32>
    %164 = arith.addf %162, %163 : vector<8x128xf32>
    %165 = arith.mulf %152, %164 : vector<8x128xf32>
    %166 = arith.addf %161, %165 : vector<8x128xf32>
    %167 = math.tanh %166 : vector<8x128xf32>
    %cst_47 = arith.constant 1.000000e+00 : f32
    %168 = vector.broadcast %cst_47 : f32 to vector<8x128xf32>
    %169 = arith.subf %168, %160 : vector<8x128xf32>
    %170 = arith.mulf %169, %167 : vector<8x128xf32>
    %171 = arith.mulf %160, %138 : vector<8x128xf32>
    %172 = arith.addf %170, %171 : vector<8x128xf32>
    %c0_48 = arith.constant 0 : index
    %c4_49 = arith.constant 4 : index
    %c0_50 = arith.constant 0 : index
    %173 = vector.load %arg5[%c0_48, %c4_49, %c0_50] : memref<8x16x128xf32, #tpu.memory_space<vmem>>, vector<8x1x128xf32>
    %174 = vector.shape_cast %173 : vector<8x1x128xf32> to vector<8x128xf32>
    %175 = vector.shape_cast %172 : vector<8x128xf32> to vector<8x1x128xf32>
    tpu.vector_store %arg5[%c0_48, %c4_49, %c0_50], %175 {strides = array<i32>} : memref<8x16x128xf32, #tpu.memory_space<vmem>>, vector<8x1x128xf32>,
    %c5 = arith.constant 5 : index
    %c0_51 = arith.constant 0 : index
    %c0_52 = arith.constant 0 : index
    %176 = vector.load %arg2[%c5, %c0_51, %c0_52] : memref<16x8x384xf32, #tpu.memory_space<vmem>>, vector<1x8x384xf32>
    %177 = vector.shape_cast %176 : vector<1x8x384xf32> to vector<8x384xf32>
    %cst_53 = arith.constant dense<0.000000e+00> : vector<8x384xf32>
    %178 = tpu.matmul %172, %3, %cst_53 {dimension_numbers = #tpu.dot_dimension_numbers<[1], [0], [0], [1], [0, 0, 1, 1], [], []>} : vector<8x128xf32>, vector<128x384xf32>, vector<8x384xf32> -> vector<8x384xf32>
    %179 = vector.extract_strided_slice %177 {offsets = [0, 0], sizes = [8, 128], strides = [1, 1]} : vector<8x384xf32> to vector<8x128xf32>
    %180 = vector.extract_strided_slice %178 {offsets = [0, 0], sizes = [8, 128], strides = [1, 1]} : vector<8x384xf32> to vector<8x128xf32>
    %181 = arith.addf %179, %180 : vector<8x128xf32>
    %182 = arith.negf %181 : vector<8x128xf32>
    %183 = math.exp %182 : vector<8x128xf32>
    %cst_54 = arith.constant 1.000000e+00 : f32
    %184 = vector.broadcast %cst_54 : f32 to vector<8x128xf32>
    %185 = arith.addf %184, %183 : vector<8x128xf32>
    %186 = arith.divf %184, %185 : vector<8x128xf32>
    %187 = vector.extract_strided_slice %177 {offsets = [0, 128], sizes = [8, 128], strides = [1, 1]} : vector<8x384xf32> to vector<8x128xf32>
    %188 = vector.extract_strided_slice %178 {offsets = [0, 128], sizes = [8, 128], strides = [1, 1]} : vector<8x384xf32> to vector<8x128xf32>
    %189 = arith.addf %187, %188 : vector<8x128xf32>
    %190 = arith.negf %189 : vector<8x128xf32>
    %191 = math.exp %190 : vector<8x128xf32>
    %cst_55 = arith.constant 1.000000e+00 : f32
    %192 = vector.broadcast %cst_55 : f32 to vector<8x128xf32>
    %193 = arith.addf %192, %191 : vector<8x128xf32>
    %194 = arith.divf %192, %193 : vector<8x128xf32>
    %195 = vector.extract_strided_slice %177 {offsets = [0, 256], sizes = [8, 128], strides = [1, 1]} : vector<8x384xf32> to vector<8x128xf32>
    %196 = vector.extract_strided_slice %178 {offsets = [0, 256], sizes = [8, 128], strides = [1, 1]} : vector<8x384xf32> to vector<8x128xf32>
    %197 = vector.broadcast %4 : vector<1x128xf32> to vector<8x128xf32>
    %198 = arith.addf %196, %197 : vector<8x128xf32>
    %199 = arith.mulf %186, %198 : vector<8x128xf32>
    %200 = arith.addf %195, %199 : vector<8x128xf32>
    %201 = math.tanh %200 : vector<8x128xf32>
    %cst_56 = arith.constant 1.000000e+00 : f32
    %202 = vector.broadcast %cst_56 : f32 to vector<8x128xf32>
    %203 = arith.subf %202, %194 : vector<8x128xf32>
    %204 = arith.mulf %203, %201 : vector<8x128xf32>
    %205 = arith.mulf %194, %172 : vector<8x128xf32>
    %206 = arith.addf %204, %205 : vector<8x128xf32>
    %c0_57 = arith.constant 0 : index
    %c5_58 = arith.constant 5 : index
    %c0_59 = arith.constant 0 : index
    %207 = vector.load %arg5[%c0_57, %c5_58, %c0_59] : memref<8x16x128xf32, #tpu.memory_space<vmem>>, vector<8x1x128xf32>
    %208 = vector.shape_cast %207 : vector<8x1x128xf32> to vector<8x128xf32>
    %209 = vector.shape_cast %206 : vector<8x128xf32> to vector<8x1x128xf32>
    tpu.vector_store %arg5[%c0_57, %c5_58, %c0_59], %209 {strides = array<i32>} : memref<8x16x128xf32, #tpu.memory_space<vmem>>, vector<8x1x128xf32>,
    %c6 = arith.constant 6 : index
    %c0_60 = arith.constant 0 : index
    %c0_61 = arith.constant 0 : index
    %210 = vector.load %arg2[%c6, %c0_60, %c0_61] : memref<16x8x384xf32, #tpu.memory_space<vmem>>, vector<1x8x384xf32>
    %211 = vector.shape_cast %210 : vector<1x8x384xf32> to vector<8x384xf32>
    %cst_62 = arith.constant dense<0.000000e+00> : vector<8x384xf32>
    %212 = tpu.matmul %206, %3, %cst_62 {dimension_numbers = #tpu.dot_dimension_numbers<[1], [0], [0], [1], [0, 0, 1, 1], [], []>} : vector<8x128xf32>, vector<128x384xf32>, vector<8x384xf32> -> vector<8x384xf32>
    %213 = vector.extract_strided_slice %211 {offsets = [0, 0], sizes = [8, 128], strides = [1, 1]} : vector<8x384xf32> to vector<8x128xf32>
    %214 = vector.extract_strided_slice %212 {offsets = [0, 0], sizes = [8, 128], strides = [1, 1]} : vector<8x384xf32> to vector<8x128xf32>
    %215 = arith.addf %213, %214 : vector<8x128xf32>
    %216 = arith.negf %215 : vector<8x128xf32>
    %217 = math.exp %216 : vector<8x128xf32>
    %cst_63 = arith.constant 1.000000e+00 : f32
    %218 = vector.broadcast %cst_63 : f32 to vector<8x128xf32>
    %219 = arith.addf %218, %217 : vector<8x128xf32>
    %220 = arith.divf %218, %219 : vector<8x128xf32>
    %221 = vector.extract_strided_slice %211 {offsets = [0, 128], sizes = [8, 128], strides = [1, 1]} : vector<8x384xf32> to vector<8x128xf32>
    %222 = vector.extract_strided_slice %212 {offsets = [0, 128], sizes = [8, 128], strides = [1, 1]} : vector<8x384xf32> to vector<8x128xf32>
    %223 = arith.addf %221, %222 : vector<8x128xf32>
    %224 = arith.negf %223 : vector<8x128xf32>
    %225 = math.exp %224 : vector<8x128xf32>
    %cst_64 = arith.constant 1.000000e+00 : f32
    %226 = vector.broadcast %cst_64 : f32 to vector<8x128xf32>
    %227 = arith.addf %226, %225 : vector<8x128xf32>
    %228 = arith.divf %226, %227 : vector<8x128xf32>
    %229 = vector.extract_strided_slice %211 {offsets = [0, 256], sizes = [8, 128], strides = [1, 1]} : vector<8x384xf32> to vector<8x128xf32>
    %230 = vector.extract_strided_slice %212 {offsets = [0, 256], sizes = [8, 128], strides = [1, 1]} : vector<8x384xf32> to vector<8x128xf32>
    %231 = vector.broadcast %4 : vector<1x128xf32> to vector<8x128xf32>
    %232 = arith.addf %230, %231 : vector<8x128xf32>
    %233 = arith.mulf %220, %232 : vector<8x128xf32>
    %234 = arith.addf %229, %233 : vector<8x128xf32>
    %235 = math.tanh %234 : vector<8x128xf32>
    %cst_65 = arith.constant 1.000000e+00 : f32
    %236 = vector.broadcast %cst_65 : f32 to vector<8x128xf32>
    %237 = arith.subf %236, %228 : vector<8x128xf32>
    %238 = arith.mulf %237, %235 : vector<8x128xf32>
    %239 = arith.mulf %228, %206 : vector<8x128xf32>
    %240 = arith.addf %238, %239 : vector<8x128xf32>
    %c0_66 = arith.constant 0 : index
    %c6_67 = arith.constant 6 : index
    %c0_68 = arith.constant 0 : index
    %241 = vector.load %arg5[%c0_66, %c6_67, %c0_68] : memref<8x16x128xf32, #tpu.memory_space<vmem>>, vector<8x1x128xf32>
    %242 = vector.shape_cast %241 : vector<8x1x128xf32> to vector<8x128xf32>
    %243 = vector.shape_cast %240 : vector<8x128xf32> to vector<8x1x128xf32>
    tpu.vector_store %arg5[%c0_66, %c6_67, %c0_68], %243 {strides = array<i32>} : memref<8x16x128xf32, #tpu.memory_space<vmem>>, vector<8x1x128xf32>,
    %c7 = arith.constant 7 : index
    %c0_69 = arith.constant 0 : index
    %c0_70 = arith.constant 0 : index
    %244 = vector.load %arg2[%c7, %c0_69, %c0_70] : memref<16x8x384xf32, #tpu.memory_space<vmem>>, vector<1x8x384xf32>
    %245 = vector.shape_cast %244 : vector<1x8x384xf32> to vector<8x384xf32>
    %cst_71 = arith.constant dense<0.000000e+00> : vector<8x384xf32>
    %246 = tpu.matmul %240, %3, %cst_71 {dimension_numbers = #tpu.dot_dimension_numbers<[1], [0], [0], [1], [0, 0, 1, 1], [], []>} : vector<8x128xf32>, vector<128x384xf32>, vector<8x384xf32> -> vector<8x384xf32>
    %247 = vector.extract_strided_slice %245 {offsets = [0, 0], sizes = [8, 128], strides = [1, 1]} : vector<8x384xf32> to vector<8x128xf32>
    %248 = vector.extract_strided_slice %246 {offsets = [0, 0], sizes = [8, 128], strides = [1, 1]} : vector<8x384xf32> to vector<8x128xf32>
    %249 = arith.addf %247, %248 : vector<8x128xf32>
    %250 = arith.negf %249 : vector<8x128xf32>
    %251 = math.exp %250 : vector<8x128xf32>
    %cst_72 = arith.constant 1.000000e+00 : f32
    %252 = vector.broadcast %cst_72 : f32 to vector<8x128xf32>
    %253 = arith.addf %252, %251 : vector<8x128xf32>
    %254 = arith.divf %252, %253 : vector<8x128xf32>
    %255 = vector.extract_strided_slice %245 {offsets = [0, 128], sizes = [8, 128], strides = [1, 1]} : vector<8x384xf32> to vector<8x128xf32>
    %256 = vector.extract_strided_slice %246 {offsets = [0, 128], sizes = [8, 128], strides = [1, 1]} : vector<8x384xf32> to vector<8x128xf32>
    %257 = arith.addf %255, %256 : vector<8x128xf32>
    %258 = arith.negf %257 : vector<8x128xf32>
    %259 = math.exp %258 : vector<8x128xf32>
    %cst_73 = arith.constant 1.000000e+00 : f32
    %260 = vector.broadcast %cst_73 : f32 to vector<8x128xf32>
    %261 = arith.addf %260, %259 : vector<8x128xf32>
    %262 = arith.divf %260, %261 : vector<8x128xf32>
    %263 = vector.extract_strided_slice %245 {offsets = [0, 256], sizes = [8, 128], strides = [1, 1]} : vector<8x384xf32> to vector<8x128xf32>
    %264 = vector.extract_strided_slice %246 {offsets = [0, 256], sizes = [8, 128], strides = [1, 1]} : vector<8x384xf32> to vector<8x128xf32>
    %265 = vector.broadcast %4 : vector<1x128xf32> to vector<8x128xf32>
    %266 = arith.addf %264, %265 : vector<8x128xf32>
    %267 = arith.mulf %254, %266 : vector<8x128xf32>
    %268 = arith.addf %263, %267 : vector<8x128xf32>
    %269 = math.tanh %268 : vector<8x128xf32>
    %cst_74 = arith.constant 1.000000e+00 : f32
    %270 = vector.broadcast %cst_74 : f32 to vector<8x128xf32>
    %271 = arith.subf %270, %262 : vector<8x128xf32>
    %272 = arith.mulf %271, %269 : vector<8x128xf32>
    %273 = arith.mulf %262, %240 : vector<8x128xf32>
    %274 = arith.addf %272, %273 : vector<8x128xf32>
    %c0_75 = arith.constant 0 : index
    %c7_76 = arith.constant 7 : index
    %c0_77 = arith.constant 0 : index
    %275 = vector.load %arg5[%c0_75, %c7_76, %c0_77] : memref<8x16x128xf32, #tpu.memory_space<vmem>>, vector<8x1x128xf32>
    %276 = vector.shape_cast %275 : vector<8x1x128xf32> to vector<8x128xf32>
    %277 = vector.shape_cast %274 : vector<8x128xf32> to vector<8x1x128xf32>
    tpu.vector_store %arg5[%c0_75, %c7_76, %c0_77], %277 {strides = array<i32>} : memref<8x16x128xf32, #tpu.memory_space<vmem>>, vector<8x1x128xf32>,
    %c8 = arith.constant 8 : index
    %c0_78 = arith.constant 0 : index
    %c0_79 = arith.constant 0 : index
    %278 = vector.load %arg2[%c8, %c0_78, %c0_79] : memref<16x8x384xf32, #tpu.memory_space<vmem>>, vector<1x8x384xf32>
    %279 = vector.shape_cast %278 : vector<1x8x384xf32> to vector<8x384xf32>
    %cst_80 = arith.constant dense<0.000000e+00> : vector<8x384xf32>
    %280 = tpu.matmul %274, %3, %cst_80 {dimension_numbers = #tpu.dot_dimension_numbers<[1], [0], [0], [1], [0, 0, 1, 1], [], []>} : vector<8x128xf32>, vector<128x384xf32>, vector<8x384xf32> -> vector<8x384xf32>
    %281 = vector.extract_strided_slice %279 {offsets = [0, 0], sizes = [8, 128], strides = [1, 1]} : vector<8x384xf32> to vector<8x128xf32>
    %282 = vector.extract_strided_slice %280 {offsets = [0, 0], sizes = [8, 128], strides = [1, 1]} : vector<8x384xf32> to vector<8x128xf32>
    %283 = arith.addf %281, %282 : vector<8x128xf32>
    %284 = arith.negf %283 : vector<8x128xf32>
    %285 = math.exp %284 : vector<8x128xf32>
    %cst_81 = arith.constant 1.000000e+00 : f32
    %286 = vector.broadcast %cst_81 : f32 to vector<8x128xf32>
    %287 = arith.addf %286, %285 : vector<8x128xf32>
    %288 = arith.divf %286, %287 : vector<8x128xf32>
    %289 = vector.extract_strided_slice %279 {offsets = [0, 128], sizes = [8, 128], strides = [1, 1]} : vector<8x384xf32> to vector<8x128xf32>
    %290 = vector.extract_strided_slice %280 {offsets = [0, 128], sizes = [8, 128], strides = [1, 1]} : vector<8x384xf32> to vector<8x128xf32>
    %291 = arith.addf %289, %290 : vector<8x128xf32>
    %292 = arith.negf %291 : vector<8x128xf32>
    %293 = math.exp %292 : vector<8x128xf32>
    %cst_82 = arith.constant 1.000000e+00 : f32
    %294 = vector.broadcast %cst_82 : f32 to vector<8x128xf32>
    %295 = arith.addf %294, %293 : vector<8x128xf32>
    %296 = arith.divf %294, %295 : vector<8x128xf32>
    %297 = vector.extract_strided_slice %279 {offsets = [0, 256], sizes = [8, 128], strides = [1, 1]} : vector<8x384xf32> to vector<8x128xf32>
    %298 = vector.extract_strided_slice %280 {offsets = [0, 256], sizes = [8, 128], strides = [1, 1]} : vector<8x384xf32> to vector<8x128xf32>
    %299 = vector.broadcast %4 : vector<1x128xf32> to vector<8x128xf32>
    %300 = arith.addf %298, %299 : vector<8x128xf32>
    %301 = arith.mulf %288, %300 : vector<8x128xf32>
    %302 = arith.addf %297, %301 : vector<8x128xf32>
    %303 = math.tanh %302 : vector<8x128xf32>
    %cst_83 = arith.constant 1.000000e+00 : f32
    %304 = vector.broadcast %cst_83 : f32 to vector<8x128xf32>
    %305 = arith.subf %304, %296 : vector<8x128xf32>
    %306 = arith.mulf %305, %303 : vector<8x128xf32>
    %307 = arith.mulf %296, %274 : vector<8x128xf32>
    %308 = arith.addf %306, %307 : vector<8x128xf32>
    %c0_84 = arith.constant 0 : index
    %c8_85 = arith.constant 8 : index
    %c0_86 = arith.constant 0 : index
    %309 = vector.load %arg5[%c0_84, %c8_85, %c0_86] : memref<8x16x128xf32, #tpu.memory_space<vmem>>, vector<8x1x128xf32>
    %310 = vector.shape_cast %309 : vector<8x1x128xf32> to vector<8x128xf32>
    %311 = vector.shape_cast %308 : vector<8x128xf32> to vector<8x1x128xf32>
    tpu.vector_store %arg5[%c0_84, %c8_85, %c0_86], %311 {strides = array<i32>} : memref<8x16x128xf32, #tpu.memory_space<vmem>>, vector<8x1x128xf32>,
    %c9 = arith.constant 9 : index
    %c0_87 = arith.constant 0 : index
    %c0_88 = arith.constant 0 : index
    %312 = vector.load %arg2[%c9, %c0_87, %c0_88] : memref<16x8x384xf32, #tpu.memory_space<vmem>>, vector<1x8x384xf32>
    %313 = vector.shape_cast %312 : vector<1x8x384xf32> to vector<8x384xf32>
    %cst_89 = arith.constant dense<0.000000e+00> : vector<8x384xf32>
    %314 = tpu.matmul %308, %3, %cst_89 {dimension_numbers = #tpu.dot_dimension_numbers<[1], [0], [0], [1], [0, 0, 1, 1], [], []>} : vector<8x128xf32>, vector<128x384xf32>, vector<8x384xf32> -> vector<8x384xf32>
    %315 = vector.extract_strided_slice %313 {offsets = [0, 0], sizes = [8, 128], strides = [1, 1]} : vector<8x384xf32> to vector<8x128xf32>
    %316 = vector.extract_strided_slice %314 {offsets = [0, 0], sizes = [8, 128], strides = [1, 1]} : vector<8x384xf32> to vector<8x128xf32>
    %317 = arith.addf %315, %316 : vector<8x128xf32>
    %318 = arith.negf %317 : vector<8x128xf32>
    %319 = math.exp %318 : vector<8x128xf32>
    %cst_90 = arith.constant 1.000000e+00 : f32
    %320 = vector.broadcast %cst_90 : f32 to vector<8x128xf32>
    %321 = arith.addf %320, %319 : vector<8x128xf32>
    %322 = arith.divf %320, %321 : vector<8x128xf32>
    %323 = vector.extract_strided_slice %313 {offsets = [0, 128], sizes = [8, 128], strides = [1, 1]} : vector<8x384xf32> to vector<8x128xf32>
    %324 = vector.extract_strided_slice %314 {offsets = [0, 128], sizes = [8, 128], strides = [1, 1]} : vector<8x384xf32> to vector<8x128xf32>
    %325 = arith.addf %323, %324 : vector<8x128xf32>
    %326 = arith.negf %325 : vector<8x128xf32>
    %327 = math.exp %326 : vector<8x128xf32>
    %cst_91 = arith.constant 1.000000e+00 : f32
    %328 = vector.broadcast %cst_91 : f32 to vector<8x128xf32>
    %329 = arith.addf %328, %327 : vector<8x128xf32>
    %330 = arith.divf %328, %329 : vector<8x128xf32>
    %331 = vector.extract_strided_slice %313 {offsets = [0, 256], sizes = [8, 128], strides = [1, 1]} : vector<8x384xf32> to vector<8x128xf32>
    %332 = vector.extract_strided_slice %314 {offsets = [0, 256], sizes = [8, 128], strides = [1, 1]} : vector<8x384xf32> to vector<8x128xf32>
    %333 = vector.broadcast %4 : vector<1x128xf32> to vector<8x128xf32>
    %334 = arith.addf %332, %333 : vector<8x128xf32>
    %335 = arith.mulf %322, %334 : vector<8x128xf32>
    %336 = arith.addf %331, %335 : vector<8x128xf32>
    %337 = math.tanh %336 : vector<8x128xf32>
    %cst_92 = arith.constant 1.000000e+00 : f32
    %338 = vector.broadcast %cst_92 : f32 to vector<8x128xf32>
    %339 = arith.subf %338, %330 : vector<8x128xf32>
    %340 = arith.mulf %339, %337 : vector<8x128xf32>
    %341 = arith.mulf %330, %308 : vector<8x128xf32>
    %342 = arith.addf %340, %341 : vector<8x128xf32>
    %c0_93 = arith.constant 0 : index
    %c9_94 = arith.constant 9 : index
    %c0_95 = arith.constant 0 : index
    %343 = vector.load %arg5[%c0_93, %c9_94, %c0_95] : memref<8x16x128xf32, #tpu.memory_space<vmem>>, vector<8x1x128xf32>
    %344 = vector.shape_cast %343 : vector<8x1x128xf32> to vector<8x128xf32>
    %345 = vector.shape_cast %342 : vector<8x128xf32> to vector<8x1x128xf32>
    tpu.vector_store %arg5[%c0_93, %c9_94, %c0_95], %345 {strides = array<i32>} : memref<8x16x128xf32, #tpu.memory_space<vmem>>, vector<8x1x128xf32>,
    %c10 = arith.constant 10 : index
    %c0_96 = arith.constant 0 : index
    %c0_97 = arith.constant 0 : index
    %346 = vector.load %arg2[%c10, %c0_96, %c0_97] : memref<16x8x384xf32, #tpu.memory_space<vmem>>, vector<1x8x384xf32>
    %347 = vector.shape_cast %346 : vector<1x8x384xf32> to vector<8x384xf32>
    %cst_98 = arith.constant dense<0.000000e+00> : vector<8x384xf32>
    %348 = tpu.matmul %342, %3, %cst_98 {dimension_numbers = #tpu.dot_dimension_numbers<[1], [0], [0], [1], [0, 0, 1, 1], [], []>} : vector<8x128xf32>, vector<128x384xf32>, vector<8x384xf32> -> vector<8x384xf32>
    %349 = vector.extract_strided_slice %347 {offsets = [0, 0], sizes = [8, 128], strides = [1, 1]} : vector<8x384xf32> to vector<8x128xf32>
    %350 = vector.extract_strided_slice %348 {offsets = [0, 0], sizes = [8, 128], strides = [1, 1]} : vector<8x384xf32> to vector<8x128xf32>
    %351 = arith.addf %349, %350 : vector<8x128xf32>
    %352 = arith.negf %351 : vector<8x128xf32>
    %353 = math.exp %352 : vector<8x128xf32>
    %cst_99 = arith.constant 1.000000e+00 : f32
    %354 = vector.broadcast %cst_99 : f32 to vector<8x128xf32>
    %355 = arith.addf %354, %353 : vector<8x128xf32>
    %356 = arith.divf %354, %355 : vector<8x128xf32>
    %357 = vector.extract_strided_slice %347 {offsets = [0, 128], sizes = [8, 128], strides = [1, 1]} : vector<8x384xf32> to vector<8x128xf32>
    %358 = vector.extract_strided_slice %348 {offsets = [0, 128], sizes = [8, 128], strides = [1, 1]} : vector<8x384xf32> to vector<8x128xf32>
    %359 = arith.addf %357, %358 : vector<8x128xf32>
    %360 = arith.negf %359 : vector<8x128xf32>
    %361 = math.exp %360 : vector<8x128xf32>
    %cst_100 = arith.constant 1.000000e+00 : f32
    %362 = vector.broadcast %cst_100 : f32 to vector<8x128xf32>
    %363 = arith.addf %362, %361 : vector<8x128xf32>
    %364 = arith.divf %362, %363 : vector<8x128xf32>
    %365 = vector.extract_strided_slice %347 {offsets = [0, 256], sizes = [8, 128], strides = [1, 1]} : vector<8x384xf32> to vector<8x128xf32>
    %366 = vector.extract_strided_slice %348 {offsets = [0, 256], sizes = [8, 128], strides = [1, 1]} : vector<8x384xf32> to vector<8x128xf32>
    %367 = vector.broadcast %4 : vector<1x128xf32> to vector<8x128xf32>
    %368 = arith.addf %366, %367 : vector<8x128xf32>
    %369 = arith.mulf %356, %368 : vector<8x128xf32>
    %370 = arith.addf %365, %369 : vector<8x128xf32>
    %371 = math.tanh %370 : vector<8x128xf32>
    %cst_101 = arith.constant 1.000000e+00 : f32
    %372 = vector.broadcast %cst_101 : f32 to vector<8x128xf32>
    %373 = arith.subf %372, %364 : vector<8x128xf32>
    %374 = arith.mulf %373, %371 : vector<8x128xf32>
    %375 = arith.mulf %364, %342 : vector<8x128xf32>
    %376 = arith.addf %374, %375 : vector<8x128xf32>
    %c0_102 = arith.constant 0 : index
    %c10_103 = arith.constant 10 : index
    %c0_104 = arith.constant 0 : index
    %377 = vector.load %arg5[%c0_102, %c10_103, %c0_104] : memref<8x16x128xf32, #tpu.memory_space<vmem>>, vector<8x1x128xf32>
    %378 = vector.shape_cast %377 : vector<8x1x128xf32> to vector<8x128xf32>
    %379 = vector.shape_cast %376 : vector<8x128xf32> to vector<8x1x128xf32>
    tpu.vector_store %arg5[%c0_102, %c10_103, %c0_104], %379 {strides = array<i32>} : memref<8x16x128xf32, #tpu.memory_space<vmem>>, vector<8x1x128xf32>,
    %c11 = arith.constant 11 : index
    %c0_105 = arith.constant 0 : index
    %c0_106 = arith.constant 0 : index
    %380 = vector.load %arg2[%c11, %c0_105, %c0_106] : memref<16x8x384xf32, #tpu.memory_space<vmem>>, vector<1x8x384xf32>
    %381 = vector.shape_cast %380 : vector<1x8x384xf32> to vector<8x384xf32>
    %cst_107 = arith.constant dense<0.000000e+00> : vector<8x384xf32>
    %382 = tpu.matmul %376, %3, %cst_107 {dimension_numbers = #tpu.dot_dimension_numbers<[1], [0], [0], [1], [0, 0, 1, 1], [], []>} : vector<8x128xf32>, vector<128x384xf32>, vector<8x384xf32> -> vector<8x384xf32>
    %383 = vector.extract_strided_slice %381 {offsets = [0, 0], sizes = [8, 128], strides = [1, 1]} : vector<8x384xf32> to vector<8x128xf32>
    %384 = vector.extract_strided_slice %382 {offsets = [0, 0], sizes = [8, 128], strides = [1, 1]} : vector<8x384xf32> to vector<8x128xf32>
    %385 = arith.addf %383, %384 : vector<8x128xf32>
    %386 = arith.negf %385 : vector<8x128xf32>
    %387 = math.exp %386 : vector<8x128xf32>
    %cst_108 = arith.constant 1.000000e+00 : f32
    %388 = vector.broadcast %cst_108 : f32 to vector<8x128xf32>
    %389 = arith.addf %388, %387 : vector<8x128xf32>
    %390 = arith.divf %388, %389 : vector<8x128xf32>
    %391 = vector.extract_strided_slice %381 {offsets = [0, 128], sizes = [8, 128], strides = [1, 1]} : vector<8x384xf32> to vector<8x128xf32>
    %392 = vector.extract_strided_slice %382 {offsets = [0, 128], sizes = [8, 128], strides = [1, 1]} : vector<8x384xf32> to vector<8x128xf32>
    %393 = arith.addf %391, %392 : vector<8x128xf32>
    %394 = arith.negf %393 : vector<8x128xf32>
    %395 = math.exp %394 : vector<8x128xf32>
    %cst_109 = arith.constant 1.000000e+00 : f32
    %396 = vector.broadcast %cst_109 : f32 to vector<8x128xf32>
    %397 = arith.addf %396, %395 : vector<8x128xf32>
    %398 = arith.divf %396, %397 : vector<8x128xf32>
    %399 = vector.extract_strided_slice %381 {offsets = [0, 256], sizes = [8, 128], strides = [1, 1]} : vector<8x384xf32> to vector<8x128xf32>
    %400 = vector.extract_strided_slice %382 {offsets = [0, 256], sizes = [8, 128], strides = [1, 1]} : vector<8x384xf32> to vector<8x128xf32>
    %401 = vector.broadcast %4 : vector<1x128xf32> to vector<8x128xf32>
    %402 = arith.addf %400, %401 : vector<8x128xf32>
    %403 = arith.mulf %390, %402 : vector<8x128xf32>
    %404 = arith.addf %399, %403 : vector<8x128xf32>
    %405 = math.tanh %404 : vector<8x128xf32>
    %cst_110 = arith.constant 1.000000e+00 : f32
    %406 = vector.broadcast %cst_110 : f32 to vector<8x128xf32>
    %407 = arith.subf %406, %398 : vector<8x128xf32>
    %408 = arith.mulf %407, %405 : vector<8x128xf32>
    %409 = arith.mulf %398, %376 : vector<8x128xf32>
    %410 = arith.addf %408, %409 : vector<8x128xf32>
    %c0_111 = arith.constant 0 : index
    %c11_112 = arith.constant 11 : index
    %c0_113 = arith.constant 0 : index
    %411 = vector.load %arg5[%c0_111, %c11_112, %c0_113] : memref<8x16x128xf32, #tpu.memory_space<vmem>>, vector<8x1x128xf32>
    %412 = vector.shape_cast %411 : vector<8x1x128xf32> to vector<8x128xf32>
    %413 = vector.shape_cast %410 : vector<8x128xf32> to vector<8x1x128xf32>
    tpu.vector_store %arg5[%c0_111, %c11_112, %c0_113], %413 {strides = array<i32>} : memref<8x16x128xf32, #tpu.memory_space<vmem>>, vector<8x1x128xf32>,
    %c12 = arith.constant 12 : index
    %c0_114 = arith.constant 0 : index
    %c0_115 = arith.constant 0 : index
    %414 = vector.load %arg2[%c12, %c0_114, %c0_115] : memref<16x8x384xf32, #tpu.memory_space<vmem>>, vector<1x8x384xf32>
    %415 = vector.shape_cast %414 : vector<1x8x384xf32> to vector<8x384xf32>
    %cst_116 = arith.constant dense<0.000000e+00> : vector<8x384xf32>
    %416 = tpu.matmul %410, %3, %cst_116 {dimension_numbers = #tpu.dot_dimension_numbers<[1], [0], [0], [1], [0, 0, 1, 1], [], []>} : vector<8x128xf32>, vector<128x384xf32>, vector<8x384xf32> -> vector<8x384xf32>
    %417 = vector.extract_strided_slice %415 {offsets = [0, 0], sizes = [8, 128], strides = [1, 1]} : vector<8x384xf32> to vector<8x128xf32>
    %418 = vector.extract_strided_slice %416 {offsets = [0, 0], sizes = [8, 128], strides = [1, 1]} : vector<8x384xf32> to vector<8x128xf32>
    %419 = arith.addf %417, %418 : vector<8x128xf32>
    %420 = arith.negf %419 : vector<8x128xf32>
    %421 = math.exp %420 : vector<8x128xf32>
    %cst_117 = arith.constant 1.000000e+00 : f32
    %422 = vector.broadcast %cst_117 : f32 to vector<8x128xf32>
    %423 = arith.addf %422, %421 : vector<8x128xf32>
    %424 = arith.divf %422, %423 : vector<8x128xf32>
    %425 = vector.extract_strided_slice %415 {offsets = [0, 128], sizes = [8, 128], strides = [1, 1]} : vector<8x384xf32> to vector<8x128xf32>
    %426 = vector.extract_strided_slice %416 {offsets = [0, 128], sizes = [8, 128], strides = [1, 1]} : vector<8x384xf32> to vector<8x128xf32>
    %427 = arith.addf %425, %426 : vector<8x128xf32>
    %428 = arith.negf %427 : vector<8x128xf32>
    %429 = math.exp %428 : vector<8x128xf32>
    %cst_118 = arith.constant 1.000000e+00 : f32
    %430 = vector.broadcast %cst_118 : f32 to vector<8x128xf32>
    %431 = arith.addf %430, %429 : vector<8x128xf32>
    %432 = arith.divf %430, %431 : vector<8x128xf32>
    %433 = vector.extract_strided_slice %415 {offsets = [0, 256], sizes = [8, 128], strides = [1, 1]} : vector<8x384xf32> to vector<8x128xf32>
    %434 = vector.extract_strided_slice %416 {offsets = [0, 256], sizes = [8, 128], strides = [1, 1]} : vector<8x384xf32> to vector<8x128xf32>
    %435 = vector.broadcast %4 : vector<1x128xf32> to vector<8x128xf32>
    %436 = arith.addf %434, %435 : vector<8x128xf32>
    %437 = arith.mulf %424, %436 : vector<8x128xf32>
    %438 = arith.addf %433, %437 : vector<8x128xf32>
    %439 = math.tanh %438 : vector<8x128xf32>
    %cst_119 = arith.constant 1.000000e+00 : f32
    %440 = vector.broadcast %cst_119 : f32 to vector<8x128xf32>
    %441 = arith.subf %440, %432 : vector<8x128xf32>
    %442 = arith.mulf %441, %439 : vector<8x128xf32>
    %443 = arith.mulf %432, %410 : vector<8x128xf32>
    %444 = arith.addf %442, %443 : vector<8x128xf32>
    %c0_120 = arith.constant 0 : index
    %c12_121 = arith.constant 12 : index
    %c0_122 = arith.constant 0 : index
    %445 = vector.load %arg5[%c0_120, %c12_121, %c0_122] : memref<8x16x128xf32, #tpu.memory_space<vmem>>, vector<8x1x128xf32>
    %446 = vector.shape_cast %445 : vector<8x1x128xf32> to vector<8x128xf32>
    %447 = vector.shape_cast %444 : vector<8x128xf32> to vector<8x1x128xf32>
    tpu.vector_store %arg5[%c0_120, %c12_121, %c0_122], %447 {strides = array<i32>} : memref<8x16x128xf32, #tpu.memory_space<vmem>>, vector<8x1x128xf32>,
    %c13 = arith.constant 13 : index
    %c0_123 = arith.constant 0 : index
    %c0_124 = arith.constant 0 : index
    %448 = vector.load %arg2[%c13, %c0_123, %c0_124] : memref<16x8x384xf32, #tpu.memory_space<vmem>>, vector<1x8x384xf32>
    %449 = vector.shape_cast %448 : vector<1x8x384xf32> to vector<8x384xf32>
    %cst_125 = arith.constant dense<0.000000e+00> : vector<8x384xf32>
    %450 = tpu.matmul %444, %3, %cst_125 {dimension_numbers = #tpu.dot_dimension_numbers<[1], [0], [0], [1], [0, 0, 1, 1], [], []>} : vector<8x128xf32>, vector<128x384xf32>, vector<8x384xf32> -> vector<8x384xf32>
    %451 = vector.extract_strided_slice %449 {offsets = [0, 0], sizes = [8, 128], strides = [1, 1]} : vector<8x384xf32> to vector<8x128xf32>
    %452 = vector.extract_strided_slice %450 {offsets = [0, 0], sizes = [8, 128], strides = [1, 1]} : vector<8x384xf32> to vector<8x128xf32>
    %453 = arith.addf %451, %452 : vector<8x128xf32>
    %454 = arith.negf %453 : vector<8x128xf32>
    %455 = math.exp %454 : vector<8x128xf32>
    %cst_126 = arith.constant 1.000000e+00 : f32
    %456 = vector.broadcast %cst_126 : f32 to vector<8x128xf32>
    %457 = arith.addf %456, %455 : vector<8x128xf32>
    %458 = arith.divf %456, %457 : vector<8x128xf32>
    %459 = vector.extract_strided_slice %449 {offsets = [0, 128], sizes = [8, 128], strides = [1, 1]} : vector<8x384xf32> to vector<8x128xf32>
    %460 = vector.extract_strided_slice %450 {offsets = [0, 128], sizes = [8, 128], strides = [1, 1]} : vector<8x384xf32> to vector<8x128xf32>
    %461 = arith.addf %459, %460 : vector<8x128xf32>
    %462 = arith.negf %461 : vector<8x128xf32>
    %463 = math.exp %462 : vector<8x128xf32>
    %cst_127 = arith.constant 1.000000e+00 : f32
    %464 = vector.broadcast %cst_127 : f32 to vector<8x128xf32>
    %465 = arith.addf %464, %463 : vector<8x128xf32>
    %466 = arith.divf %464, %465 : vector<8x128xf32>
    %467 = vector.extract_strided_slice %449 {offsets = [0, 256], sizes = [8, 128], strides = [1, 1]} : vector<8x384xf32> to vector<8x128xf32>
    %468 = vector.extract_strided_slice %450 {offsets = [0, 256], sizes = [8, 128], strides = [1, 1]} : vector<8x384xf32> to vector<8x128xf32>
    %469 = vector.broadcast %4 : vector<1x128xf32> to vector<8x128xf32>
    %470 = arith.addf %468, %469 : vector<8x128xf32>
    %471 = arith.mulf %458, %470 : vector<8x128xf32>
    %472 = arith.addf %467, %471 : vector<8x128xf32>
    %473 = math.tanh %472 : vector<8x128xf32>
    %cst_128 = arith.constant 1.000000e+00 : f32
    %474 = vector.broadcast %cst_128 : f32 to vector<8x128xf32>
    %475 = arith.subf %474, %466 : vector<8x128xf32>
    %476 = arith.mulf %475, %473 : vector<8x128xf32>
    %477 = arith.mulf %466, %444 : vector<8x128xf32>
    %478 = arith.addf %476, %477 : vector<8x128xf32>
    %c0_129 = arith.constant 0 : index
    %c13_130 = arith.constant 13 : index
    %c0_131 = arith.constant 0 : index
    %479 = vector.load %arg5[%c0_129, %c13_130, %c0_131] : memref<8x16x128xf32, #tpu.memory_space<vmem>>, vector<8x1x128xf32>
    %480 = vector.shape_cast %479 : vector<8x1x128xf32> to vector<8x128xf32>
    %481 = vector.shape_cast %478 : vector<8x128xf32> to vector<8x1x128xf32>
    tpu.vector_store %arg5[%c0_129, %c13_130, %c0_131], %481 {strides = array<i32>} : memref<8x16x128xf32, #tpu.memory_space<vmem>>, vector<8x1x128xf32>,
    %c14 = arith.constant 14 : index
    %c0_132 = arith.constant 0 : index
    %c0_133 = arith.constant 0 : index
    %482 = vector.load %arg2[%c14, %c0_132, %c0_133] : memref<16x8x384xf32, #tpu.memory_space<vmem>>, vector<1x8x384xf32>
    %483 = vector.shape_cast %482 : vector<1x8x384xf32> to vector<8x384xf32>
    %cst_134 = arith.constant dense<0.000000e+00> : vector<8x384xf32>
    %484 = tpu.matmul %478, %3, %cst_134 {dimension_numbers = #tpu.dot_dimension_numbers<[1], [0], [0], [1], [0, 0, 1, 1], [], []>} : vector<8x128xf32>, vector<128x384xf32>, vector<8x384xf32> -> vector<8x384xf32>
    %485 = vector.extract_strided_slice %483 {offsets = [0, 0], sizes = [8, 128], strides = [1, 1]} : vector<8x384xf32> to vector<8x128xf32>
    %486 = vector.extract_strided_slice %484 {offsets = [0, 0], sizes = [8, 128], strides = [1, 1]} : vector<8x384xf32> to vector<8x128xf32>
    %487 = arith.addf %485, %486 : vector<8x128xf32>
    %488 = arith.negf %487 : vector<8x128xf32>
    %489 = math.exp %488 : vector<8x128xf32>
    %cst_135 = arith.constant 1.000000e+00 : f32
    %490 = vector.broadcast %cst_135 : f32 to vector<8x128xf32>
    %491 = arith.addf %490, %489 : vector<8x128xf32>
    %492 = arith.divf %490, %491 : vector<8x128xf32>
    %493 = vector.extract_strided_slice %483 {offsets = [0, 128], sizes = [8, 128], strides = [1, 1]} : vector<8x384xf32> to vector<8x128xf32>
    %494 = vector.extract_strided_slice %484 {offsets = [0, 128], sizes = [8, 128], strides = [1, 1]} : vector<8x384xf32> to vector<8x128xf32>
    %495 = arith.addf %493, %494 : vector<8x128xf32>
    %496 = arith.negf %495 : vector<8x128xf32>
    %497 = math.exp %496 : vector<8x128xf32>
    %cst_136 = arith.constant 1.000000e+00 : f32
    %498 = vector.broadcast %cst_136 : f32 to vector<8x128xf32>
    %499 = arith.addf %498, %497 : vector<8x128xf32>
    %500 = arith.divf %498, %499 : vector<8x128xf32>
    %501 = vector.extract_strided_slice %483 {offsets = [0, 256], sizes = [8, 128], strides = [1, 1]} : vector<8x384xf32> to vector<8x128xf32>
    %502 = vector.extract_strided_slice %484 {offsets = [0, 256], sizes = [8, 128], strides = [1, 1]} : vector<8x384xf32> to vector<8x128xf32>
    %503 = vector.broadcast %4 : vector<1x128xf32> to vector<8x128xf32>
    %504 = arith.addf %502, %503 : vector<8x128xf32>
    %505 = arith.mulf %492, %504 : vector<8x128xf32>
    %506 = arith.addf %501, %505 : vector<8x128xf32>
    %507 = math.tanh %506 : vector<8x128xf32>
    %cst_137 = arith.constant 1.000000e+00 : f32
    %508 = vector.broadcast %cst_137 : f32 to vector<8x128xf32>
    %509 = arith.subf %508, %500 : vector<8x128xf32>
    %510 = arith.mulf %509, %507 : vector<8x128xf32>
    %511 = arith.mulf %500, %478 : vector<8x128xf32>
    %512 = arith.addf %510, %511 : vector<8x128xf32>
    %c0_138 = arith.constant 0 : index
    %c14_139 = arith.constant 14 : index
    %c0_140 = arith.constant 0 : index
    %513 = vector.load %arg5[%c0_138, %c14_139, %c0_140] : memref<8x16x128xf32, #tpu.memory_space<vmem>>, vector<8x1x128xf32>
    %514 = vector.shape_cast %513 : vector<8x1x128xf32> to vector<8x128xf32>
    %515 = vector.shape_cast %512 : vector<8x128xf32> to vector<8x1x128xf32>
    tpu.vector_store %arg5[%c0_138, %c14_139, %c0_140], %515 {strides = array<i32>} : memref<8x16x128xf32, #tpu.memory_space<vmem>>, vector<8x1x128xf32>,
    %c15 = arith.constant 15 : index
    %c0_141 = arith.constant 0 : index
    %c0_142 = arith.constant 0 : index
    %516 = vector.load %arg2[%c15, %c0_141, %c0_142] : memref<16x8x384xf32, #tpu.memory_space<vmem>>, vector<1x8x384xf32>
    %517 = vector.shape_cast %516 : vector<1x8x384xf32> to vector<8x384xf32>
    %cst_143 = arith.constant dense<0.000000e+00> : vector<8x384xf32>
    %518 = tpu.matmul %512, %3, %cst_143 {dimension_numbers = #tpu.dot_dimension_numbers<[1], [0], [0], [1], [0, 0, 1, 1], [], []>} : vector<8x128xf32>, vector<128x384xf32>, vector<8x384xf32> -> vector<8x384xf32>
    %519 = vector.extract_strided_slice %517 {offsets = [0, 0], sizes = [8, 128], strides = [1, 1]} : vector<8x384xf32> to vector<8x128xf32>
    %520 = vector.extract_strided_slice %518 {offsets = [0, 0], sizes = [8, 128], strides = [1, 1]} : vector<8x384xf32> to vector<8x128xf32>
    %521 = arith.addf %519, %520 : vector<8x128xf32>
    %522 = arith.negf %521 : vector<8x128xf32>
    %523 = math.exp %522 : vector<8x128xf32>
    %cst_144 = arith.constant 1.000000e+00 : f32
    %524 = vector.broadcast %cst_144 : f32 to vector<8x128xf32>
    %525 = arith.addf %524, %523 : vector<8x128xf32>
    %526 = arith.divf %524, %525 : vector<8x128xf32>
    %527 = vector.extract_strided_slice %517 {offsets = [0, 128], sizes = [8, 128], strides = [1, 1]} : vector<8x384xf32> to vector<8x128xf32>
    %528 = vector.extract_strided_slice %518 {offsets = [0, 128], sizes = [8, 128], strides = [1, 1]} : vector<8x384xf32> to vector<8x128xf32>
    %529 = arith.addf %527, %528 : vector<8x128xf32>
    %530 = arith.negf %529 : vector<8x128xf32>
    %531 = math.exp %530 : vector<8x128xf32>
    %cst_145 = arith.constant 1.000000e+00 : f32
    %532 = vector.broadcast %cst_145 : f32 to vector<8x128xf32>
    %533 = arith.addf %532, %531 : vector<8x128xf32>
    %534 = arith.divf %532, %533 : vector<8x128xf32>
    %535 = vector.extract_strided_slice %517 {offsets = [0, 256], sizes = [8, 128], strides = [1, 1]} : vector<8x384xf32> to vector<8x128xf32>
    %536 = vector.extract_strided_slice %518 {offsets = [0, 256], sizes = [8, 128], strides = [1, 1]} : vector<8x384xf32> to vector<8x128xf32>
    %537 = vector.broadcast %4 : vector<1x128xf32> to vector<8x128xf32>
    %538 = arith.addf %536, %537 : vector<8x128xf32>
    %539 = arith.mulf %526, %538 : vector<8x128xf32>
    %540 = arith.addf %535, %539 : vector<8x128xf32>
    %541 = math.tanh %540 : vector<8x128xf32>
    %cst_146 = arith.constant 1.000000e+00 : f32
    %542 = vector.broadcast %cst_146 : f32 to vector<8x128xf32>
    %543 = arith.subf %542, %534 : vector<8x128xf32>
    %544 = arith.mulf %543, %541 : vector<8x128xf32>
    %545 = arith.mulf %534, %512 : vector<8x128xf32>
    %546 = arith.addf %544, %545 : vector<8x128xf32>
    %c0_147 = arith.constant 0 : index
    %c15_148 = arith.constant 15 : index
    %c0_149 = arith.constant 0 : index
    %547 = vector.load %arg5[%c0_147, %c15_148, %c0_149] : memref<8x16x128xf32, #tpu.memory_space<vmem>>, vector<8x1x128xf32>
    %548 = vector.shape_cast %547 : vector<8x1x128xf32> to vector<8x128xf32>
    %549 = vector.shape_cast %546 : vector<8x128xf32> to vector<8x1x128xf32>
    tpu.vector_store %arg5[%c0_147, %c15_148, %c0_149], %549 {strides = array<i32>} : memref<8x16x128xf32, #tpu.memory_space<vmem>>, vector<8x1x128xf32>,
    %c0_150 = arith.constant 0 : index
    %c0_151 = arith.constant 0 : index
    %550 = vector.load %arg6[%c0_150, %c0_151] : memref<8x128xf32, #tpu.memory_space<vmem>>, vector<8x128xf32>
    tpu.vector_store %arg6[%c0_150, %c0_151], %546 {strides = array<i32>} : memref<8x128xf32, #tpu.memory_space<vmem>>, vector<8x128xf32>,
    return
  }
  func.func @transform_0(%arg0: i32, %arg1: i32) -> (i32, i32, i32) {
    %c0_i32 = arith.constant 0 : i32
    %c0_i32_0 = arith.constant 0 : i32
    return %arg1, %arg0, %c0_i32 : i32, i32, i32
  }
  func.func @transform_1(%arg0: i32, %arg1: i32) -> (i32, i32) {
    %c0_i32 = arith.constant 0 : i32
    %c0_i32_0 = arith.constant 0 : i32
    %c0_i32_1 = arith.constant 0 : i32
    return %c0_i32, %c0_i32_0 : i32, i32
  }
  func.func @transform_2(%arg0: i32, %arg1: i32) -> (i32, i32) {
    %c0_i32 = arith.constant 0 : i32
    %c0_i32_0 = arith.constant 0 : i32
    %c0_i32_1 = arith.constant 0 : i32
    return %c0_i32, %c0_i32_0 : i32, i32
  }
  func.func @transform_3(%arg0: i32, %arg1: i32) -> (i32, i32, i32) {
    %c0_i32 = arith.constant 0 : i32
    %c0_i32_0 = arith.constant 0 : i32
    return %arg0, %arg1, %c0_i32 : i32, i32, i32
  }
}

</mosaic_0001>

<bundles_post_ra>
// kernel: gru_forward.1
= control target key start
LH: loop header
LB: loop body
LE: loop exit
PB: predicated region body
PF: predicated region fallthrough
CT: control target
= control target key end

     0   :  { %v5843_v3 = vmov 0.0|0.0   ;;  %v5844_v4 = vmov 0.0   ;;  %vm5845_vm0 = vmmov 0   ;;  %s7390_s1 = inlined_call_operand.vmem [shape: f32[128,384], index: 1, kind: input, shape index: {}]   ;;  %s7391_s0 = inlined_call_operand.vmem [shape: f32[16,8,384], index: 0, kind: input, shape index: {}]   ;;  %s7392_s2 = inlined_call_operand.vmem [shape: f32[1,128], index: 2, kind: input, shape index: {}]   ;;  %s7393_s3 = inlined_call_operand.vmem [shape: f32[8,16,128], index: 3, kind: output, shape index: {}]  }
   0x1   :  { %v20_v0 = vld [vmem:[%s7390_s1 + $0x8] sm:$0xff]  ;;  %v23_v1 = vld [vmem:[%s7390_s1 + $0x20] sm:$0xff]  ;;  %4813 = vmatprep.subr.bf16.mxu1 %v5843_v3  ;;  %136 = vmatprep.mubr.f32.mxu0 %v5844_v4  ;;  %v22_v6 = vld [vmem:[%s7390_s1 + $0x18] sm:$0xff] }
   0x2   :  { %v19_v2 = vld [vmem:[%s7390_s1] sm:$0xff]  ;;  %v5878_v5 = vpack.c.bf16 %v23_v1, %v20_v0  ;;  %v26_v7 = vld [vmem:[%s7390_s1 + $0x38] sm:$0xff]  ;;  %v29_v8 = vld [vmem:[%s7390_s1 + $0x50] sm:$0xff]  ;;  %4253 = vmatprep.mubr.msk.f32.mxu1 %vm5845_vm0, %v5844_v4 }
   0x3   :  { %v5891_v9 = vpack.c.bf16 %v22_v6, %v19_v2  ;;  %v5893_v10 = vpack.c.bf16 %v29_v8, %v26_v7  ;;  %v25_v11 = vld [vmem:[%s7390_s1 + $0x30] sm:$0xff]  ;;  %v28_v12 = vld [vmem:[%s7390_s1 + $0x48] sm:$0xff]  ;;  %v35_v14 = vld [vmem:[%s7390_s1 + $0x80] sm:$0xff] }
   0x4   :  { %v32_v13 = vld [vmem:[%s7390_s1 + $0x68] sm:$0xff]  ;;  %4782 = vmatprep.subr.bf16.mxu0 %v5878_v5  ;;  %v5909_v15 = vpack.c.bf16 %v28_v12, %v25_v11  ;;  %v31_v17 = vld [vmem:[%s7390_s1 + $0x60] sm:$0xff]  ;;  %v34_v18 = vld [vmem:[%s7390_s1 + $0x78] sm:$0xff] }
   0x5   :  { %4784 = vmatpush1.bf16.msra.mxu0 %v5891_v9  ;;  %v5912_v16 = vpack.c.bf16 %v35_v14, %v32_v13  ;;  %v38_v19 = vld [vmem:[%s7390_s1 + $0x98] sm:$0xff]  ;;  %v41_v20 = vld [vmem:[%s7390_s1 + $0xb0] sm:$0xff]  ;;  %v5927_v21 = vpack.c.bf16 %v34_v18, %v31_v17  ;;  %v40_v24 = vld [vmem:[%s7390_s1 + $0xa8] sm:$0xff] }
   0x6   :  { %4786 = vmatprep.subr.bf16.mxu0 %v5893_v10  ;;  %v37_v22 = vld [vmem:[%s7390_s1 + $0x90] sm:$0xff]  ;;  %v5933_v23 = vpack.c.bf16 %v41_v20, %v38_v19  ;;  %v24_v26 = vld [vmem:[%s7390_s1 + $0x28] sm:$0xff]  ;;  %v47_v28 = vld [vmem:[%s7390_s1 + $0xe0] sm:$0xff] }
   0x7   :  { %v21_v25 = vld [vmem:[%s7390_s1 + $0x10] sm:$0xff]  ;;  %v44_v27 = vld [vmem:[%s7390_s1 + $0xc8] sm:$0xff]  ;;  %v27_v30 = vld [vmem:[%s7390_s1 + $0x40] sm:$0xff]  ;;  %v5959_v32 = vpack.c.bf16 %v40_v24, %v37_v22 }
   0x8   :  { %v5950_v29 = vpack.c.bf16 %v24_v26, %v21_v25  ;;  %v30_v31 = vld [vmem:[%s7390_s1 + $0x58] sm:$0xff]  ;;  %v43_v33 = vld [vmem:[%s7390_s1 + $0xc0] sm:$0xff]  ;;  %v5968_v35 = vpack.c.bf16 %v47_v28, %v44_v27  ;;  %v33_v37 = vld [vmem:[%s7390_s1 + $0x70] sm:$0xff] }
   0x9   :  { %4788 = vmatpush1.bf16.msra.mxu0 %v5909_v15  ;;  %v5965_v34 = vpack.c.bf16 %v30_v31, %v27_v30  ;;  %v46_v36 = vld [vmem:[%s7390_s1 + $0xd8] sm:$0xff]  ;;  %v36_v38 = vld [vmem:[%s7390_s1 + $0x88] sm:$0xff]  ;;  %v53_v40 = vld [vmem:[%s7390_s1 + $0x110] sm:$0xff] }
   0xa   :  { %4790 = vmatprep.subr.bf16.mxu0 %v5912_v16  ;;  %4815 = vmatpush3.bf16.msra.mxu1 %v5950_v29  ;;  %v50_v39 = vld [vmem:[%s7390_s1 + $0xf8] sm:$0xff]  ;;  %v5987_v41 = vpack.c.bf16 %v46_v36, %v43_v33  ;;  %v49_v42 = vld [vmem:[%s7390_s1 + $0xf0] sm:$0xff]  ;;  %v5993_v43 = vpack.c.bf16 %v36_v38, %v33_v37  ;;  %v52_v45 = vld [vmem:[%s7390_s1 + $0x108] sm:$0xff] }
   0xb   :  { %4816 = vmatprep.subr.bf16.mxu1 %v5843_v3  ;;  %v5996_v44 = vpack.c.bf16 %v53_v40, %v50_v39  ;;  %v39_v46 = vld [vmem:[%s7390_s1 + $0xa0] sm:$0xff]  ;;  %v42_v47 = vld [vmem:[%s7390_s1 + $0xb8] sm:$0xff]  ;;  %v56_v48 = vld [vmem:[%s7390_s1 + $0x128] sm:$0xff]  ;;  %v6015_v50 = vpack.c.bf16 %v52_v45, %v49_v42 }
   0xc   :  { %v59_v49 = vld [vmem:[%s7390_s1 + $0x140] sm:$0xff]  ;;  %v6021_v52 = vpack.c.bf16 %v42_v47, %v39_v46  ;;  %v58_v54 = vld [vmem:[%s7390_s1 + $0x138] sm:$0xff]  ;;  %v45_v55 = vld [vmem:[%s7390_s1 + $0xd0] sm:$0xff]  ;;  %v5846_v46 = vmov 1966171168  }
   0xd   :  { %4792 = vmatpush1.bf16.msra.mxu0 %v5927_v21  ;;  %v55_v51 = vld [vmem:[%s7390_s1 + $0x120] sm:$0xff]  ;;  %v6024_v53 = vpack.c.bf16 %v59_v49, %v56_v48  ;;  %v48_v56 = vld [vmem:[%s7390_s1 + $0xe8] sm:$0xff]  ;;  %v62_v57 = vld [vmem:[%s7390_s1 + $0x158] sm:$0xff]  ;;  %v244_v47 = vunpack.c.l.s4 %v5846_v46  ;;  %v246_v48 = vlaneseq }
   0xe   :  { %4794 = vmatprep.subr.bf16.mxu0 %v5933_v23  ;;  %4818 = vmatpush3.bf16.msra.mxu1 %v5965_v34  ;;  %v65_v58 = vld [vmem:[%s7390_s1 + $0x170] sm:$0xff]  ;;  %v6043_v59 = vpack.c.bf16 %v58_v54, %v55_v51  ;;  %v6049_v61 = vpack.c.bf16 %v48_v56, %v45_v55  ;;  %v64_v63 = vld [vmem:[%s7390_s1 + $0x168] sm:$0xff]  ;;  %v51_v0 = vld [vmem:[%s7390_s1 + $0x100] sm:$0xff] }
   0xf   :  { %4819 = vmatprep.subr.bf16.mxu1 %v5843_v3  ;;  %v61_v60 = vld [vmem:[%s7390_s1 + $0x150] sm:$0xff]  ;;  %v6052_v62 = vpack.c.bf16 %v65_v58, %v62_v57  ;;  %v54_v1 = vld [vmem:[%s7390_s1 + $0x118] sm:$0xff]  ;;  %v60_v8 = vld [vmem:[%s7390_s1 + $0x148] sm:$0xff]  ;;  %v245_v51 = vunpack.c.0.s8 %v244_v47  ;;  %v247_v54 = vshrl.u32 %v246_v48, 7 }
  0x10   :  { %v6065_v2 = vpack.c.bf16 %v64_v63, %v61_v60  ;;  %v6068_v6 = vpack.c.bf16 %v54_v1, %v51_v0  ;;  %v57_v7 = vld [vmem:[%s7390_s1 + $0x130] sm:$0xff]  ;;  %v63_v12 = vld [vmem:[%s7390_s1 + $0x160] sm:$0xff]  ;;  %v66_v13 = vld [vmem:[%s7390_s1 + $0x178] sm:$0xff] }
  0x11   :  { %4796 = vmatpush1.bf16.msra.mxu0 %v5959_v32  ;;  %v6080_v11 = vpack.c.bf16 %v60_v8, %v57_v7  ;;  %v6092_v14 = vpack.c.bf16 %v66_v13, %v63_v12  ;;  %v69_v17 = vld [vmem:[%s7391_s0] sm:$0xff]  ;;  %v70_v20 = vld [vmem:[%s7391_s0 + $0x8] sm:$0xff]  ;;  %v71_v40 = vld [vmem:[%s7391_s0 + $0x10] sm:$0xff]  ;;  %v6148_v60 = vsub.s32 %v245_v51, %v247_v54 }
  0x12   :  { %4798 = vmatprep.subr.bf16.mxu0 %v5968_v35  ;;  %4821 = vmatpush3.bf16.msra.mxu1 %v5993_v43  ;;  %v6142_v36 = vld [vmem:[%s7392_s2] ss:$0 sm:$0xff]  ;;  %v3816_v51 = vld [vmem:[%s7391_s0 + $0x28] sm:$0xff] }
  0x13   :  { %4822 = vmatprep.subr.bf16.mxu1 %v5843_v3 }
  0x15   :  { %4800 = vmatpush1.bf16.msra.mxu0 %v5987_v41 }
  0x16   :  { %4802 = vmatprep.subr.bf16.mxu0 %v5996_v44  ;;  %4824 = vmatpush3.bf16.msra.mxu1 %v6021_v52 }
  0x17   :  { %4825 = vmatprep.subr.bf16.mxu1 %v5843_v3 }
  0x19   :  { %4804 = vmatpush1.bf16.msra.mxu0 %v6015_v50 }
  0x1a   :  { %4806 = vmatprep.subr.bf16.mxu0 %v6024_v53  ;;  %4827 = vmatpush3.bf16.msra.mxu1 %v6049_v61 }
  0x1b   :  { %4828 = vmatprep.subr.bf16.mxu1 %v5843_v3 }
  0x1d   :  { %4808 = vmatpush1.bf16.msra.mxu0 %v6043_v59 }
  0x1e   :  { %4810 = vmatprep.subr.bf16.mxu0 %v6052_v62  ;;  %4830 = vmatpush3.bf16.msra.mxu1 %v6068_v6 }
  0x1f   :  { %4831 = vmatprep.subr.bf16.mxu1 %v5843_v3 }
  0x21   :  { %4812 = vmatpush1.bf16.msra.mxu0 %v6065_v2 }
  0x22   :  { %4838 = vmatprep.subr.bf16.mxu0 %v5878_v5  ;;  %4833 = vmatpush3.bf16.msra.mxu1 %v6080_v11 }
  0x23   :  { %4834 = vmatprep.subr.bf16.mxu1 %v5843_v3 }
  0x24   :  { %137 = vmatmul.mubr.f32.vlgmr.msra.gmra.mrb[0].mxu0 %v5844_v4 }
  0x25   :  { %4840 = vmatpush1.bf16.msra.mxu0 %v5891_v9  ;;  %375 = vmatprep.mubr.f32.mxu0 %v5844_v4 }
  0x26   :  { %4842 = vmatprep.subr.bf16.mxu0 %v5893_v10  ;;  %4836 = vmatpush3.bf16.msra.mxu1 %v6092_v14 }
  0x27   :  { %4869 = vmatprep.subr.bf16.mxu1 %v5843_v3 }
  0x29   :  { %4844 = vmatpush1.bf16.msra.mxu0 %v5909_v15  ;;  %4254 = vmatmul.mubr.f32.vlgmr.msra.gmra.mrb[0].mxu1 %v5844_v4 }
  0x2a   :  { %4846 = vmatprep.subr.bf16.mxu0 %v5912_v16  ;;  %4871 = vmatpush3.bf16.msra.mxu1 %v5950_v29 }
  0x2b   :  { %4872 = vmatprep.subr.bf16.mxu1 %v5843_v3  ;;  %4288 = vmatprep.mubr.msk.f32.mxu1 %vm5845_vm0, %v5844_v4 }
  0x2d   :  { %4848 = vmatpush1.bf16.msra.mxu0 %v5927_v21 }
  0x2e   :  { %4850 = vmatprep.subr.bf16.mxu0 %v5933_v23  ;;  %4874 = vmatpush3.bf16.msra.mxu1 %v5965_v34 }
  0x2f   :  { %4875 = vmatprep.subr.bf16.mxu1 %v5843_v3 }
  0x31   :  { %4852 = vmatpush1.bf16.msra.mxu0 %v5959_v32 }
  0x32   :  { %4854 = vmatprep.subr.bf16.mxu0 %v5968_v35  ;;  %4877 = vmatpush3.bf16.msra.mxu1 %v5993_v43 }
  0x33   :  { %4878 = vmatprep.subr.bf16.mxu1 %v5843_v3 }
  0x35   :  { %4856 = vmatpush1.bf16.msra.mxu0 %v5987_v41 }
  0x36   :  { %4858 = vmatprep.subr.bf16.mxu0 %v5996_v44  ;;  %4880 = vmatpush3.bf16.msra.mxu1 %v6021_v52 }
  0x37   :  { %4881 = vmatprep.subr.bf16.mxu1 %v5843_v3 }
  0x39   :  { %4860 = vmatpush1.bf16.msra.mxu0 %v6015_v50 }
  0x3a   :  { %4862 = vmatprep.subr.bf16.mxu0 %v6024_v53  ;;  %4883 = vmatpush3.bf16.msra.mxu1 %v6049_v61 }
  0x3b   :  { %4884 = vmatprep.subr.bf16.mxu1 %v5843_v3 }
  0x3d   :  { %4864 = vmatpush1.bf16.msra.mxu0 %v6043_v59 }
  0x3e   :  { %4866 = vmatprep.subr.bf16.mxu0 %v6052_v62  ;;  %4886 = vmatpush3.bf16.msra.mxu1 %v6068_v6 }
  0x3f   :  { %4887 = vmatprep.subr.bf16.mxu1 %v5843_v3 }
  0x41   :  { %4868 = vmatpush1.bf16.msra.mxu0 %v6065_v2 }
  0x42   :  { %4894 = vmatprep.subr.bf16.mxu0 %v5878_v5  ;;  %4889 = vmatpush3.bf16.msra.mxu1 %v6080_v11 }
  0x43   :  { %4890 = vmatprep.subr.bf16.mxu1 %v5843_v3 }
  0x46   :  { %4892 = vmatpush3.bf16.msra.mxu1 %v6092_v14 }
  0x47   :  { %4925 = vmatprep.subr.bf16.mxu1 %v5843_v3 }
  0xf7   :  { %v138_v18 = vpop.f32.mrb[0].mxu0 }
  0xf8   :  { %v213_v19 = vadd.f32 %v138_v18, %v69_v17  ;;  %v140_v22 = vpop.f32.mrb[1].mxu0 }
  0xf9   :  { %v220_v25 = vadd.f32 %v140_v22, %v70_v20 }
  0xfa   :  { %v3807_v24 = vmul.f32 -1.442695, %v213_v19 }
  0xfb   :  { %v3808_v26 = vmul.f32 -1.442695, %v220_v25 }
  0xfc   :  { %5681 = vpow2.f32 %v3807_v24  ;;  %v209_v27 = vpop.f32.mrb[0].mxu1 }
  0xfd   :  { %v4255_v28 = vpop.f32.mrb[1].mxu1  ;;  %5683 = vpow2.f32 %v3808_v26  ;;  %v233_v38 = vadd.f32 %v6142_v36, %v209_v27  ;;  %v3814_v26 = vld [vmem:[%s7391_s0 + $0x18] sm:$0xff] }
 0x106   :  { %v5682_v30 = vpop.eup %5681 }
 0x107   :  { %v217_v31 = vadd.f32 1.0, %v5682_v30  ;;  %v5684_v33 = vpop.eup %5683 }
 0x108   :  { %v224_v37 = vadd.f32 1.0, %v5684_v33 }
 0x109   :  { %5685 = vrcp.f32 %v217_v31  ;;  %v3815_v31 = vld [vmem:[%s7391_s0 + $0x20] sm:$0xff] }
 0x10a   :  { %5687 = vrcp.f32 %v224_v37 }
 0x113   :  { %v5686_v39 = vpop.eup %5685 }
 0x114   :  { %v234_v42 = vmul.f32 %v5686_v39, %v233_v38  ;;  %v5688_v49 = vpop.eup %5687 }
 0x115   :  { %v237_v55 = vsub.f32 1.0, %v5688_v49  ;;  %v239_v58 = vmul.f32 0.0, %v5688_v49 }
 0x116   :  { %v235_v45 = vadd.f32 %v234_v42, %v71_v40 }
 0x118   :  { %5689 = vtanh.f32 %v235_v45 }
 0x122   :  { %v5690_v56 = vpop.eup %5689 }
 0x123   :  { %v238_v57 = vmul.f32 %v5690_v56, %v237_v55 }
 0x125   :  { %v6150_v63 = vadd.f32 %v239_v58, %v238_v57 }
 0x127   :  { %v242_v0 = vcombine.high %v6150_v63, %v6150_v63  ;;  %v249_v1 = vrot.slane %v6150_v63, %v6148_v60  ;;  %376 = vmatmul.mubr.f32.vlgmr.msra.gmra.mrb[2].mxu0 %v6150_v63  ;;  %4289 = vmatmul.mubr.f32.vlgmr.msra.gmra.mrb[2].mxu1 %v6150_v63 }
 0x128   :  { %4896 = vmatpush1.bf16.msra.mxu0 %v5891_v9  ;;  %4927 = vmatpush3.bf16.msra.mxu1 %v5950_v29 }
 0x129   :  { %v256_v7 = vrot.slane %v242_v0, %v6148_v60  ;;  %v257_v8 = vcombine.high %v249_v1, %v249_v1  ;;  %v265_v12 = vrot.slane %v249_v1, %v6148_v60  ;;  %3810 = vst.sshfl [vmem:[%s7393_s3] sm:$0x1 pattern:$0x73625140] %v249_v1  ;;  %4898 = vmatprep.subr.bf16.mxu0 %v5893_v10 }
 0x12a   :  { %4928 = vmatprep.subr.bf16.mxu1 %v5843_v3  ;;  %608 = vmatprep.mubr.f32.mxu0 %v5844_v4 }
 0x12b   :  { %4323 = vmatprep.mubr.msk.f32.mxu1 %vm5845_vm0, %v5844_v4  ;;  %v258_v13 = vcombine.high %v256_v7, %v256_v7  ;;  %v272_v17 = vrot.slane %v256_v7, %v6148_v60  ;;  %v279_v18 = vrot.slane %v257_v8, %v6148_v60  ;;  %v287_v19 = vcombine.high %v265_v12, %v265_v12 }
 0x12c   :  { %3811 = vst.sshfl [vmem:[%s7393_s3 + $0x10] sm:$0x1 pattern:$0x73625140] %v257_v8  ;;  %4900 = vmatpush1.bf16.msra.mxu0 %v5909_v15  ;;  %4930 = vmatpush3.bf16.msra.mxu1 %v5965_v34 }
 0x12d   :  { %3812 = vst.sshfl [vmem:[%s7393_s3 + $0x40] sm:$0x1 pattern:$0x73625140] %v256_v7  ;;  %v286_v20 = vrot.slane %v258_v13, %v6148_v60  ;;  %v288_v22 = vcombine.high %v272_v17, %v272_v17  ;;  %v289_v24 = vcombine.high %v279_v18, %v279_v18  ;;  %301 = vst [vmem:[%s7393_s3 + $0x20] sm:$0x1] %v287_v19  ;;  %4902 = vmatprep.subr.bf16.mxu0 %v5912_v16 }
 0x12e   :  { %3813 = vst.sshfl [vmem:[%s7393_s3 + $0x50] sm:$0x1 pattern:$0x73625140] %v258_v13  ;;  %4931 = vmatprep.subr.bf16.mxu1 %v5843_v3 }
 0x12f   :  { %v290_v25 = vcombine.high %v286_v20, %v286_v20  ;;  %302 = vst [vmem:[%s7393_s3 + $0x30] sm:$0x1] %v289_v24  ;;  %305 = vst [vmem:[%s7393_s3 + $0x60] sm:$0x1] %v288_v22 }
 0x130   :  { %4904 = vmatpush1.bf16.msra.mxu0 %v5927_v21  ;;  %4933 = vmatpush3.bf16.msra.mxu1 %v5993_v43 }
 0x131   :  { %306 = vst [vmem:[%s7393_s3 + $0x70] sm:$0x1] %v290_v25  ;;  %4906 = vmatprep.subr.bf16.mxu0 %v5933_v23  ;;  %4934 = vmatprep.subr.bf16.mxu1 %v5843_v3 }
 0x134   :  { %4908 = vmatpush1.bf16.msra.mxu0 %v5959_v32  ;;  %4936 = vmatpush3.bf16.msra.mxu1 %v6021_v52 }
 0x135   :  { %4910 = vmatprep.subr.bf16.mxu0 %v5968_v35  ;;  %4937 = vmatprep.subr.bf16.mxu1 %v5843_v3 }
 0x138   :  { %4912 = vmatpush1.bf16.msra.mxu0 %v5987_v41  ;;  %4939 = vmatpush3.bf16.msra.mxu1 %v6049_v61 }
 0x139   :  { %4914 = vmatprep.subr.bf16.mxu0 %v5996_v44  ;;  %4940 = vmatprep.subr.bf16.mxu1 %v5843_v3 }
 0x13c   :  { %4916 = vmatpush1.bf16.msra.mxu0 %v6015_v50  ;;  %4942 = vmatpush3.bf16.msra.mxu1 %v6068_v6 }
 0x13d   :  { %4918 = vmatprep.subr.bf16.mxu0 %v6024_v53  ;;  %4943 = vmatprep.subr.bf16.mxu1 %v5843_v3 }
 0x140   :  { %4920 = vmatpush1.bf16.msra.mxu0 %v6043_v59  ;;  %4945 = vmatpush3.bf16.msra.mxu1 %v6080_v11 }
 0x141   :  { %4922 = vmatprep.subr.bf16.mxu0 %v6052_v62  ;;  %4946 = vmatprep.subr.bf16.mxu1 %v5843_v3 }
 0x144   :  { %4924 = vmatpush1.bf16.msra.mxu0 %v6065_v2  ;;  %4948 = vmatpush3.bf16.msra.mxu1 %v6092_v14 }
 0x145   :  { %4950 = vmatprep.subr.bf16.mxu0 %v5878_v5  ;;  %4981 = vmatprep.subr.bf16.mxu1 %v5843_v3 }
 0x1fa   :  { %v377_v27 = vpop.f32.mrb[2].mxu0  ;;  %v448_v28 = vpop.f32.mrb[2].mxu1 }
 0x1fb   :  { %v452_v30 = vadd.f32 %v3814_v26, %v377_v27  ;;  %v379_v33 = vpop.f32.mrb[3].mxu0  ;;  %v4290_v37 = vpop.f32.mrb[3].mxu1  ;;  %v466_v48 = vadd.f32 %v6142_v36, %v448_v28  ;;  %v3823_v28 = vld [vmem:[%s7391_s0 + $0x30] sm:$0xff] }
 0x1fc   :  { %v459_v39 = vadd.f32 %v3815_v31, %v379_v33  ;;  %v3824_v37 = vld [vmem:[%s7391_s0 + $0x38] sm:$0xff] }
 0x1fd   :  { %v3817_v38 = vmul.f32 -1.442695, %v452_v30 }
 0x1fe   :  { %v3818_v40 = vmul.f32 -1.442695, %v459_v39 }
 0x1ff   :  { %5691 = vpow2.f32 %v3817_v38 }
 0x200   :  { %5693 = vpow2.f32 %v3818_v40 }
 0x209   :  { %v5692_v42 = vpop.eup %5691 }
 0x20a   :  { %v456_v45 = vadd.f32 1.0, %v5692_v42  ;;  %v5694_v46 = vpop.eup %5693 }
 0x20b   :  { %v463_v47 = vadd.f32 1.0, %v5694_v46 }
 0x20c   :  { %5695 = vrcp.f32 %v456_v45 }
 0x20d   :  { %5697 = vrcp.f32 %v463_v47 }
 0x216   :  { %v5696_v49 = vpop.eup %5695 }
 0x217   :  { %v467_v54 = vmul.f32 %v5696_v49, %v466_v48  ;;  %v5698_v56 = vpop.eup %5697 }
 0x218   :  { %v470_v57 = vsub.f32 1.0, %v5698_v56  ;;  %v472_v1 = vmul.f32 %v5698_v56, %v6150_v63 }
 0x219   :  { %v468_v55 = vadd.f32 %v3816_v51, %v467_v54 }
 0x21b   :  { %5699 = vtanh.f32 %v468_v55  ;;  %v3825_v55 = vld [vmem:[%s7391_s0 + $0x40] sm:$0xff] }
 0x225   :  { %v5700_v58 = vpop.eup %5699 }
 0x226   :  { %v471_v0 = vmul.f32 %v5700_v58, %v470_v57 }
 0x228   :  { %v6233_v7 = vadd.f32 %v472_v1, %v471_v0 }
 0x22a   :  { %v475_v8 = vcombine.high %v6233_v7, %v6233_v7  ;;  %v482_v12 = vrot.slane %v6233_v7, %v6148_v60  ;;  %609 = vmatmul.mubr.f32.vlgmr.msra.gmra.mrb[4].mxu0 %v6233_v7  ;;  %4324 = vmatmul.mubr.f32.vlgmr.msra.gmra.mrb[4].mxu1 %v6233_v7 }
 0x22b   :  { %4952 = vmatpush1.bf16.msra.mxu0 %v5891_v9  ;;  %4983 = vmatpush3.bf16.msra.mxu1 %v5950_v29 }
 0x22c   :  { %v489_v13 = vrot.slane %v475_v8, %v6148_v60  ;;  %v490_v17 = vcombine.high %v482_v12, %v482_v12  ;;  %v498_v63 = vrot.slane %v482_v12, %v6148_v60  ;;  %3819 = vst.sshfl [vmem:[%s7393_s3 + $0x1] sm:$0x1 pattern:$0x73625140] %v482_v12  ;;  %4954 = vmatprep.subr.bf16.mxu0 %v5893_v10 }
 0x22d   :  { %4984 = vmatprep.subr.bf16.mxu1 %v5843_v3  ;;  %841 = vmatprep.mubr.f32.mxu0 %v5844_v4 }
 0x22e   :  { %4358 = vmatprep.mubr.msk.f32.mxu1 %vm5845_vm0, %v5844_v4  ;;  %v491_v18 = vcombine.high %v489_v13, %v489_v13  ;;  %v505_v19 = vrot.slane %v489_v13, %v6148_v60  ;;  %v512_v20 = vrot.slane %v490_v17, %v6148_v60  ;;  %v520_v22 = vcombine.high %v498_v63, %v498_v63 }
 0x22f   :  { %3820 = vst.sshfl [vmem:[%s7393_s3 + $0x11] sm:$0x1 pattern:$0x73625140] %v490_v17  ;;  %4956 = vmatpush1.bf16.msra.mxu0 %v5909_v15  ;;  %4986 = vmatpush3.bf16.msra.mxu1 %v5965_v34 }
 0x230   :  { %3821 = vst.sshfl [vmem:[%s7393_s3 + $0x41] sm:$0x1 pattern:$0x73625140] %v489_v13  ;;  %v519_v24 = vrot.slane %v491_v18, %v6148_v60  ;;  %v521_v25 = vcombine.high %v505_v19, %v505_v19  ;;  %v522_v26 = vcombine.high %v512_v20, %v512_v20  ;;  %534 = vst [vmem:[%s7393_s3 + $0x21] sm:$0x1] %v520_v22  ;;  %4958 = vmatprep.subr.bf16.mxu0 %v5912_v16 }
 0x231   :  { %3822 = vst.sshfl [vmem:[%s7393_s3 + $0x51] sm:$0x1 pattern:$0x73625140] %v491_v18  ;;  %4987 = vmatprep.subr.bf16.mxu1 %v5843_v3 }
 0x232   :  { %v523_v27 = vcombine.high %v519_v24, %v519_v24  ;;  %535 = vst [vmem:[%s7393_s3 + $0x31] sm:$0x1] %v522_v26  ;;  %538 = vst [vmem:[%s7393_s3 + $0x61] sm:$0x1] %v521_v25 }
 0x233   :  { %4960 = vmatpush1.bf16.msra.mxu0 %v5927_v21  ;;  %4989 = vmatpush3.bf16.msra.mxu1 %v5993_v43 }
 0x234   :  { %539 = vst [vmem:[%s7393_s3 + $0x71] sm:$0x1] %v523_v27  ;;  %4962 = vmatprep.subr.bf16.mxu0 %v5933_v23  ;;  %4990 = vmatprep.subr.bf16.mxu1 %v5843_v3 }
 0x237   :  { %4964 = vmatpush1.bf16.msra.mxu0 %v5959_v32  ;;  %4992 = vmatpush3.bf16.msra.mxu1 %v6021_v52 }
 0x238   :  { %4966 = vmatprep.subr.bf16.mxu0 %v5968_v35  ;;  %4993 = vmatprep.subr.bf16.mxu1 %v5843_v3 }
 0x23b   :  { %4968 = vmatpush1.bf16.msra.mxu0 %v5987_v41  ;;  %4995 = vmatpush3.bf16.msra.mxu1 %v6049_v61 }
 0x23c   :  { %4970 = vmatprep.subr.bf16.mxu0 %v5996_v44  ;;  %4996 = vmatprep.subr.bf16.mxu1 %v5843_v3 }
 0x23f   :  { %4972 = vmatpush1.bf16.msra.mxu0 %v6015_v50  ;;  %4998 = vmatpush3.bf16.msra.mxu1 %v6068_v6 }
 0x240   :  { %4974 = vmatprep.subr.bf16.mxu0 %v6024_v53  ;;  %4999 = vmatprep.subr.bf16.mxu1 %v5843_v3 }
 0x243   :  { %4976 = vmatpush1.bf16.msra.mxu0 %v6043_v59  ;;  %5001 = vmatpush3.bf16.msra.mxu1 %v6080_v11 }
 0x244   :  { %4978 = vmatprep.subr.bf16.mxu0 %v6052_v62  ;;  %5002 = vmatprep.subr.bf16.mxu1 %v5843_v3 }
 0x247   :  { %4980 = vmatpush1.bf16.msra.mxu0 %v6065_v2  ;;  %5004 = vmatpush3.bf16.msra.mxu1 %v6092_v14 }
 0x248   :  { %5006 = vmatprep.subr.bf16.mxu0 %v5878_v5  ;;  %5037 = vmatprep.subr.bf16.mxu1 %v5843_v3 }
 0x2fd   :  { %v610_v30 = vpop.f32.mrb[4].mxu0  ;;  %v681_v31 = vpop.f32.mrb[4].mxu1 }
 0x2fe   :  { %v685_v33 = vadd.f32 %v3823_v28, %v610_v30  ;;  %v612_v38 = vpop.f32.mrb[5].mxu0  ;;  %v4325_v39 = vpop.f32.mrb[5].mxu1  ;;  %v699_v51 = vadd.f32 %v6142_v36, %v681_v31  ;;  %v3832_v31 = vld [vmem:[%s7391_s0 + $0x48] sm:$0xff] }
 0x2ff   :  { %v692_v42 = vadd.f32 %v3824_v37, %v612_v38  ;;  %v3833_v39 = vld [vmem:[%s7391_s0 + $0x50] sm:$0xff] }
 0x300   :  { %v3826_v40 = vmul.f32 -1.442695, %v685_v33 }
 0x301   :  { %v3827_v45 = vmul.f32 -1.442695, %v692_v42 }
 0x302   :  { %5701 = vpow2.f32 %v3826_v40 }
 0x303   :  { %5703 = vpow2.f32 %v3827_v45 }
 0x30c   :  { %v5702_v46 = vpop.eup %5701 }
 0x30d   :  { %v689_v47 = vadd.f32 1.0, %v5702_v46  ;;  %v5704_v48 = vpop.eup %5703 }
 0x30e   :  { %v696_v49 = vadd.f32 1.0, %v5704_v48 }
 0x30f   :  { %5705 = vrcp.f32 %v689_v47 }
 0x310   :  { %5707 = vrcp.f32 %v696_v49 }
 0x319   :  { %v5706_v54 = vpop.eup %5705 }
 0x31a   :  { %v700_v56 = vmul.f32 %v5706_v54, %v699_v51  ;;  %v5708_v58 = vpop.eup %5707 }
 0x31b   :  { %v703_v0 = vsub.f32 1.0, %v5708_v58  ;;  %v705_v12 = vmul.f32 %v5708_v58, %v6233_v7 }
 0x31c   :  { %v701_v57 = vadd.f32 %v3825_v55, %v700_v56 }
 0x31e   :  { %5709 = vtanh.f32 %v701_v57  ;;  %v3834_v57 = vld [vmem:[%s7391_s0 + $0x58] sm:$0xff] }
 0x328   :  { %v5710_v1 = vpop.eup %5709 }
 0x329   :  { %v704_v8 = vmul.f32 %v5710_v1, %v703_v0 }
 0x32b   :  { %v6316_v13 = vadd.f32 %v705_v12, %v704_v8 }
 0x32d   :  { %v708_v17 = vcombine.high %v6316_v13, %v6316_v13  ;;  %v715_v63 = vrot.slane %v6316_v13, %v6148_v60  ;;  %842 = vmatmul.mubr.f32.vlgmr.msra.gmra.mrb[6].mxu0 %v6316_v13  ;;  %4359 = vmatmul.mubr.f32.vlgmr.msra.gmra.mrb[6].mxu1 %v6316_v13 }
 0x32e   :  { %5008 = vmatpush1.bf16.msra.mxu0 %v5891_v9  ;;  %5039 = vmatpush3.bf16.msra.mxu1 %v5950_v29 }
 0x32f   :  { %v722_v18 = vrot.slane %v708_v17, %v6148_v60  ;;  %v723_v19 = vcombine.high %v715_v63, %v715_v63  ;;  %v731_v7 = vrot.slane %v715_v63, %v6148_v60  ;;  %3828 = vst.sshfl [vmem:[%s7393_s3 + $0x2] sm:$0x1 pattern:$0x73625140] %v715_v63  ;;  %5010 = vmatprep.subr.bf16.mxu0 %v5893_v10 }
 0x330   :  { %5040 = vmatprep.subr.bf16.mxu1 %v5843_v3  ;;  %1074 = vmatprep.mubr.f32.mxu0 %v5844_v4 }
 0x331   :  { %4393 = vmatprep.mubr.msk.f32.mxu1 %vm5845_vm0, %v5844_v4  ;;  %v724_v20 = vcombine.high %v722_v18, %v722_v18  ;;  %v738_v22 = vrot.slane %v722_v18, %v6148_v60  ;;  %v745_v24 = vrot.slane %v723_v19, %v6148_v60  ;;  %v753_v25 = vcombine.high %v731_v7, %v731_v7 }
 0x332   :  { %3829 = vst.sshfl [vmem:[%s7393_s3 + $0x12] sm:$0x1 pattern:$0x73625140] %v723_v19  ;;  %5012 = vmatpush1.bf16.msra.mxu0 %v5909_v15  ;;  %5042 = vmatpush3.bf16.msra.mxu1 %v5965_v34 }
 0x333   :  { %3830 = vst.sshfl [vmem:[%s7393_s3 + $0x42] sm:$0x1 pattern:$0x73625140] %v722_v18  ;;  %v752_v26 = vrot.slane %v724_v20, %v6148_v60  ;;  %v754_v27 = vcombine.high %v738_v22, %v738_v22  ;;  %v755_v28 = vcombine.high %v745_v24, %v745_v24  ;;  %767 = vst [vmem:[%s7393_s3 + $0x22] sm:$0x1] %v753_v25  ;;  %5014 = vmatprep.subr.bf16.mxu0 %v5912_v16 }
 0x334   :  { %3831 = vst.sshfl [vmem:[%s7393_s3 + $0x52] sm:$0x1 pattern:$0x73625140] %v724_v20  ;;  %5043 = vmatprep.subr.bf16.mxu1 %v5843_v3 }
 0x335   :  { %v756_v30 = vcombine.high %v752_v26, %v752_v26  ;;  %768 = vst [vmem:[%s7393_s3 + $0x32] sm:$0x1] %v755_v28  ;;  %771 = vst [vmem:[%s7393_s3 + $0x62] sm:$0x1] %v754_v27 }
 0x336   :  { %5016 = vmatpush1.bf16.msra.mxu0 %v5927_v21  ;;  %5045 = vmatpush3.bf16.msra.mxu1 %v5993_v43 }
 0x337   :  { %772 = vst [vmem:[%s7393_s3 + $0x72] sm:$0x1] %v756_v30  ;;  %5018 = vmatprep.subr.bf16.mxu0 %v5933_v23  ;;  %5046 = vmatprep.subr.bf16.mxu1 %v5843_v3 }
 0x33a   :  { %5020 = vmatpush1.bf16.msra.mxu0 %v5959_v32  ;;  %5048 = vmatpush3.bf16.msra.mxu1 %v6021_v52 }
 0x33b   :  { %5022 = vmatprep.subr.bf16.mxu0 %v5968_v35  ;;  %5049 = vmatprep.subr.bf16.mxu1 %v5843_v3 }
 0x33e   :  { %5024 = vmatpush1.bf16.msra.mxu0 %v5987_v41  ;;  %5051 = vmatpush3.bf16.msra.mxu1 %v6049_v61 }
 0x33f   :  { %5026 = vmatprep.subr.bf16.mxu0 %v5996_v44  ;;  %5052 = vmatprep.subr.bf16.mxu1 %v5843_v3 }
 0x342   :  { %5028 = vmatpush1.bf16.msra.mxu0 %v6015_v50  ;;  %5054 = vmatpush3.bf16.msra.mxu1 %v6068_v6 }
 0x343   :  { %5030 = vmatprep.subr.bf16.mxu0 %v6024_v53  ;;  %5055 = vmatprep.subr.bf16.mxu1 %v5843_v3 }
 0x346   :  { %5032 = vmatpush1.bf16.msra.mxu0 %v6043_v59  ;;  %5057 = vmatpush3.bf16.msra.mxu1 %v6080_v11 }
 0x347   :  { %5034 = vmatprep.subr.bf16.mxu0 %v6052_v62  ;;  %5058 = vmatprep.subr.bf16.mxu1 %v5843_v3 }
 0x34a   :  { %5036 = vmatpush1.bf16.msra.mxu0 %v6065_v2  ;;  %5060 = vmatpush3.bf16.msra.mxu1 %v6092_v14 }
 0x34b   :  { %5062 = vmatprep.subr.bf16.mxu0 %v5878_v5  ;;  %5093 = vmatprep.subr.bf16.mxu1 %v5843_v3 }
 0x400   :  { %v843_v33 = vpop.f32.mrb[6].mxu0  ;;  %v914_v37 = vpop.f32.mrb[6].mxu1 }
 0x401   :  { %v918_v38 = vadd.f32 %v3832_v31, %v843_v33  ;;  %v845_v40 = vpop.f32.mrb[7].mxu0  ;;  %v4360_v42 = vpop.f32.mrb[7].mxu1  ;;  %v932_v55 = vadd.f32 %v6142_v36, %v914_v37  ;;  %v3841_v37 = vld [vmem:[%s7391_s0 + $0x60] sm:$0xff] }
 0x402   :  { %v925_v46 = vadd.f32 %v3833_v39, %v845_v40  ;;  %v3842_v42 = vld [vmem:[%s7391_s0 + $0x68] sm:$0xff] }
 0x403   :  { %v3835_v45 = vmul.f32 -1.442695, %v918_v38 }
 0x404   :  { %v3836_v47 = vmul.f32 -1.442695, %v925_v46 }
 0x405   :  { %5711 = vpow2.f32 %v3835_v45 }
 0x406   :  { %5713 = vpow2.f32 %v3836_v47 }
 0x40f   :  { %v5712_v48 = vpop.eup %5711 }
 0x410   :  { %v922_v49 = vadd.f32 1.0, %v5712_v48  ;;  %v5714_v51 = vpop.eup %5713 }
 0x411   :  { %v929_v54 = vadd.f32 1.0, %v5714_v51 }
 0x412   :  { %5715 = vrcp.f32 %v922_v49 }
 0x413   :  { %5717 = vrcp.f32 %v929_v54 }
 0x41c   :  { %v5716_v56 = vpop.eup %5715 }
 0x41d   :  { %v933_v58 = vmul.f32 %v5716_v56, %v932_v55  ;;  %v5718_v1 = vpop.eup %5717 }
 0x41e   :  { %v936_v8 = vsub.f32 1.0, %v5718_v1  ;;  %v938_v63 = vmul.f32 %v5718_v1, %v6316_v13 }
 0x41f   :  { %v934_v0 = vadd.f32 %v3834_v57, %v933_v58 }
 0x421   :  { %5719 = vtanh.f32 %v934_v0  ;;  %v3843_v0 = vld [vmem:[%s7391_s0 + $0x70] sm:$0xff] }
 0x42b   :  { %v5720_v12 = vpop.eup %5719 }
 0x42c   :  { %v937_v17 = vmul.f32 %v5720_v12, %v936_v8 }
 0x42e   :  { %v6399_v18 = vadd.f32 %v938_v63, %v937_v17 }
 0x430   :  { %v941_v19 = vcombine.high %v6399_v18, %v6399_v18  ;;  %v948_v7 = vrot.slane %v6399_v18, %v6148_v60  ;;  %1075 = vmatmul.mubr.f32.vlgmr.msra.gmra.mrb[8].mxu0 %v6399_v18  ;;  %4394 = vmatmul.mubr.f32.vlgmr.msra.gmra.mrb[8].mxu1 %v6399_v18 }
 0x431   :  { %5064 = vmatpush1.bf16.msra.mxu0 %v5891_v9  ;;  %5095 = vmatpush3.bf16.msra.mxu1 %v5950_v29 }
 0x432   :  { %v955_v20 = vrot.slane %v941_v19, %v6148_v60  ;;  %v956_v22 = vcombine.high %v948_v7, %v948_v7  ;;  %v964_v13 = vrot.slane %v948_v7, %v6148_v60  ;;  %3837 = vst.sshfl [vmem:[%s7393_s3 + $0x3] sm:$0x1 pattern:$0x73625140] %v948_v7  ;;  %5066 = vmatprep.subr.bf16.mxu0 %v5893_v10 }
 0x433   :  { %5096 = vmatprep.subr.bf16.mxu1 %v5843_v3  ;;  %1307 = vmatprep.mubr.f32.mxu0 %v5844_v4 }
 0x434   :  { %4428 = vmatprep.mubr.msk.f32.mxu1 %vm5845_vm0, %v5844_v4  ;;  %v957_v24 = vcombine.high %v955_v20, %v955_v20  ;;  %v971_v25 = vrot.slane %v955_v20, %v6148_v60  ;;  %v978_v26 = vrot.slane %v956_v22, %v6148_v60  ;;  %v986_v27 = vcombine.high %v964_v13, %v964_v13 }
 0x435   :  { %3838 = vst.sshfl [vmem:[%s7393_s3 + $0x13] sm:$0x1 pattern:$0x73625140] %v956_v22  ;;  %5068 = vmatpush1.bf16.msra.mxu0 %v5909_v15  ;;  %5098 = vmatpush3.bf16.msra.mxu1 %v5965_v34 }
 0x436   :  { %3839 = vst.sshfl [vmem:[%s7393_s3 + $0x43] sm:$0x1 pattern:$0x73625140] %v955_v20  ;;  %v985_v28 = vrot.slane %v957_v24, %v6148_v60  ;;  %v987_v30 = vcombine.high %v971_v25, %v971_v25  ;;  %v988_v31 = vcombine.high %v978_v26, %v978_v26  ;;  %1000 = vst [vmem:[%s7393_s3 + $0x23] sm:$0x1] %v986_v27  ;;  %5070 = vmatprep.subr.bf16.mxu0 %v5912_v16 }
 0x437   :  { %3840 = vst.sshfl [vmem:[%s7393_s3 + $0x53] sm:$0x1 pattern:$0x73625140] %v957_v24  ;;  %5099 = vmatprep.subr.bf16.mxu1 %v5843_v3 }
 0x438   :  { %v989_v33 = vcombine.high %v985_v28, %v985_v28  ;;  %1001 = vst [vmem:[%s7393_s3 + $0x33] sm:$0x1] %v988_v31  ;;  %1004 = vst [vmem:[%s7393_s3 + $0x63] sm:$0x1] %v987_v30 }
 0x439   :  { %5072 = vmatpush1.bf16.msra.mxu0 %v5927_v21  ;;  %5101 = vmatpush3.bf16.msra.mxu1 %v5993_v43 }
 0x43a   :  { %1005 = vst [vmem:[%s7393_s3 + $0x73] sm:$0x1] %v989_v33  ;;  %5074 = vmatprep.subr.bf16.mxu0 %v5933_v23  ;;  %5102 = vmatprep.subr.bf16.mxu1 %v5843_v3 }
 0x43d   :  { %5076 = vmatpush1.bf16.msra.mxu0 %v5959_v32  ;;  %5104 = vmatpush3.bf16.msra.mxu1 %v6021_v52 }
 0x43e   :  { %5078 = vmatprep.subr.bf16.mxu0 %v5968_v35  ;;  %5105 = vmatprep.subr.bf16.mxu1 %v5843_v3 }
 0x441   :  { %5080 = vmatpush1.bf16.msra.mxu0 %v5987_v41  ;;  %5107 = vmatpush3.bf16.msra.mxu1 %v6049_v61 }
 0x442   :  { %5082 = vmatprep.subr.bf16.mxu0 %v5996_v44  ;;  %5108 = vmatprep.subr.bf16.mxu1 %v5843_v3 }
 0x445   :  { %5084 = vmatpush1.bf16.msra.mxu0 %v6015_v50  ;;  %5110 = vmatpush3.bf16.msra.mxu1 %v6068_v6 }
 0x446   :  { %5086 = vmatprep.subr.bf16.mxu0 %v6024_v53  ;;  %5111 = vmatprep.subr.bf16.mxu1 %v5843_v3 }
 0x449   :  { %5088 = vmatpush1.bf16.msra.mxu0 %v6043_v59  ;;  %5113 = vmatpush3.bf16.msra.mxu1 %v6080_v11 }
 0x44a   :  { %5090 = vmatprep.subr.bf16.mxu0 %v6052_v62  ;;  %5114 = vmatprep.subr.bf16.mxu1 %v5843_v3 }
 0x44d   :  { %5092 = vmatpush1.bf16.msra.mxu0 %v6065_v2  ;;  %5116 = vmatpush3.bf16.msra.mxu1 %v6092_v14 }
 0x44e   :  { %5118 = vmatprep.subr.bf16.mxu0 %v5878_v5  ;;  %5149 = vmatprep.subr.bf16.mxu1 %v5843_v3 }
 0x503   :  { %v1076_v38 = vpop.f32.mrb[8].mxu0  ;;  %v1147_v39 = vpop.f32.mrb[8].mxu1 }
 0x504   :  { %v1151_v40 = vadd.f32 %v3841_v37, %v1076_v38  ;;  %v1078_v45 = vpop.f32.mrb[9].mxu0  ;;  %v4395_v46 = vpop.f32.mrb[9].mxu1  ;;  %v1165_v57 = vadd.f32 %v6142_v36, %v1147_v39  ;;  %v3850_v39 = vld [vmem:[%s7391_s0 + $0x78] sm:$0xff] }
 0x505   :  { %v1158_v48 = vadd.f32 %v3842_v42, %v1078_v45  ;;  %v3851_v46 = vld [vmem:[%s7391_s0 + $0x80] sm:$0xff] }
 0x506   :  { %v3844_v47 = vmul.f32 -1.442695, %v1151_v40 }
 0x507   :  { %v3845_v49 = vmul.f32 -1.442695, %v1158_v48 }
 0x508   :  { %5721 = vpow2.f32 %v3844_v47 }
 0x509   :  { %5723 = vpow2.f32 %v3845_v49 }
 0x512   :  { %v5722_v51 = vpop.eup %5721 }
 0x513   :  { %v1155_v54 = vadd.f32 1.0, %v5722_v51  ;;  %v5724_v55 = vpop.eup %5723 }
 0x514   :  { %v1162_v56 = vadd.f32 1.0, %v5724_v55 }
 0x515   :  { %5725 = vrcp.f32 %v1155_v54 }
 0x516   :  { %5727 = vrcp.f32 %v1162_v56 }
 0x51f   :  { %v5726_v58 = vpop.eup %5725 }
 0x520   :  { %v1166_v1 = vmul.f32 %v5726_v58, %v1165_v57  ;;  %v5728_v12 = vpop.eup %5727 }
 0x521   :  { %v1169_v17 = vsub.f32 1.0, %v5728_v12  ;;  %v1171_v7 = vmul.f32 %v5728_v12, %v6399_v18 }
 0x522   :  { %v1167_v8 = vadd.f32 %v3843_v0, %v1166_v1 }
 0x524   :  { %5729 = vtanh.f32 %v1167_v8  ;;  %v3852_v8 = vld [vmem:[%s7391_s0 + $0x88] sm:$0xff] }
 0x52e   :  { %v5730_v63 = vpop.eup %5729 }
 0x52f   :  { %v1170_v19 = vmul.f32 %v5730_v63, %v1169_v17 }
 0x531   :  { %v6482_v20 = vadd.f32 %v1171_v7, %v1170_v19 }
 0x533   :  { %v1174_v22 = vcombine.high %v6482_v20, %v6482_v20  ;;  %v1181_v13 = vrot.slane %v6482_v20, %v6148_v60  ;;  %1308 = vmatmul.mubr.f32.vlgmr.msra.gmra.mrb[10].mxu0 %v6482_v20  ;;  %4429 = vmatmul.mubr.f32.vlgmr.msra.gmra.mrb[10].mxu1 %v6482_v20 }
 0x534   :  { %5120 = vmatpush1.bf16.msra.mxu0 %v5891_v9  ;;  %5151 = vmatpush3.bf16.msra.mxu1 %v5950_v29 }
 0x535   :  { %v1188_v24 = vrot.slane %v1174_v22, %v6148_v60  ;;  %v1189_v25 = vcombine.high %v1181_v13, %v1181_v13  ;;  %v1197_v18 = vrot.slane %v1181_v13, %v6148_v60  ;;  %3846 = vst.sshfl [vmem:[%s7393_s3 + $0x4] sm:$0x1 pattern:$0x73625140] %v1181_v13  ;;  %5122 = vmatprep.subr.bf16.mxu0 %v5893_v10 }
 0x536   :  { %5152 = vmatprep.subr.bf16.mxu1 %v5843_v3  ;;  %1540 = vmatprep.mubr.f32.mxu0 %v5844_v4 }
 0x537   :  { %4463 = vmatprep.mubr.msk.f32.mxu1 %vm5845_vm0, %v5844_v4  ;;  %v1190_v26 = vcombine.high %v1188_v24, %v1188_v24  ;;  %v1204_v27 = vrot.slane %v1188_v24, %v6148_v60  ;;  %v1211_v28 = vrot.slane %v1189_v25, %v6148_v60  ;;  %v1219_v30 = vcombine.high %v1197_v18, %v1197_v18 }
 0x538   :  { %3847 = vst.sshfl [vmem:[%s7393_s3 + $0x14] sm:$0x1 pattern:$0x73625140] %v1189_v25  ;;  %5124 = vmatpush1.bf16.msra.mxu0 %v5909_v15  ;;  %5154 = vmatpush3.bf16.msra.mxu1 %v5965_v34 }
 0x539   :  { %3848 = vst.sshfl [vmem:[%s7393_s3 + $0x44] sm:$0x1 pattern:$0x73625140] %v1188_v24  ;;  %v1218_v31 = vrot.slane %v1190_v26, %v6148_v60  ;;  %v1220_v33 = vcombine.high %v1204_v27, %v1204_v27  ;;  %v1221_v37 = vcombine.high %v1211_v28, %v1211_v28  ;;  %1233 = vst [vmem:[%s7393_s3 + $0x24] sm:$0x1] %v1219_v30  ;;  %5126 = vmatprep.subr.bf16.mxu0 %v5912_v16 }
 0x53a   :  { %3849 = vst.sshfl [vmem:[%s7393_s3 + $0x54] sm:$0x1 pattern:$0x73625140] %v1190_v26  ;;  %5155 = vmatprep.subr.bf16.mxu1 %v5843_v3 }
 0x53b   :  { %v1222_v38 = vcombine.high %v1218_v31, %v1218_v31  ;;  %1234 = vst [vmem:[%s7393_s3 + $0x34] sm:$0x1] %v1221_v37  ;;  %1237 = vst [vmem:[%s7393_s3 + $0x64] sm:$0x1] %v1220_v33 }
 0x53c   :  { %5128 = vmatpush1.bf16.msra.mxu0 %v5927_v21  ;;  %5157 = vmatpush3.bf16.msra.mxu1 %v5993_v43 }
 0x53d   :  { %1238 = vst [vmem:[%s7393_s3 + $0x74] sm:$0x1] %v1222_v38  ;;  %5130 = vmatprep.subr.bf16.mxu0 %v5933_v23  ;;  %5158 = vmatprep.subr.bf16.mxu1 %v5843_v3 }
 0x540   :  { %5132 = vmatpush1.bf16.msra.mxu0 %v5959_v32  ;;  %5160 = vmatpush3.bf16.msra.mxu1 %v6021_v52 }
 0x541   :  { %5134 = vmatprep.subr.bf16.mxu0 %v5968_v35  ;;  %5161 = vmatprep.subr.bf16.mxu1 %v5843_v3 }
 0x544   :  { %5136 = vmatpush1.bf16.msra.mxu0 %v5987_v41  ;;  %5163 = vmatpush3.bf16.msra.mxu1 %v6049_v61 }
 0x545   :  { %5138 = vmatprep.subr.bf16.mxu0 %v5996_v44  ;;  %5164 = vmatprep.subr.bf16.mxu1 %v5843_v3 }
 0x548   :  { %5140 = vmatpush1.bf16.msra.mxu0 %v6015_v50  ;;  %5166 = vmatpush3.bf16.msra.mxu1 %v6068_v6 }
 0x549   :  { %5142 = vmatprep.subr.bf16.mxu0 %v6024_v53  ;;  %5167 = vmatprep.subr.bf16.mxu1 %v5843_v3 }
 0x54c   :  { %5144 = vmatpush1.bf16.msra.mxu0 %v6043_v59  ;;  %5169 = vmatpush3.bf16.msra.mxu1 %v6080_v11 }
 0x54d   :  { %5146 = vmatprep.subr.bf16.mxu0 %v6052_v62  ;;  %5170 = vmatprep.subr.bf16.mxu1 %v5843_v3 }
 0x550   :  { %5148 = vmatpush1.bf16.msra.mxu0 %v6065_v2  ;;  %5172 = vmatpush3.bf16.msra.mxu1 %v6092_v14 }
 0x551   :  { %5174 = vmatprep.subr.bf16.mxu0 %v5878_v5  ;;  %5205 = vmatprep.subr.bf16.mxu1 %v5843_v3 }
 0x606   :  { %v1309_v40 = vpop.f32.mrb[10].mxu0  ;;  %v1380_v42 = vpop.f32.mrb[10].mxu1 }
 0x607   :  { %v1384_v45 = vadd.f32 %v3850_v39, %v1309_v40  ;;  %v1311_v47 = vpop.f32.mrb[11].mxu0  ;;  %v4430_v48 = vpop.f32.mrb[11].mxu1  ;;  %v1398_v0 = vadd.f32 %v6142_v36, %v1380_v42  ;;  %v3859_v40 = vld [vmem:[%s7391_s0 + $0x90] sm:$0xff] }
 0x608   :  { %v1391_v51 = vadd.f32 %v3851_v46, %v1311_v47  ;;  %v3860_v47 = vld [vmem:[%s7391_s0 + $0x98] sm:$0xff] }
 0x609   :  { %v3853_v49 = vmul.f32 -1.442695, %v1384_v45 }
 0x60a   :  { %v3854_v54 = vmul.f32 -1.442695, %v1391_v51 }
 0x60b   :  { %5731 = vpow2.f32 %v3853_v49 }
 0x60c   :  { %5733 = vpow2.f32 %v3854_v54 }
 0x615   :  { %v5732_v55 = vpop.eup %5731 }
 0x616   :  { %v1388_v56 = vadd.f32 1.0, %v5732_v55  ;;  %v5734_v57 = vpop.eup %5733 }
 0x617   :  { %v1395_v58 = vadd.f32 1.0, %v5734_v57 }
 0x618   :  { %5735 = vrcp.f32 %v1388_v56 }
 0x619   :  { %5737 = vrcp.f32 %v1395_v58 }
 0x622   :  { %v5736_v1 = vpop.eup %5735 }
 0x623   :  { %v1399_v12 = vmul.f32 %v5736_v1, %v1398_v0  ;;  %v5738_v63 = vpop.eup %5737  ;;  %v6646_v1 = vld [vmem:[%s7392_s2] ss:$0 sm:$0xff] }
 0x624   :  { %v1402_v19 = vsub.f32 1.0, %v5738_v63  ;;  %v1404_v13 = vmul.f32 %v5738_v63, %v6482_v20 }
 0x625   :  { %v1400_v17 = vadd.f32 %v3852_v8, %v1399_v12 }
 0x627   :  { %5739 = vtanh.f32 %v1400_v17  ;;  %v3861_v17 = vld [vmem:[%s7391_s0 + $0xa0] sm:$0xff] }
 0x631   :  { %v5740_v7 = vpop.eup %5739 }
 0x632   :  { %v1403_v22 = vmul.f32 %v5740_v7, %v1402_v19 }
 0x634   :  { %v6565_v24 = vadd.f32 %v1404_v13, %v1403_v22 }
 0x636   :  { %v1407_v36 = vcombine.high %v6565_v24, %v6565_v24  ;;  %v1414_v25 = vrot.slane %v6565_v24, %v6148_v60  ;;  %1541 = vmatmul.mubr.f32.vlgmr.msra.gmra.mrb[12].mxu0 %v6565_v24  ;;  %4464 = vmatmul.mubr.f32.vlgmr.msra.gmra.mrb[12].mxu1 %v6565_v24 }
 0x637   :  { %5176 = vmatpush1.bf16.msra.mxu0 %v5891_v9  ;;  %5207 = vmatpush3.bf16.msra.mxu1 %v5950_v29 }
 0x638   :  { %v1421_v18 = vrot.slane %v1407_v36, %v6148_v60  ;;  %v1422_v26 = vcombine.high %v1414_v25, %v1414_v25  ;;  %v1430_v20 = vrot.slane %v1414_v25, %v6148_v60  ;;  %3855 = vst.sshfl [vmem:[%s7393_s3 + $0x5] sm:$0x1 pattern:$0x73625140] %v1414_v25  ;;  %5178 = vmatprep.subr.bf16.mxu0 %v5893_v10 }
 0x639   :  { %5208 = vmatprep.subr.bf16.mxu1 %v5843_v3  ;;  %1773 = vmatprep.mubr.f32.mxu0 %v5844_v4 }
 0x63a   :  { %4498 = vmatprep.mubr.msk.f32.mxu1 %vm5845_vm0, %v5844_v4  ;;  %v1423_v27 = vcombine.high %v1421_v18, %v1421_v18  ;;  %v1437_v28 = vrot.slane %v1421_v18, %v6148_v60  ;;  %v1444_v30 = vrot.slane %v1422_v26, %v6148_v60  ;;  %v1452_v31 = vcombine.high %v1430_v20, %v1430_v20 }
 0x63b   :  { %3856 = vst.sshfl [vmem:[%s7393_s3 + $0x15] sm:$0x1 pattern:$0x73625140] %v1422_v26  ;;  %5180 = vmatpush1.bf16.msra.mxu0 %v5909_v15  ;;  %5210 = vmatpush3.bf16.msra.mxu1 %v5965_v34 }
 0x63c   :  { %3857 = vst.sshfl [vmem:[%s7393_s3 + $0x45] sm:$0x1 pattern:$0x73625140] %v1421_v18  ;;  %v1451_v33 = vrot.slane %v1423_v27, %v6148_v60  ;;  %v1453_v37 = vcombine.high %v1437_v28, %v1437_v28  ;;  %v1454_v38 = vcombine.high %v1444_v30, %v1444_v30  ;;  %1466 = vst [vmem:[%s7393_s3 + $0x25] sm:$0x1] %v1452_v31  ;;  %5182 = vmatprep.subr.bf16.mxu0 %v5912_v16 }
 0x63d   :  { %3858 = vst.sshfl [vmem:[%s7393_s3 + $0x55] sm:$0x1 pattern:$0x73625140] %v1423_v27  ;;  %5211 = vmatprep.subr.bf16.mxu1 %v5843_v3 }
 0x63e   :  { %v1455_v39 = vcombine.high %v1451_v33, %v1451_v33  ;;  %1467 = vst [vmem:[%s7393_s3 + $0x35] sm:$0x1] %v1454_v38  ;;  %1470 = vst [vmem:[%s7393_s3 + $0x65] sm:$0x1] %v1453_v37 }
 0x63f   :  { %5184 = vmatpush1.bf16.msra.mxu0 %v5927_v21  ;;  %5213 = vmatpush3.bf16.msra.mxu1 %v5993_v43 }
 0x640   :  { %1471 = vst [vmem:[%s7393_s3 + $0x75] sm:$0x1] %v1455_v39  ;;  %5186 = vmatprep.subr.bf16.mxu0 %v5933_v23  ;;  %5214 = vmatprep.subr.bf16.mxu1 %v5843_v3 }
 0x643   :  { %5188 = vmatpush1.bf16.msra.mxu0 %v5959_v32  ;;  %5216 = vmatpush3.bf16.msra.mxu1 %v6021_v52 }
 0x644   :  { %5190 = vmatprep.subr.bf16.mxu0 %v5968_v35  ;;  %5217 = vmatprep.subr.bf16.mxu1 %v5843_v3 }
 0x647   :  { %5192 = vmatpush1.bf16.msra.mxu0 %v5987_v41  ;;  %5219 = vmatpush3.bf16.msra.mxu1 %v6049_v61 }
 0x648   :  { %5194 = vmatprep.subr.bf16.mxu0 %v5996_v44  ;;  %5220 = vmatprep.subr.bf16.mxu1 %v5843_v3 }
 0x64b   :  { %5196 = vmatpush1.bf16.msra.mxu0 %v6015_v50  ;;  %5222 = vmatpush3.bf16.msra.mxu1 %v6068_v6 }
 0x64c   :  { %5198 = vmatprep.subr.bf16.mxu0 %v6024_v53  ;;  %5223 = vmatprep.subr.bf16.mxu1 %v5843_v3 }
 0x64f   :  { %5200 = vmatpush1.bf16.msra.mxu0 %v6043_v59  ;;  %5225 = vmatpush3.bf16.msra.mxu1 %v6080_v11 }
 0x650   :  { %5202 = vmatprep.subr.bf16.mxu0 %v6052_v62  ;;  %5226 = vmatprep.subr.bf16.mxu1 %v5843_v3 }
 0x653   :  { %5204 = vmatpush1.bf16.msra.mxu0 %v6065_v2  ;;  %5228 = vmatpush3.bf16.msra.mxu1 %v6092_v14 }
 0x654   :  { %5230 = vmatprep.subr.bf16.mxu0 %v5878_v5  ;;  %5261 = vmatprep.subr.bf16.mxu1 %v5843_v3 }
 0x709   :  { %v1542_v42 = vpop.f32.mrb[12].mxu0  ;;  %v1613_v45 = vpop.f32.mrb[12].mxu1 }
 0x70a   :  { %v1617_v46 = vadd.f32 %v3859_v40, %v1542_v42  ;;  %v1544_v48 = vpop.f32.mrb[13].mxu0  ;;  %v4465_v49 = vpop.f32.mrb[13].mxu1  ;;  %v1631_v8 = vadd.f32 %v6646_v1, %v1613_v45  ;;  %v3868_v45 = vld [vmem:[%s7391_s0 + $0xa8] sm:$0xff] }
 0x70b   :  { %v1624_v54 = vadd.f32 %v3860_v47, %v1544_v48  ;;  %v3869_v49 = vld [vmem:[%s7391_s0 + $0xb0] sm:$0xff] }
 0x70c   :  { %v3862_v51 = vmul.f32 -1.442695, %v1617_v46 }
 0x70d   :  { %v3863_v55 = vmul.f32 -1.442695, %v1624_v54 }
 0x70e   :  { %5741 = vpow2.f32 %v3862_v51 }
 0x70f   :  { %5743 = vpow2.f32 %v3863_v55 }
 0x718   :  { %v5742_v56 = vpop.eup %5741 }
 0x719   :  { %v1621_v57 = vadd.f32 1.0, %v5742_v56  ;;  %v5744_v58 = vpop.eup %5743 }
 0x71a   :  { %v1628_v0 = vadd.f32 1.0, %v5744_v58 }
 0x71b   :  { %5745 = vrcp.f32 %v1621_v57 }
 0x71c   :  { %5747 = vrcp.f32 %v1628_v0 }
 0x725   :  { %v5746_v12 = vpop.eup %5745 }
 0x726   :  { %v1632_v63 = vmul.f32 %v5746_v12, %v1631_v8  ;;  %v5748_v7 = vpop.eup %5747 }
 0x727   :  { %v1635_v22 = vsub.f32 1.0, %v5748_v7  ;;  %v1637_v25 = vmul.f32 %v5748_v7, %v6565_v24 }
 0x728   :  { %v1633_v19 = vadd.f32 %v3861_v17, %v1632_v63 }
 0x72a   :  { %5749 = vtanh.f32 %v1633_v19  ;;  %v3870_v19 = vld [vmem:[%s7391_s0 + $0xb8] sm:$0xff] }
 0x734   :  { %v5750_v13 = vpop.eup %5749 }
 0x735   :  { %v1636_v36 = vmul.f32 %v5750_v13, %v1635_v22 }
 0x737   :  { %v6653_v18 = vadd.f32 %v1637_v25, %v1636_v36 }
 0x739   :  { %v1640_v26 = vcombine.high %v6653_v18, %v6653_v18  ;;  %v1647_v20 = vrot.slane %v6653_v18, %v6148_v60  ;;  %1774 = vmatmul.mubr.f32.vlgmr.msra.gmra.mrb[14].mxu0 %v6653_v18  ;;  %4499 = vmatmul.mubr.f32.vlgmr.msra.gmra.mrb[14].mxu1 %v6653_v18 }
 0x73a   :  { %5232 = vmatpush1.bf16.msra.mxu0 %v5891_v9  ;;  %5263 = vmatpush3.bf16.msra.mxu1 %v5950_v29 }
 0x73b   :  { %v1654_v27 = vrot.slane %v1640_v26, %v6148_v60  ;;  %v1655_v28 = vcombine.high %v1647_v20, %v1647_v20  ;;  %v1663_v24 = vrot.slane %v1647_v20, %v6148_v60  ;;  %3864 = vst.sshfl [vmem:[%s7393_s3 + $0x6] sm:$0x1 pattern:$0x73625140] %v1647_v20  ;;  %5234 = vmatprep.subr.bf16.mxu0 %v5893_v10 }
 0x73c   :  { %5264 = vmatprep.subr.bf16.mxu1 %v5843_v3  ;;  %2006 = vmatprep.mubr.f32.mxu0 %v5844_v4 }
 0x73d   :  { %4533 = vmatprep.mubr.msk.f32.mxu1 %vm5845_vm0, %v5844_v4  ;;  %v1656_v30 = vcombine.high %v1654_v27, %v1654_v27  ;;  %v1670_v31 = vrot.slane %v1654_v27, %v6148_v60  ;;  %v1677_v33 = vrot.slane %v1655_v28, %v6148_v60  ;;  %v1685_v37 = vcombine.high %v1663_v24, %v1663_v24 }
 0x73e   :  { %3865 = vst.sshfl [vmem:[%s7393_s3 + $0x16] sm:$0x1 pattern:$0x73625140] %v1655_v28  ;;  %5236 = vmatpush1.bf16.msra.mxu0 %v5909_v15  ;;  %5266 = vmatpush3.bf16.msra.mxu1 %v5965_v34 }
 0x73f   :  { %3866 = vst.sshfl [vmem:[%s7393_s3 + $0x46] sm:$0x1 pattern:$0x73625140] %v1654_v27  ;;  %v1684_v38 = vrot.slane %v1656_v30, %v6148_v60  ;;  %v1686_v39 = vcombine.high %v1670_v31, %v1670_v31  ;;  %v1687_v40 = vcombine.high %v1677_v33, %v1677_v33  ;;  %1699 = vst [vmem:[%s7393_s3 + $0x26] sm:$0x1] %v1685_v37  ;;  %5238 = vmatprep.subr.bf16.mxu0 %v5912_v16 }
 0x740   :  { %3867 = vst.sshfl [vmem:[%s7393_s3 + $0x56] sm:$0x1 pattern:$0x73625140] %v1656_v30  ;;  %5267 = vmatprep.subr.bf16.mxu1 %v5843_v3 }
 0x741   :  { %v1688_v42 = vcombine.high %v1684_v38, %v1684_v38  ;;  %1700 = vst [vmem:[%s7393_s3 + $0x36] sm:$0x1] %v1687_v40  ;;  %1703 = vst [vmem:[%s7393_s3 + $0x66] sm:$0x1] %v1686_v39 }
 0x742   :  { %5240 = vmatpush1.bf16.msra.mxu0 %v5927_v21  ;;  %5269 = vmatpush3.bf16.msra.mxu1 %v5993_v43 }
 0x743   :  { %1704 = vst [vmem:[%s7393_s3 + $0x76] sm:$0x1] %v1688_v42  ;;  %5242 = vmatprep.subr.bf16.mxu0 %v5933_v23  ;;  %5270 = vmatprep.subr.bf16.mxu1 %v5843_v3 }
 0x746   :  { %5244 = vmatpush1.bf16.msra.mxu0 %v5959_v32  ;;  %5272 = vmatpush3.bf16.msra.mxu1 %v6021_v52 }
 0x747   :  { %5246 = vmatprep.subr.bf16.mxu0 %v5968_v35  ;;  %5273 = vmatprep.subr.bf16.mxu1 %v5843_v3 }
 0x74a   :  { %5248 = vmatpush1.bf16.msra.mxu0 %v5987_v41  ;;  %5275 = vmatpush3.bf16.msra.mxu1 %v6049_v61 }
 0x74b   :  { %5250 = vmatprep.subr.bf16.mxu0 %v5996_v44  ;;  %5276 = vmatprep.subr.bf16.mxu1 %v5843_v3 }
 0x74e   :  { %5252 = vmatpush1.bf16.msra.mxu0 %v6015_v50  ;;  %5278 = vmatpush3.bf16.msra.mxu1 %v6068_v6 }
 0x74f   :  { %5254 = vmatprep.subr.bf16.mxu0 %v6024_v53  ;;  %5279 = vmatprep.subr.bf16.mxu1 %v5843_v3 }
 0x752   :  { %5256 = vmatpush1.bf16.msra.mxu0 %v6043_v59  ;;  %5281 = vmatpush3.bf16.msra.mxu1 %v6080_v11 }
 0x753   :  { %5258 = vmatprep.subr.bf16.mxu0 %v6052_v62  ;;  %5282 = vmatprep.subr.bf16.mxu1 %v5843_v3 }
 0x756   :  { %5260 = vmatpush1.bf16.msra.mxu0 %v6065_v2  ;;  %5284 = vmatpush3.bf16.msra.mxu1 %v6092_v14 }
 0x757   :  { %5286 = vmatprep.subr.bf16.mxu0 %v5878_v5  ;;  %5317 = vmatprep.subr.bf16.mxu1 %v5843_v3 }
 0x80c   :  { %v1775_v46 = vpop.f32.mrb[14].mxu0  ;;  %v1846_v47 = vpop.f32.mrb[14].mxu1 }
 0x80d   :  { %v1850_v48 = vadd.f32 %v3868_v45, %v1775_v46  ;;  %v1777_v51 = vpop.f32.mrb[15].mxu0  ;;  %v4500_v54 = vpop.f32.mrb[15].mxu1  ;;  %v1864_v17 = vadd.f32 %v6646_v1, %v1846_v47  ;;  %v3877_v47 = vld [vmem:[%s7391_s0 + $0xc0] sm:$0xff] }
 0x80e   :  { %v1857_v56 = vadd.f32 %v3869_v49, %v1777_v51  ;;  %v3878_v54 = vld [vmem:[%s7391_s0 + $0xc8] sm:$0xff] }
 0x80f   :  { %v3871_v55 = vmul.f32 -1.442695, %v1850_v48 }
 0x810   :  { %v3872_v57 = vmul.f32 -1.442695, %v1857_v56 }
 0x811   :  { %5751 = vpow2.f32 %v3871_v55 }
 0x812   :  { %5753 = vpow2.f32 %v3872_v57 }
 0x81b   :  { %v5752_v58 = vpop.eup %5751 }
 0x81c   :  { %v1854_v0 = vadd.f32 1.0, %v5752_v58  ;;  %v5754_v8 = vpop.eup %5753 }
 0x81d   :  { %v1861_v12 = vadd.f32 1.0, %v5754_v8 }
 0x81e   :  { %5755 = vrcp.f32 %v1854_v0 }
 0x81f   :  { %5757 = vrcp.f32 %v1861_v12 }
 0x828   :  { %v5756_v63 = vpop.eup %5755 }
 0x829   :  { %v1865_v7 = vmul.f32 %v5756_v63, %v1864_v17  ;;  %v5758_v13 = vpop.eup %5757 }
 0x82a   :  { %v1868_v36 = vsub.f32 1.0, %v5758_v13  ;;  %v1870_v20 = vmul.f32 %v5758_v13, %v6653_v18 }
 0x82b   :  { %v1866_v22 = vadd.f32 %v3870_v19, %v1865_v7 }
 0x82d   :  { %5759 = vtanh.f32 %v1866_v22  ;;  %v3879_v22 = vld [vmem:[%s7391_s0 + $0xd0] sm:$0xff] }
 0x837   :  { %v5760_v25 = vpop.eup %5759 }
 0x838   :  { %v1869_v26 = vmul.f32 %v5760_v25, %v1868_v36 }
 0x83a   :  { %v6736_v27 = vadd.f32 %v1870_v20, %v1869_v26 }
 0x83c   :  { %v1873_v28 = vcombine.high %v6736_v27, %v6736_v27  ;;  %v1880_v24 = vrot.slane %v6736_v27, %v6148_v60  ;;  %2007 = vmatmul.mubr.f32.vlgmr.msra.gmra.mrb[16].mxu0 %v6736_v27  ;;  %4534 = vmatmul.mubr.f32.vlgmr.msra.gmra.mrb[16].mxu1 %v6736_v27 }
 0x83d   :  { %5288 = vmatpush1.bf16.msra.mxu0 %v5891_v9  ;;  %5319 = vmatpush3.bf16.msra.mxu1 %v5950_v29 }
 0x83e   :  { %v1887_v30 = vrot.slane %v1873_v28, %v6148_v60  ;;  %v1888_v31 = vcombine.high %v1880_v24, %v1880_v24  ;;  %v1896_v18 = vrot.slane %v1880_v24, %v6148_v60  ;;  %3873 = vst.sshfl [vmem:[%s7393_s3 + $0x7] sm:$0x1 pattern:$0x73625140] %v1880_v24  ;;  %5290 = vmatprep.subr.bf16.mxu0 %v5893_v10 }
 0x83f   :  { %5320 = vmatprep.subr.bf16.mxu1 %v5843_v3  ;;  %2239 = vmatprep.mubr.f32.mxu0 %v5844_v4 }
 0x840   :  { %4568 = vmatprep.mubr.msk.f32.mxu1 %vm5845_vm0, %v5844_v4  ;;  %v1889_v33 = vcombine.high %v1887_v30, %v1887_v30  ;;  %v1903_v37 = vrot.slane %v1887_v30, %v6148_v60  ;;  %v1910_v38 = vrot.slane %v1888_v31, %v6148_v60  ;;  %v1918_v39 = vcombine.high %v1896_v18, %v1896_v18 }
 0x841   :  { %3874 = vst.sshfl [vmem:[%s7393_s3 + $0x17] sm:$0x1 pattern:$0x73625140] %v1888_v31  ;;  %5292 = vmatpush1.bf16.msra.mxu0 %v5909_v15  ;;  %5322 = vmatpush3.bf16.msra.mxu1 %v5965_v34 }
 0x842   :  { %3875 = vst.sshfl [vmem:[%s7393_s3 + $0x47] sm:$0x1 pattern:$0x73625140] %v1887_v30  ;;  %v1917_v40 = vrot.slane %v1889_v33, %v6148_v60  ;;  %v1919_v42 = vcombine.high %v1903_v37, %v1903_v37  ;;  %v1920_v45 = vcombine.high %v1910_v38, %v1910_v38  ;;  %1932 = vst [vmem:[%s7393_s3 + $0x27] sm:$0x1] %v1918_v39  ;;  %5294 = vmatprep.subr.bf16.mxu0 %v5912_v16 }
 0x843   :  { %3876 = vst.sshfl [vmem:[%s7393_s3 + $0x57] sm:$0x1 pattern:$0x73625140] %v1889_v33  ;;  %5323 = vmatprep.subr.bf16.mxu1 %v5843_v3 }
 0x844   :  { %v1921_v46 = vcombine.high %v1917_v40, %v1917_v40  ;;  %1933 = vst [vmem:[%s7393_s3 + $0x37] sm:$0x1] %v1920_v45  ;;  %1936 = vst [vmem:[%s7393_s3 + $0x67] sm:$0x1] %v1919_v42 }
 0x845   :  { %5296 = vmatpush1.bf16.msra.mxu0 %v5927_v21  ;;  %5325 = vmatpush3.bf16.msra.mxu1 %v5993_v43 }
 0x846   :  { %1937 = vst [vmem:[%s7393_s3 + $0x77] sm:$0x1] %v1921_v46  ;;  %5298 = vmatprep.subr.bf16.mxu0 %v5933_v23  ;;  %5326 = vmatprep.subr.bf16.mxu1 %v5843_v3 }
 0x849   :  { %5300 = vmatpush1.bf16.msra.mxu0 %v5959_v32  ;;  %5328 = vmatpush3.bf16.msra.mxu1 %v6021_v52 }
 0x84a   :  { %5302 = vmatprep.subr.bf16.mxu0 %v5968_v35  ;;  %5329 = vmatprep.subr.bf16.mxu1 %v5843_v3 }
 0x84d   :  { %5304 = vmatpush1.bf16.msra.mxu0 %v5987_v41  ;;  %5331 = vmatpush3.bf16.msra.mxu1 %v6049_v61 }
 0x84e   :  { %5306 = vmatprep.subr.bf16.mxu0 %v5996_v44  ;;  %5332 = vmatprep.subr.bf16.mxu1 %v5843_v3 }
 0x851   :  { %5308 = vmatpush1.bf16.msra.mxu0 %v6015_v50  ;;  %5334 = vmatpush3.bf16.msra.mxu1 %v6068_v6 }
 0x852   :  { %5310 = vmatprep.subr.bf16.mxu0 %v6024_v53  ;;  %5335 = vmatprep.subr.bf16.mxu1 %v5843_v3 }
 0x855   :  { %5312 = vmatpush1.bf16.msra.mxu0 %v6043_v59  ;;  %5337 = vmatpush3.bf16.msra.mxu1 %v6080_v11 }
 0x856   :  { %5314 = vmatprep.subr.bf16.mxu0 %v6052_v62  ;;  %5338 = vmatprep.subr.bf16.mxu1 %v5843_v3 }
 0x859   :  { %5316 = vmatpush1.bf16.msra.mxu0 %v6065_v2  ;;  %5340 = vmatpush3.bf16.msra.mxu1 %v6092_v14 }
 0x85a   :  { %5342 = vmatprep.subr.bf16.mxu0 %v5878_v5  ;;  %5373 = vmatprep.subr.bf16.mxu1 %v5843_v3 }
 0x90f   :  { %v2008_v48 = vpop.f32.mrb[16].mxu0  ;;  %v2079_v49 = vpop.f32.mrb[16].mxu1 }
 0x910   :  { %v2083_v51 = vadd.f32 %v3877_v47, %v2008_v48  ;;  %v2010_v55 = vpop.f32.mrb[17].mxu0  ;;  %v4535_v56 = vpop.f32.mrb[17].mxu1  ;;  %v2097_v19 = vadd.f32 %v6646_v1, %v2079_v49  ;;  %v3886_v49 = vld [vmem:[%s7391_s0 + $0xd8] sm:$0xff] }
 0x911   :  { %v2090_v58 = vadd.f32 %v3878_v54, %v2010_v55  ;;  %v3887_v56 = vld [vmem:[%s7391_s0 + $0xe0] sm:$0xff] }
 0x912   :  { %v3880_v57 = vmul.f32 -1.442695, %v2083_v51 }
 0x913   :  { %v3881_v0 = vmul.f32 -1.442695, %v2090_v58 }
 0x914   :  { %5761 = vpow2.f32 %v3880_v57 }
 0x915   :  { %5763 = vpow2.f32 %v3881_v0 }
 0x91e   :  { %v5762_v8 = vpop.eup %5761 }
 0x91f   :  { %v2087_v12 = vadd.f32 1.0, %v5762_v8  ;;  %v5764_v17 = vpop.eup %5763 }
 0x920   :  { %v2094_v63 = vadd.f32 1.0, %v5764_v17 }
 0x921   :  { %5765 = vrcp.f32 %v2087_v12 }
 0x922   :  { %5767 = vrcp.f32 %v2094_v63 }
 0x92b   :  { %v5766_v7 = vpop.eup %5765 }
 0x92c   :  { %v2098_v13 = vmul.f32 %v5766_v7, %v2097_v19  ;;  %v5768_v25 = vpop.eup %5767 }
 0x92d   :  { %v2101_v26 = vsub.f32 1.0, %v5768_v25  ;;  %v2103_v24 = vmul.f32 %v5768_v25, %v6736_v27 }
 0x92e   :  { %v2099_v36 = vadd.f32 %v3879_v22, %v2098_v13 }
 0x930   :  { %5769 = vtanh.f32 %v2099_v36  ;;  %v3888_v36 = vld [vmem:[%s7391_s0 + $0xe8] sm:$0xff] }
 0x93a   :  { %v5770_v20 = vpop.eup %5769 }
 0x93b   :  { %v2102_v28 = vmul.f32 %v5770_v20, %v2101_v26 }
 0x93d   :  { %v6819_v30 = vadd.f32 %v2103_v24, %v2102_v28 }
 0x93f   :  { %v2106_v31 = vcombine.high %v6819_v30, %v6819_v30  ;;  %v2113_v18 = vrot.slane %v6819_v30, %v6148_v60  ;;  %2240 = vmatmul.mubr.f32.vlgmr.msra.gmra.mrb[18].mxu0 %v6819_v30  ;;  %4569 = vmatmul.mubr.f32.vlgmr.msra.gmra.mrb[18].mxu1 %v6819_v30 }
 0x940   :  { %5344 = vmatpush1.bf16.msra.mxu0 %v5891_v9  ;;  %5375 = vmatpush3.bf16.msra.mxu1 %v5950_v29 }
 0x941   :  { %v2120_v33 = vrot.slane %v2106_v31, %v6148_v60  ;;  %v2121_v37 = vcombine.high %v2113_v18, %v2113_v18  ;;  %v2129_v27 = vrot.slane %v2113_v18, %v6148_v60  ;;  %3882 = vst.sshfl [vmem:[%s7393_s3 + $0x8] sm:$0x1 pattern:$0x73625140] %v2113_v18  ;;  %5346 = vmatprep.subr.bf16.mxu0 %v5893_v10 }
 0x942   :  { %5376 = vmatprep.subr.bf16.mxu1 %v5843_v3  ;;  %2472 = vmatprep.mubr.f32.mxu0 %v5844_v4 }
 0x943   :  { %4603 = vmatprep.mubr.msk.f32.mxu1 %vm5845_vm0, %v5844_v4  ;;  %v2122_v38 = vcombine.high %v2120_v33, %v2120_v33  ;;  %v2136_v39 = vrot.slane %v2120_v33, %v6148_v60  ;;  %v2143_v40 = vrot.slane %v2121_v37, %v6148_v60  ;;  %v2151_v42 = vcombine.high %v2129_v27, %v2129_v27 }
 0x944   :  { %3883 = vst.sshfl [vmem:[%s7393_s3 + $0x18] sm:$0x1 pattern:$0x73625140] %v2121_v37  ;;  %5348 = vmatpush1.bf16.msra.mxu0 %v5909_v15  ;;  %5378 = vmatpush3.bf16.msra.mxu1 %v5965_v34 }
 0x945   :  { %3884 = vst.sshfl [vmem:[%s7393_s3 + $0x48] sm:$0x1 pattern:$0x73625140] %v2120_v33  ;;  %v2150_v45 = vrot.slane %v2122_v38, %v6148_v60  ;;  %v2152_v46 = vcombine.high %v2136_v39, %v2136_v39  ;;  %v2153_v47 = vcombine.high %v2143_v40, %v2143_v40  ;;  %2165 = vst [vmem:[%s7393_s3 + $0x28] sm:$0x1] %v2151_v42  ;;  %5350 = vmatprep.subr.bf16.mxu0 %v5912_v16 }
 0x946   :  { %3885 = vst.sshfl [vmem:[%s7393_s3 + $0x58] sm:$0x1 pattern:$0x73625140] %v2122_v38  ;;  %5379 = vmatprep.subr.bf16.mxu1 %v5843_v3 }
 0x947   :  { %v2154_v48 = vcombine.high %v2150_v45, %v2150_v45  ;;  %2166 = vst [vmem:[%s7393_s3 + $0x38] sm:$0x1] %v2153_v47  ;;  %2169 = vst [vmem:[%s7393_s3 + $0x68] sm:$0x1] %v2152_v46 }
 0x948   :  { %5352 = vmatpush1.bf16.msra.mxu0 %v5927_v21  ;;  %5381 = vmatpush3.bf16.msra.mxu1 %v5993_v43 }
 0x949   :  { %2170 = vst [vmem:[%s7393_s3 + $0x78] sm:$0x1] %v2154_v48  ;;  %5354 = vmatprep.subr.bf16.mxu0 %v5933_v23  ;;  %5382 = vmatprep.subr.bf16.mxu1 %v5843_v3 }
 0x94c   :  { %5356 = vmatpush1.bf16.msra.mxu0 %v5959_v32  ;;  %5384 = vmatpush3.bf16.msra.mxu1 %v6021_v52 }
 0x94d   :  { %5358 = vmatprep.subr.bf16.mxu0 %v5968_v35  ;;  %5385 = vmatprep.subr.bf16.mxu1 %v5843_v3 }
 0x950   :  { %5360 = vmatpush1.bf16.msra.mxu0 %v5987_v41  ;;  %5387 = vmatpush3.bf16.msra.mxu1 %v6049_v61 }
 0x951   :  { %5362 = vmatprep.subr.bf16.mxu0 %v5996_v44  ;;  %5388 = vmatprep.subr.bf16.mxu1 %v5843_v3 }
 0x954   :  { %5364 = vmatpush1.bf16.msra.mxu0 %v6015_v50  ;;  %5390 = vmatpush3.bf16.msra.mxu1 %v6068_v6 }
 0x955   :  { %5366 = vmatprep.subr.bf16.mxu0 %v6024_v53  ;;  %5391 = vmatprep.subr.bf16.mxu1 %v5843_v3 }
 0x958   :  { %5368 = vmatpush1.bf16.msra.mxu0 %v6043_v59  ;;  %5393 = vmatpush3.bf16.msra.mxu1 %v6080_v11 }
 0x959   :  { %5370 = vmatprep.subr.bf16.mxu0 %v6052_v62  ;;  %5394 = vmatprep.subr.bf16.mxu1 %v5843_v3 }
 0x95c   :  { %5372 = vmatpush1.bf16.msra.mxu0 %v6065_v2  ;;  %5396 = vmatpush3.bf16.msra.mxu1 %v6092_v14 }
 0x95d   :  { %5398 = vmatprep.subr.bf16.mxu0 %v5878_v5  ;;  %5429 = vmatprep.subr.bf16.mxu1 %v5843_v3 }
 0xa12   :  { %v2241_v51 = vpop.f32.mrb[18].mxu0  ;;  %v2312_v54 = vpop.f32.mrb[18].mxu1 }
 0xa13   :  { %v2316_v55 = vadd.f32 %v3886_v49, %v2241_v51  ;;  %v2243_v57 = vpop.f32.mrb[19].mxu0  ;;  %v4570_v58 = vpop.f32.mrb[19].mxu1  ;;  %v2330_v22 = vadd.f32 %v6646_v1, %v2312_v54  ;;  %v3895_v54 = vld [vmem:[%s7391_s0 + $0xf0] sm:$0xff] }
 0xa14   :  { %v2323_v8 = vadd.f32 %v3887_v56, %v2243_v57  ;;  %v3896_v58 = vld [vmem:[%s7391_s0 + $0xf8] sm:$0xff] }
 0xa15   :  { %v3889_v0 = vmul.f32 -1.442695, %v2316_v55 }
 0xa16   :  { %v3890_v12 = vmul.f32 -1.442695, %v2323_v8 }
 0xa17   :  { %5771 = vpow2.f32 %v3889_v0 }
 0xa18   :  { %5773 = vpow2.f32 %v3890_v12 }
 0xa21   :  { %v5772_v17 = vpop.eup %5771 }
 0xa22   :  { %v2320_v63 = vadd.f32 1.0, %v5772_v17  ;;  %v5774_v19 = vpop.eup %5773 }
 0xa23   :  { %v2327_v7 = vadd.f32 1.0, %v5774_v19 }
 0xa24   :  { %5775 = vrcp.f32 %v2320_v63 }
 0xa25   :  { %5777 = vrcp.f32 %v2327_v7 }
 0xa2e   :  { %v5776_v13 = vpop.eup %5775 }
 0xa2f   :  { %v2331_v25 = vmul.f32 %v5776_v13, %v2330_v22  ;;  %v5778_v20 = vpop.eup %5777 }
 0xa30   :  { %v2334_v28 = vsub.f32 1.0, %v5778_v20  ;;  %v2336_v18 = vmul.f32 %v5778_v20, %v6819_v30 }
 0xa31   :  { %v2332_v26 = vadd.f32 %v3888_v36, %v2331_v25 }
 0xa33   :  { %5779 = vtanh.f32 %v2332_v26  ;;  %v3897_v26 = vld [vmem:[%s7391_s0 + $0x100] sm:$0xff] }
 0xa3d   :  { %v5780_v24 = vpop.eup %5779 }
 0xa3e   :  { %v2335_v31 = vmul.f32 %v5780_v24, %v2334_v28 }
 0xa40   :  { %v6902_v33 = vadd.f32 %v2336_v18, %v2335_v31 }
 0xa42   :  { %v2339_v37 = vcombine.high %v6902_v33, %v6902_v33  ;;  %v2346_v27 = vrot.slane %v6902_v33, %v6148_v60  ;;  %2473 = vmatmul.mubr.f32.vlgmr.msra.gmra.mrb[20].mxu0 %v6902_v33  ;;  %4604 = vmatmul.mubr.f32.vlgmr.msra.gmra.mrb[20].mxu1 %v6902_v33 }
 0xa43   :  { %5400 = vmatpush1.bf16.msra.mxu0 %v5891_v9  ;;  %5431 = vmatpush3.bf16.msra.mxu1 %v5950_v29 }
 0xa44   :  { %v2353_v38 = vrot.slane %v2339_v37, %v6148_v60  ;;  %v2354_v39 = vcombine.high %v2346_v27, %v2346_v27  ;;  %v2362_v30 = vrot.slane %v2346_v27, %v6148_v60  ;;  %3891 = vst.sshfl [vmem:[%s7393_s3 + $0x9] sm:$0x1 pattern:$0x73625140] %v2346_v27  ;;  %5402 = vmatprep.subr.bf16.mxu0 %v5893_v10 }
 0xa45   :  { %5432 = vmatprep.subr.bf16.mxu1 %v5843_v3  ;;  %2705 = vmatprep.mubr.f32.mxu0 %v5844_v4 }
 0xa46   :  { %4638 = vmatprep.mubr.msk.f32.mxu1 %vm5845_vm0, %v5844_v4  ;;  %v2355_v40 = vcombine.high %v2353_v38, %v2353_v38  ;;  %v2369_v42 = vrot.slane %v2353_v38, %v6148_v60  ;;  %v2376_v45 = vrot.slane %v2354_v39, %v6148_v60  ;;  %v2384_v46 = vcombine.high %v2362_v30, %v2362_v30 }
 0xa47   :  { %3892 = vst.sshfl [vmem:[%s7393_s3 + $0x19] sm:$0x1 pattern:$0x73625140] %v2354_v39  ;;  %5404 = vmatpush1.bf16.msra.mxu0 %v5909_v15  ;;  %5434 = vmatpush3.bf16.msra.mxu1 %v5965_v34 }
 0xa48   :  { %3893 = vst.sshfl [vmem:[%s7393_s3 + $0x49] sm:$0x1 pattern:$0x73625140] %v2353_v38  ;;  %v2383_v47 = vrot.slane %v2355_v40, %v6148_v60  ;;  %v2385_v48 = vcombine.high %v2369_v42, %v2369_v42  ;;  %v2386_v49 = vcombine.high %v2376_v45, %v2376_v45  ;;  %2398 = vst [vmem:[%s7393_s3 + $0x29] sm:$0x1] %v2384_v46  ;;  %5406 = vmatprep.subr.bf16.mxu0 %v5912_v16 }
 0xa49   :  { %3894 = vst.sshfl [vmem:[%s7393_s3 + $0x59] sm:$0x1 pattern:$0x73625140] %v2355_v40  ;;  %5435 = vmatprep.subr.bf16.mxu1 %v5843_v3 }
 0xa4a   :  { %v2387_v51 = vcombine.high %v2383_v47, %v2383_v47  ;;  %2399 = vst [vmem:[%s7393_s3 + $0x39] sm:$0x1] %v2386_v49  ;;  %2402 = vst [vmem:[%s7393_s3 + $0x69] sm:$0x1] %v2385_v48 }
 0xa4b   :  { %5408 = vmatpush1.bf16.msra.mxu0 %v5927_v21  ;;  %5437 = vmatpush3.bf16.msra.mxu1 %v5993_v43 }
 0xa4c   :  { %2403 = vst [vmem:[%s7393_s3 + $0x79] sm:$0x1] %v2387_v51  ;;  %5410 = vmatprep.subr.bf16.mxu0 %v5933_v23  ;;  %5438 = vmatprep.subr.bf16.mxu1 %v5843_v3 }
 0xa4f   :  { %5412 = vmatpush1.bf16.msra.mxu0 %v5959_v32  ;;  %5440 = vmatpush3.bf16.msra.mxu1 %v6021_v52 }
 0xa50   :  { %5414 = vmatprep.subr.bf16.mxu0 %v5968_v35  ;;  %5441 = vmatprep.subr.bf16.mxu1 %v5843_v3 }
 0xa53   :  { %5416 = vmatpush1.bf16.msra.mxu0 %v5987_v41  ;;  %5443 = vmatpush3.bf16.msra.mxu1 %v6049_v61 }
 0xa54   :  { %5418 = vmatprep.subr.bf16.mxu0 %v5996_v44  ;;  %5444 = vmatprep.subr.bf16.mxu1 %v5843_v3 }
 0xa57   :  { %5420 = vmatpush1.bf16.msra.mxu0 %v6015_v50  ;;  %5446 = vmatpush3.bf16.msra.mxu1 %v6068_v6 }
 0xa58   :  { %5422 = vmatprep.subr.bf16.mxu0 %v6024_v53  ;;  %5447 = vmatprep.subr.bf16.mxu1 %v5843_v3 }
 0xa5b   :  { %5424 = vmatpush1.bf16.msra.mxu0 %v6043_v59  ;;  %5449 = vmatpush3.bf16.msra.mxu1 %v6080_v11 }
 0xa5c   :  { %5426 = vmatprep.subr.bf16.mxu0 %v6052_v62  ;;  %5450 = vmatprep.subr.bf16.mxu1 %v5843_v3 }
 0xa5f   :  { %5428 = vmatpush1.bf16.msra.mxu0 %v6065_v2  ;;  %5452 = vmatpush3.bf16.msra.mxu1 %v6092_v14 }
 0xa60   :  { %5454 = vmatprep.subr.bf16.mxu0 %v5878_v5  ;;  %5485 = vmatprep.subr.bf16.mxu1 %v5843_v3 }
 0xb15   :  { %v2474_v55 = vpop.f32.mrb[20].mxu0  ;;  %v2545_v56 = vpop.f32.mrb[20].mxu1 }
 0xb16   :  { %v2549_v57 = vadd.f32 %v3895_v54, %v2474_v55  ;;  %v2476_v0 = vpop.f32.mrb[21].mxu0  ;;  %v4605_v8 = vpop.f32.mrb[21].mxu1  ;;  %v2563_v36 = vadd.f32 %v6646_v1, %v2545_v56  ;;  %v3904_v56 = vld [vmem:[%s7391_s0 + $0x108] sm:$0xff] }
 0xb17   :  { %v2556_v17 = vadd.f32 %v3896_v58, %v2476_v0  ;;  %v3905_v8 = vld [vmem:[%s7391_s0 + $0x110] sm:$0xff] }
 0xb18   :  { %v3898_v12 = vmul.f32 -1.442695, %v2549_v57 }
 0xb19   :  { %v3899_v63 = vmul.f32 -1.442695, %v2556_v17 }
 0xb1a   :  { %5781 = vpow2.f32 %v3898_v12 }
 0xb1b   :  { %5783 = vpow2.f32 %v3899_v63 }
 0xb24   :  { %v5782_v19 = vpop.eup %5781 }
 0xb25   :  { %v2553_v7 = vadd.f32 1.0, %v5782_v19  ;;  %v5784_v22 = vpop.eup %5783 }
 0xb26   :  { %v2560_v13 = vadd.f32 1.0, %v5784_v22 }
 0xb27   :  { %5785 = vrcp.f32 %v2553_v7 }
 0xb28   :  { %5787 = vrcp.f32 %v2560_v13 }
 0xb31   :  { %v5786_v25 = vpop.eup %5785 }
 0xb32   :  { %v2564_v20 = vmul.f32 %v5786_v25, %v2563_v36  ;;  %v5788_v24 = vpop.eup %5787 }
 0xb33   :  { %v2567_v31 = vsub.f32 1.0, %v5788_v24  ;;  %v2569_v27 = vmul.f32 %v5788_v24, %v6902_v33 }
 0xb34   :  { %v2565_v28 = vadd.f32 %v3897_v26, %v2564_v20 }
 0xb36   :  { %5789 = vtanh.f32 %v2565_v28  ;;  %v3906_v28 = vld [vmem:[%s7391_s0 + $0x118] sm:$0xff] }
 0xb40   :  { %v5790_v18 = vpop.eup %5789 }
 0xb41   :  { %v2568_v37 = vmul.f32 %v5790_v18, %v2567_v31 }
 0xb43   :  { %v6985_v38 = vadd.f32 %v2569_v27, %v2568_v37 }
 0xb45   :  { %v2572_v39 = vcombine.high %v6985_v38, %v6985_v38  ;;  %v2579_v30 = vrot.slane %v6985_v38, %v6148_v60  ;;  %2706 = vmatmul.mubr.f32.vlgmr.msra.gmra.mrb[22].mxu0 %v6985_v38  ;;  %4639 = vmatmul.mubr.f32.vlgmr.msra.gmra.mrb[22].mxu1 %v6985_v38 }
 0xb46   :  { %5456 = vmatpush1.bf16.msra.mxu0 %v5891_v9  ;;  %5487 = vmatpush3.bf16.msra.mxu1 %v5950_v29 }
 0xb47   :  { %v2586_v40 = vrot.slane %v2572_v39, %v6148_v60  ;;  %v2587_v42 = vcombine.high %v2579_v30, %v2579_v30  ;;  %v2595_v33 = vrot.slane %v2579_v30, %v6148_v60  ;;  %3900 = vst.sshfl [vmem:[%s7393_s3 + $0xa] sm:$0x1 pattern:$0x73625140] %v2579_v30  ;;  %5458 = vmatprep.subr.bf16.mxu0 %v5893_v10 }
 0xb48   :  { %5488 = vmatprep.subr.bf16.mxu1 %v5843_v3  ;;  %2938 = vmatprep.mubr.f32.mxu0 %v5844_v4 }
 0xb49   :  { %4673 = vmatprep.mubr.msk.f32.mxu1 %vm5845_vm0, %v5844_v4  ;;  %v2588_v45 = vcombine.high %v2586_v40, %v2586_v40  ;;  %v2602_v46 = vrot.slane %v2586_v40, %v6148_v60  ;;  %v2609_v47 = vrot.slane %v2587_v42, %v6148_v60  ;;  %v2617_v48 = vcombine.high %v2595_v33, %v2595_v33 }
 0xb4a   :  { %3901 = vst.sshfl [vmem:[%s7393_s3 + $0x1a] sm:$0x1 pattern:$0x73625140] %v2587_v42  ;;  %5460 = vmatpush1.bf16.msra.mxu0 %v5909_v15  ;;  %5490 = vmatpush3.bf16.msra.mxu1 %v5965_v34 }
 0xb4b   :  { %3902 = vst.sshfl [vmem:[%s7393_s3 + $0x4a] sm:$0x1 pattern:$0x73625140] %v2586_v40  ;;  %v2616_v49 = vrot.slane %v2588_v45, %v6148_v60  ;;  %v2618_v51 = vcombine.high %v2602_v46, %v2602_v46  ;;  %v2619_v54 = vcombine.high %v2609_v47, %v2609_v47  ;;  %2631 = vst [vmem:[%s7393_s3 + $0x2a] sm:$0x1] %v2617_v48  ;;  %5462 = vmatprep.subr.bf16.mxu0 %v5912_v16 }
 0xb4c   :  { %3903 = vst.sshfl [vmem:[%s7393_s3 + $0x5a] sm:$0x1 pattern:$0x73625140] %v2588_v45  ;;  %5491 = vmatprep.subr.bf16.mxu1 %v5843_v3 }
 0xb4d   :  { %v2620_v55 = vcombine.high %v2616_v49, %v2616_v49  ;;  %2632 = vst [vmem:[%s7393_s3 + $0x3a] sm:$0x1] %v2619_v54  ;;  %2635 = vst [vmem:[%s7393_s3 + $0x6a] sm:$0x1] %v2618_v51 }
 0xb4e   :  { %5464 = vmatpush1.bf16.msra.mxu0 %v5927_v21  ;;  %5493 = vmatpush3.bf16.msra.mxu1 %v5993_v43 }
 0xb4f   :  { %2636 = vst [vmem:[%s7393_s3 + $0x7a] sm:$0x1] %v2620_v55  ;;  %5466 = vmatprep.subr.bf16.mxu0 %v5933_v23  ;;  %5494 = vmatprep.subr.bf16.mxu1 %v5843_v3 }
 0xb52   :  { %5468 = vmatpush1.bf16.msra.mxu0 %v5959_v32  ;;  %5496 = vmatpush3.bf16.msra.mxu1 %v6021_v52 }
 0xb53   :  { %5470 = vmatprep.subr.bf16.mxu0 %v5968_v35  ;;  %5497 = vmatprep.subr.bf16.mxu1 %v5843_v3 }
 0xb56   :  { %5472 = vmatpush1.bf16.msra.mxu0 %v5987_v41  ;;  %5499 = vmatpush3.bf16.msra.mxu1 %v6049_v61 }
 0xb57   :  { %5474 = vmatprep.subr.bf16.mxu0 %v5996_v44  ;;  %5500 = vmatprep.subr.bf16.mxu1 %v5843_v3 }
 0xb5a   :  { %5476 = vmatpush1.bf16.msra.mxu0 %v6015_v50  ;;  %5502 = vmatpush3.bf16.msra.mxu1 %v6068_v6 }
 0xb5b   :  { %5478 = vmatprep.subr.bf16.mxu0 %v6024_v53  ;;  %5503 = vmatprep.subr.bf16.mxu1 %v5843_v3 }
 0xb5e   :  { %5480 = vmatpush1.bf16.msra.mxu0 %v6043_v59  ;;  %5505 = vmatpush3.bf16.msra.mxu1 %v6080_v11 }
 0xb5f   :  { %5482 = vmatprep.subr.bf16.mxu0 %v6052_v62  ;;  %5506 = vmatprep.subr.bf16.mxu1 %v5843_v3 }
 0xb62   :  { %5484 = vmatpush1.bf16.msra.mxu0 %v6065_v2  ;;  %5508 = vmatpush3.bf16.msra.mxu1 %v6092_v14 }
 0xb63   :  { %5510 = vmatprep.subr.bf16.mxu0 %v5878_v5  ;;  %5541 = vmatprep.subr.bf16.mxu1 %v5843_v3 }
 0xc18   :  { %v2707_v57 = vpop.f32.mrb[22].mxu0  ;;  %v2778_v58 = vpop.f32.mrb[22].mxu1 }
 0xc19   :  { %v2782_v0 = vadd.f32 %v3904_v56, %v2707_v57  ;;  %v2709_v12 = vpop.f32.mrb[23].mxu0  ;;  %v4640_v17 = vpop.f32.mrb[23].mxu1  ;;  %v2796_v26 = vadd.f32 %v6646_v1, %v2778_v58  ;;  %v3913_v57 = vld [vmem:[%s7391_s0 + $0x120] sm:$0xff] }
 0xc1a   :  { %v2789_v19 = vadd.f32 %v3905_v8, %v2709_v12  ;;  %v3914_v12 = vld [vmem:[%s7391_s0 + $0x128] sm:$0xff] }
 0xc1b   :  { %v3907_v63 = vmul.f32 -1.442695, %v2782_v0 }
 0xc1c   :  { %v3908_v7 = vmul.f32 -1.442695, %v2789_v19 }
 0xc1d   :  { %5791 = vpow2.f32 %v3907_v63 }
 0xc1e   :  { %5793 = vpow2.f32 %v3908_v7 }
 0xc27   :  { %v5792_v22 = vpop.eup %5791 }
 0xc28   :  { %v2786_v13 = vadd.f32 1.0, %v5792_v22  ;;  %v5794_v36 = vpop.eup %5793 }
 0xc29   :  { %v2793_v25 = vadd.f32 1.0, %v5794_v36 }
 0xc2a   :  { %5795 = vrcp.f32 %v2786_v13 }
 0xc2b   :  { %5797 = vrcp.f32 %v2793_v25 }
 0xc34   :  { %v5796_v20 = vpop.eup %5795 }
 0xc35   :  { %v2797_v24 = vmul.f32 %v5796_v20, %v2796_v26  ;;  %v5798_v18 = vpop.eup %5797  ;;  %v7149_v20 = vld [vmem:[%s7392_s2] ss:$0 sm:$0xff] }
 0xc36   :  { %v2800_v37 = vsub.f32 1.0, %v5798_v18  ;;  %v2802_v30 = vmul.f32 %v5798_v18, %v6985_v38 }
 0xc37   :  { %v2798_v31 = vadd.f32 %v3906_v28, %v2797_v24 }
 0xc39   :  { %5799 = vtanh.f32 %v2798_v31  ;;  %v3915_v31 = vld [vmem:[%s7391_s0 + $0x130] sm:$0xff] }
 0xc43   :  { %v5800_v27 = vpop.eup %5799 }
 0xc44   :  { %v2801_v39 = vmul.f32 %v5800_v27, %v2800_v37 }
 0xc46   :  { %v7068_v40 = vadd.f32 %v2802_v30, %v2801_v39 }
 0xc48   :  { %v2805_v1 = vcombine.high %v7068_v40, %v7068_v40  ;;  %v2812_v42 = vrot.slane %v7068_v40, %v6148_v60  ;;  %2939 = vmatmul.mubr.f32.vlgmr.msra.gmra.mrb[24].mxu0 %v7068_v40  ;;  %4674 = vmatmul.mubr.f32.vlgmr.msra.gmra.mrb[24].mxu1 %v7068_v40 }
 0xc49   :  { %5512 = vmatpush1.bf16.msra.mxu0 %v5891_v9  ;;  %5543 = vmatpush3.bf16.msra.mxu1 %v5950_v29 }
 0xc4a   :  { %v2819_v33 = vrot.slane %v2805_v1, %v6148_v60  ;;  %v2820_v45 = vcombine.high %v2812_v42, %v2812_v42  ;;  %v2828_v38 = vrot.slane %v2812_v42, %v6148_v60  ;;  %3909 = vst.sshfl [vmem:[%s7393_s3 + $0xb] sm:$0x1 pattern:$0x73625140] %v2812_v42  ;;  %5514 = vmatprep.subr.bf16.mxu0 %v5893_v10 }
 0xc4b   :  { %5544 = vmatprep.subr.bf16.mxu1 %v5843_v3  ;;  %3171 = vmatprep.mubr.f32.mxu0 %v5844_v4 }
 0xc4c   :  { %4708 = vmatprep.mubr.msk.f32.mxu1 %vm5845_vm0, %v5844_v4  ;;  %v2821_v46 = vcombine.high %v2819_v33, %v2819_v33  ;;  %v2835_v47 = vrot.slane %v2819_v33, %v6148_v60  ;;  %v2842_v48 = vrot.slane %v2820_v45, %v6148_v60  ;;  %v2850_v49 = vcombine.high %v2828_v38, %v2828_v38 }
 0xc4d   :  { %3910 = vst.sshfl [vmem:[%s7393_s3 + $0x1b] sm:$0x1 pattern:$0x73625140] %v2820_v45  ;;  %5516 = vmatpush1.bf16.msra.mxu0 %v5909_v15  ;;  %5546 = vmatpush3.bf16.msra.mxu1 %v5965_v34 }
 0xc4e   :  { %3911 = vst.sshfl [vmem:[%s7393_s3 + $0x4b] sm:$0x1 pattern:$0x73625140] %v2819_v33  ;;  %v2849_v51 = vrot.slane %v2821_v46, %v6148_v60  ;;  %v2851_v54 = vcombine.high %v2835_v47, %v2835_v47  ;;  %v2852_v55 = vcombine.high %v2842_v48, %v2842_v48  ;;  %2864 = vst [vmem:[%s7393_s3 + $0x2b] sm:$0x1] %v2850_v49  ;;  %5518 = vmatprep.subr.bf16.mxu0 %v5912_v16 }
 0xc4f   :  { %3912 = vst.sshfl [vmem:[%s7393_s3 + $0x5b] sm:$0x1 pattern:$0x73625140] %v2821_v46  ;;  %5547 = vmatprep.subr.bf16.mxu1 %v5843_v3 }
 0xc50   :  { %v2853_v56 = vcombine.high %v2849_v51, %v2849_v51  ;;  %2865 = vst [vmem:[%s7393_s3 + $0x3b] sm:$0x1] %v2852_v55  ;;  %2868 = vst [vmem:[%s7393_s3 + $0x6b] sm:$0x1] %v2851_v54 }
 0xc51   :  { %5520 = vmatpush1.bf16.msra.mxu0 %v5927_v21  ;;  %5549 = vmatpush3.bf16.msra.mxu1 %v5993_v43 }
 0xc52   :  { %2869 = vst [vmem:[%s7393_s3 + $0x7b] sm:$0x1] %v2853_v56  ;;  %5522 = vmatprep.subr.bf16.mxu0 %v5933_v23  ;;  %5550 = vmatprep.subr.bf16.mxu1 %v5843_v3 }
 0xc55   :  { %5524 = vmatpush1.bf16.msra.mxu0 %v5959_v32  ;;  %5552 = vmatpush3.bf16.msra.mxu1 %v6021_v52 }
 0xc56   :  { %5526 = vmatprep.subr.bf16.mxu0 %v5968_v35  ;;  %5553 = vmatprep.subr.bf16.mxu1 %v5843_v3 }
 0xc59   :  { %5528 = vmatpush1.bf16.msra.mxu0 %v5987_v41  ;;  %5555 = vmatpush3.bf16.msra.mxu1 %v6049_v61 }
 0xc5a   :  { %5530 = vmatprep.subr.bf16.mxu0 %v5996_v44  ;;  %5556 = vmatprep.subr.bf16.mxu1 %v5843_v3 }
 0xc5d   :  { %5532 = vmatpush1.bf16.msra.mxu0 %v6015_v50  ;;  %5558 = vmatpush3.bf16.msra.mxu1 %v6068_v6 }
 0xc5e   :  { %5534 = vmatprep.subr.bf16.mxu0 %v6024_v53  ;;  %5559 = vmatprep.subr.bf16.mxu1 %v5843_v3 }
 0xc61   :  { %5536 = vmatpush1.bf16.msra.mxu0 %v6043_v59  ;;  %5561 = vmatpush3.bf16.msra.mxu1 %v6080_v11 }
 0xc62   :  { %5538 = vmatprep.subr.bf16.mxu0 %v6052_v62  ;;  %5562 = vmatprep.subr.bf16.mxu1 %v5843_v3 }
 0xc65   :  { %5540 = vmatpush1.bf16.msra.mxu0 %v6065_v2  ;;  %5564 = vmatpush3.bf16.msra.mxu1 %v6092_v14 }
 0xc66   :  { %5566 = vmatprep.subr.bf16.mxu0 %v5878_v5  ;;  %5597 = vmatprep.subr.bf16.mxu1 %v5843_v3 }
 0xd1b   :  { %v2940_v58 = vpop.f32.mrb[24].mxu0  ;;  %v3011_v0 = vpop.f32.mrb[24].mxu1 }
 0xd1c   :  { %v3015_v8 = vadd.f32 %v3913_v57, %v2940_v58  ;;  %v2942_v17 = vpop.f32.mrb[25].mxu0  ;;  %v4675_v63 = vpop.f32.mrb[25].mxu1  ;;  %v3029_v28 = vadd.f32 %v7149_v20, %v3011_v0  ;;  %v3922_v0 = vld [vmem:[%s7391_s0 + $0x138] sm:$0xff] }
 0xd1d   :  { %v3022_v7 = vadd.f32 %v3914_v12, %v2942_v17  ;;  %v3923_v63 = vld [vmem:[%s7391_s0 + $0x140] sm:$0xff] }
 0xd1e   :  { %v3916_v19 = vmul.f32 -1.442695, %v3015_v8 }
 0xd1f   :  { %v3917_v22 = vmul.f32 -1.442695, %v3022_v7 }
 0xd20   :  { %5801 = vpow2.f32 %v3916_v19 }
 0xd21   :  { %5803 = vpow2.f32 %v3917_v22 }
 0xd2a   :  { %v5802_v13 = vpop.eup %5801 }
 0xd2b   :  { %v3019_v36 = vadd.f32 1.0, %v5802_v13  ;;  %v5804_v25 = vpop.eup %5803 }
 0xd2c   :  { %v3026_v26 = vadd.f32 1.0, %v5804_v25 }
 0xd2d   :  { %5805 = vrcp.f32 %v3019_v36 }
 0xd2e   :  { %5807 = vrcp.f32 %v3026_v26 }
 0xd37   :  { %v5806_v24 = vpop.eup %5805 }
 0xd38   :  { %v3030_v18 = vmul.f32 %v5806_v24, %v3029_v28  ;;  %v5808_v27 = vpop.eup %5807 }
 0xd39   :  { %v3033_v39 = vsub.f32 1.0, %v5808_v27  ;;  %v3035_v42 = vmul.f32 %v5808_v27, %v7068_v40 }
 0xd3a   :  { %v3031_v37 = vadd.f32 %v3915_v31, %v3030_v18  ;;  %v3924_v18 = vld [vmem:[%s7391_s0 + $0x148] sm:$0xff] }
 0xd3c   :  { %5809 = vtanh.f32 %v3031_v37 }
 0xd46   :  { %v5810_v30 = vpop.eup %5809 }
 0xd47   :  { %v3034_v1 = vmul.f32 %v5810_v30, %v3033_v39 }
 0xd49   :  { %v7156_v33 = vadd.f32 %v3035_v42, %v3034_v1 }
 0xd4b   :  { %v3038_v45 = vcombine.high %v7156_v33, %v7156_v33  ;;  %v3045_v38 = vrot.slane %v7156_v33, %v6148_v60  ;;  %3172 = vmatmul.mubr.f32.vlgmr.msra.gmra.mrb[26].mxu0 %v7156_v33  ;;  %4709 = vmatmul.mubr.f32.vlgmr.msra.gmra.mrb[26].mxu1 %v7156_v33 }
 0xd4c   :  { %5568 = vmatpush1.bf16.msra.mxu0 %v5891_v9  ;;  %5599 = vmatpush3.bf16.msra.mxu1 %v5950_v29 }
 0xd4d   :  { %v3052_v46 = vrot.slane %v3038_v45, %v6148_v60  ;;  %v3053_v47 = vcombine.high %v3045_v38, %v3045_v38  ;;  %v3061_v40 = vrot.slane %v3045_v38, %v6148_v60  ;;  %3918 = vst.sshfl [vmem:[%s7393_s3 + $0xc] sm:$0x1 pattern:$0x73625140] %v3045_v38  ;;  %5570 = vmatprep.subr.bf16.mxu0 %v5893_v10 }
 0xd4e   :  { %5600 = vmatprep.subr.bf16.mxu1 %v5843_v3  ;;  %3404 = vmatprep.mubr.f32.mxu0 %v5844_v4 }
 0xd4f   :  { %4743 = vmatprep.mubr.msk.f32.mxu1 %vm5845_vm0, %v5844_v4  ;;  %v3054_v48 = vcombine.high %v3052_v46, %v3052_v46  ;;  %v3068_v49 = vrot.slane %v3052_v46, %v6148_v60  ;;  %v3075_v51 = vrot.slane %v3053_v47, %v6148_v60  ;;  %v3083_v54 = vcombine.high %v3061_v40, %v3061_v40 }
 0xd50   :  { %3919 = vst.sshfl [vmem:[%s7393_s3 + $0x1c] sm:$0x1 pattern:$0x73625140] %v3053_v47  ;;  %5572 = vmatpush1.bf16.msra.mxu0 %v5909_v15  ;;  %5602 = vmatpush3.bf16.msra.mxu1 %v5965_v34 }
 0xd51   :  { %3920 = vst.sshfl [vmem:[%s7393_s3 + $0x4c] sm:$0x1 pattern:$0x73625140] %v3052_v46  ;;  %v3082_v55 = vrot.slane %v3054_v48, %v6148_v60  ;;  %v3084_v56 = vcombine.high %v3068_v49, %v3068_v49  ;;  %v3085_v57 = vcombine.high %v3075_v51, %v3075_v51  ;;  %3097 = vst [vmem:[%s7393_s3 + $0x2c] sm:$0x1] %v3083_v54  ;;  %5574 = vmatprep.subr.bf16.mxu0 %v5912_v16 }
 0xd52   :  { %3921 = vst.sshfl [vmem:[%s7393_s3 + $0x5c] sm:$0x1 pattern:$0x73625140] %v3054_v48  ;;  %5603 = vmatprep.subr.bf16.mxu1 %v5843_v3 }
 0xd53   :  { %v3086_v58 = vcombine.high %v3082_v55, %v3082_v55  ;;  %3098 = vst [vmem:[%s7393_s3 + $0x3c] sm:$0x1] %v3085_v57  ;;  %3101 = vst [vmem:[%s7393_s3 + $0x6c] sm:$0x1] %v3084_v56 }
 0xd54   :  { %5576 = vmatpush1.bf16.msra.mxu0 %v5927_v21  ;;  %5605 = vmatpush3.bf16.msra.mxu1 %v5993_v43 }
 0xd55   :  { %3102 = vst [vmem:[%s7393_s3 + $0x7c] sm:$0x1] %v3086_v58  ;;  %5578 = vmatprep.subr.bf16.mxu0 %v5933_v23  ;;  %5606 = vmatprep.subr.bf16.mxu1 %v5843_v3 }
 0xd58   :  { %5580 = vmatpush1.bf16.msra.mxu0 %v5959_v32  ;;  %5608 = vmatpush3.bf16.msra.mxu1 %v6021_v52 }
 0xd59   :  { %5582 = vmatprep.subr.bf16.mxu0 %v5968_v35  ;;  %5609 = vmatprep.subr.bf16.mxu1 %v5843_v3 }
 0xd5c   :  { %5584 = vmatpush1.bf16.msra.mxu0 %v5987_v41  ;;  %5611 = vmatpush3.bf16.msra.mxu1 %v6049_v61 }
 0xd5d   :  { %5586 = vmatprep.subr.bf16.mxu0 %v5996_v44  ;;  %5612 = vmatprep.subr.bf16.mxu1 %v5843_v3 }
 0xd60   :  { %5588 = vmatpush1.bf16.msra.mxu0 %v6015_v50  ;;  %5614 = vmatpush3.bf16.msra.mxu1 %v6068_v6 }
 0xd61   :  { %5590 = vmatprep.subr.bf16.mxu0 %v6024_v53  ;;  %5615 = vmatprep.subr.bf16.mxu1 %v5843_v3 }
 0xd64   :  { %5592 = vmatpush1.bf16.msra.mxu0 %v6043_v59  ;;  %5617 = vmatpush3.bf16.msra.mxu1 %v6080_v11 }
 0xd65   :  { %5594 = vmatprep.subr.bf16.mxu0 %v6052_v62  ;;  %5618 = vmatprep.subr.bf16.mxu1 %v5843_v3 }
 0xd68   :  { %5596 = vmatpush1.bf16.msra.mxu0 %v6065_v2  ;;  %5620 = vmatpush3.bf16.msra.mxu1 %v6092_v14 }
 0xd69   :  { %5622 = vmatprep.subr.bf16.mxu0 %v5878_v5  ;;  %5653 = vmatprep.subr.bf16.mxu1 %v5843_v3 }
 0xe1e   :  { %v3173_v8 = vpop.f32.mrb[26].mxu0  ;;  %v3244_v12 = vpop.f32.mrb[26].mxu1 }
 0xe1f   :  { %v3248_v17 = vadd.f32 %v3922_v0, %v3173_v8  ;;  %v3175_v19 = vpop.f32.mrb[27].mxu0  ;;  %v4710_v7 = vpop.f32.mrb[27].mxu1  ;;  %v3262_v24 = vadd.f32 %v7149_v20, %v3244_v12 }
 0xe20   :  { %v3255_v13 = vadd.f32 %v3923_v63, %v3175_v19 }
 0xe21   :  { %v3925_v22 = vmul.f32 -1.442695, %v3248_v17 }
 0xe22   :  { %v3926_v36 = vmul.f32 -1.442695, %v3255_v13 }
 0xe23   :  { %5811 = vpow2.f32 %v3925_v22 }
 0xe24   :  { %5813 = vpow2.f32 %v3926_v36 }
 0xe2d   :  { %v5812_v5 = vpop.eup %5811 }
 0xe2e   :  { %v3252_v25 = vadd.f32 1.0, %v5812_v5  ;;  %v5814_v26 = vpop.eup %5813 }
 0xe2f   :  { %v3259_v28 = vadd.f32 1.0, %v5814_v26 }
 0xe30   :  { %5815 = vrcp.f32 %v3252_v25 }
 0xe31   :  { %5817 = vrcp.f32 %v3259_v28 }
 0xe3a   :  { %v5816_v31 = vpop.eup %5815 }
 0xe3b   :  { %v3263_v37 = vmul.f32 %v5816_v31, %v3262_v24  ;;  %v5818_v39 = vpop.eup %5817  ;;  %v3940_v24 = vld [vmem:[%s7391_s0 + $0x168] sm:$0xff] }
 0xe3c   :  { %v3266_v30 = vsub.f32 1.0, %v5818_v39  ;;  %v3268_v45 = vmul.f32 %v5818_v39, %v7156_v33 }
 0xe3d   :  { %v3264_v27 = vadd.f32 %v3924_v18, %v3263_v37 }
 0xe3f   :  { %5819 = vtanh.f32 %v3264_v27  ;;  %v3941_v27 = vld [vmem:[%s7391_s0 + $0x170] sm:$0xff] }
 0xe49   :  { %v5820_v1 = vpop.eup %5819 }
 0xe4a   :  { %v3267_v42 = vmul.f32 %v5820_v1, %v3266_v30 }
 0xe4c   :  { %v7239_v38 = vadd.f32 %v3268_v45, %v3267_v42 }
 0xe4e   :  { %v3271_v46 = vcombine.high %v7239_v38, %v7239_v38  ;;  %v3278_v47 = vrot.slane %v7239_v38, %v6148_v60  ;;  %3405 = vmatmul.mubr.f32.vlgmr.msra.gmra.mrb[28].mxu0 %v7239_v38  ;;  %4744 = vmatmul.mubr.f32.vlgmr.msra.gmra.mrb[28].mxu1 %v7239_v38 }
 0xe4f   :  { %5624 = vmatpush1.bf16.msra.mxu0 %v5891_v9  ;;  %5655 = vmatpush3.bf16.msra.mxu1 %v5950_v29 }
 0xe50   :  { %v3285_v40 = vrot.slane %v3271_v46, %v6148_v60  ;;  %v3286_v48 = vcombine.high %v3278_v47, %v3278_v47  ;;  %v3294_v33 = vrot.slane %v3278_v47, %v6148_v60  ;;  %3927 = vst.sshfl [vmem:[%s7393_s3 + $0xd] sm:$0x1 pattern:$0x73625140] %v3278_v47  ;;  %5626 = vmatprep.subr.bf16.mxu0 %v5893_v10 }
 0xe51   :  { %5656 = vmatprep.subr.bf16.mxu1 %v5843_v3  ;;  %3637 = vmatprep.mubr.f32.mxu0 %v5844_v4 }
 0xe52   :  { %4778 = vmatprep.mubr.msk.f32.mxu1 %vm5845_vm0, %v5844_v4  ;;  %v3287_v9 = vcombine.high %v3285_v40, %v3285_v40  ;;  %v3301_v29 = vrot.slane %v3285_v40, %v6148_v60  ;;  %v3308_v49 = vrot.slane %v3286_v48, %v6148_v60  ;;  %v3316_v51 = vcombine.high %v3294_v33, %v3294_v33 }
 0xe53   :  { %3928 = vst.sshfl [vmem:[%s7393_s3 + $0x1d] sm:$0x1 pattern:$0x73625140] %v3286_v48  ;;  %5628 = vmatpush1.bf16.msra.mxu0 %v5909_v15  ;;  %5658 = vmatpush3.bf16.msra.mxu1 %v5965_v34  ;;  %v3931_v15 = vld [vmem:[%s7391_s0 + $0x150] sm:$0xff] }
 0xe54   :  { %3929 = vst.sshfl [vmem:[%s7393_s3 + $0x4d] sm:$0x1 pattern:$0x73625140] %v3285_v40  ;;  %v3315_v4 = vrot.slane %v3287_v9, %v6148_v60  ;;  %v3317_v10 = vcombine.high %v3301_v29, %v3301_v29  ;;  %v3318_v54 = vcombine.high %v3308_v49, %v3308_v49  ;;  %3330 = vst [vmem:[%s7393_s3 + $0x2d] sm:$0x1] %v3316_v51  ;;  %5630 = vmatprep.subr.bf16.mxu0 %v5912_v16 }
 0xe55   :  { %3930 = vst.sshfl [vmem:[%s7393_s3 + $0x5d] sm:$0x1 pattern:$0x73625140] %v3287_v9  ;;  %5659 = vmatprep.subr.bf16.mxu1 %v5843_v3  ;;  %v3942_v9 = vld [vmem:[%s7391_s0 + $0x178] sm:$0xff] }
 0xe56   :  { %v3319_v55 = vcombine.high %v3315_v4, %v3315_v4  ;;  %3331 = vst [vmem:[%s7393_s3 + $0x3d] sm:$0x1] %v3318_v54  ;;  %3334 = vst [vmem:[%s7393_s3 + $0x6d] sm:$0x1] %v3317_v10 }
 0xe57   :  { %5632 = vmatpush1.bf16.msra.mxu0 %v5927_v21  ;;  %5661 = vmatpush3.bf16.msra.mxu1 %v5993_v43 }
 0xe58   :  { %3335 = vst [vmem:[%s7393_s3 + $0x7d] sm:$0x1] %v3319_v55  ;;  %5634 = vmatprep.subr.bf16.mxu0 %v5933_v23  ;;  %5662 = vmatprep.subr.bf16.mxu1 %v5843_v3 }
 0xe5b   :  { %5636 = vmatpush1.bf16.msra.mxu0 %v5959_v32  ;;  %5664 = vmatpush3.bf16.msra.mxu1 %v6021_v52  ;;  %v3932_v32 = vld [vmem:[%s7391_s0 + $0x158] sm:$0xff] }
 0xe5c   :  { %5638 = vmatprep.subr.bf16.mxu0 %v5968_v35  ;;  %5665 = vmatprep.subr.bf16.mxu1 %v5843_v3 }
 0xe5f   :  { %5640 = vmatpush1.bf16.msra.mxu0 %v5987_v41  ;;  %5667 = vmatpush3.bf16.msra.mxu1 %v6049_v61 }
 0xe60   :  { %5642 = vmatprep.subr.bf16.mxu0 %v5996_v44  ;;  %5668 = vmatprep.subr.bf16.mxu1 %v5843_v3 }
 0xe63   :  { %5644 = vmatpush1.bf16.msra.mxu0 %v6015_v50  ;;  %5670 = vmatpush3.bf16.msra.mxu1 %v6068_v6 }
 0xe64   :  { %5646 = vmatprep.subr.bf16.mxu0 %v6024_v53  ;;  %5671 = vmatprep.subr.bf16.mxu1 %v5843_v3 }
 0xe67   :  { %5648 = vmatpush1.bf16.msra.mxu0 %v6043_v59  ;;  %5673 = vmatpush3.bf16.msra.mxu1 %v6080_v11 }
 0xe68   :  { %5650 = vmatprep.subr.bf16.mxu0 %v6052_v62  ;;  %5674 = vmatprep.subr.bf16.mxu1 %v5843_v3  ;;  %v3933_v62 = vld [vmem:[%s7391_s0 + $0x160] sm:$0xff] }
 0xe6b   :  { %5652 = vmatpush1.bf16.msra.mxu0 %v6065_v2  ;;  %5676 = vmatpush3.bf16.msra.mxu1 %v6092_v14 }
 0xf21   :  { %v3406_v16 = vpop.f32.mrb[28].mxu0  ;;  %v3477_v21 = vpop.f32.mrb[28].mxu1 }
 0xf22   :  { %v3481_v23 = vadd.f32 %v3931_v15, %v3406_v16  ;;  %v3408_v34 = vpop.f32.mrb[29].mxu0  ;;  %v4745_v35 = vpop.f32.mrb[29].mxu1  ;;  %v3495_v59 = vadd.f32 %v7149_v20, %v3477_v21 }
 0xf23   :  { %v3488_v43 = vadd.f32 %v3932_v32, %v3408_v34 }
 0xf24   :  { %v3934_v41 = vmul.f32 -1.442695, %v3481_v23 }
 0xf25   :  { %v3935_v3 = vmul.f32 -1.442695, %v3488_v43 }
 0xf26   :  { %5821 = vpow2.f32 %v3934_v41 }
 0xf27   :  { %5823 = vpow2.f32 %v3935_v3 }
 0xf30   :  { %v5822_v44 = vpop.eup %5821 }
 0xf31   :  { %v3485_v50 = vadd.f32 1.0, %v5822_v44  ;;  %v5824_v52 = vpop.eup %5823 }
 0xf32   :  { %v3492_v53 = vadd.f32 1.0, %v5824_v52 }
 0xf33   :  { %5825 = vrcp.f32 %v3485_v50 }
 0xf34   :  { %5827 = vrcp.f32 %v3492_v53 }
 0xf3d   :  { %v5826_v61 = vpop.eup %5825 }
 0xf3e   :  { %v3496_v2 = vmul.f32 %v5826_v61, %v3495_v59  ;;  %v5828_v11 = vpop.eup %5827 }
 0xf3f   :  { %v3499_v14 = vsub.f32 1.0, %v5828_v11  ;;  %v3501_v58 = vmul.f32 %v5828_v11, %v7239_v38 }
 0xf40   :  { %v3497_v6 = vadd.f32 %v3933_v62, %v3496_v2 }
 0xf42   :  { %5829 = vtanh.f32 %v3497_v6 }
 0xf4c   :  { %v5830_v56 = vpop.eup %5829 }
 0xf4d   :  { %v3500_v57 = vmul.f32 %v5830_v56, %v3499_v14 }
 0xf4f   :  { %v3502_v0 = vadd.f32 %v3501_v58, %v3500_v57 }
 0xf51   :  { %v3504_v8 = vcombine.high %v3502_v0, %v3502_v0  ;;  %v3511_v12 = vrot.slane %v3502_v0, %v6148_v60  ;;  %3638 = vmatmul.mubr.f32.vlgmr.msra.gmra.mrb[30].mxu0 %v3502_v0  ;;  %4779 = vmatmul.mubr.f32.vlgmr.msra.gmra.mrb[30].mxu1 %v3502_v0 }
 0xf53   :  { %v3518_v17 = vrot.slane %v3504_v8, %v6148_v60  ;;  %v3519_v63 = vcombine.high %v3511_v12, %v3511_v12  ;;  %v3527_v19 = vrot.slane %v3511_v12, %v6148_v60  ;;  %3936 = vst.sshfl [vmem:[%s7393_s3 + $0xe] sm:$0x1 pattern:$0x73625140] %v3511_v12 }
 0xf55   :  { %v3520_v7 = vcombine.high %v3518_v17, %v3518_v17  ;;  %v3534_v22 = vrot.slane %v3518_v17, %v6148_v60  ;;  %v3541_v13 = vrot.slane %v3519_v63, %v6148_v60  ;;  %v3549_v36 = vcombine.high %v3527_v19, %v3527_v19  ;;  %3937 = vst.sshfl [vmem:[%s7393_s3 + $0x1e] sm:$0x1 pattern:$0x73625140] %v3519_v63 }
 0xf56   :  { %3938 = vst.sshfl [vmem:[%s7393_s3 + $0x4e] sm:$0x1 pattern:$0x73625140] %v3518_v17 }
 0xf57   :  { %v3548_v5 = vrot.slane %v3520_v7, %v6148_v60  ;;  %v3550_v25 = vcombine.high %v3534_v22, %v3534_v22  ;;  %v3551_v26 = vcombine.high %v3541_v13, %v3541_v13  ;;  %3563 = vst [vmem:[%s7393_s3 + $0x2e] sm:$0x1] %v3549_v36  ;;  %3939 = vst.sshfl [vmem:[%s7393_s3 + $0x5e] sm:$0x1 pattern:$0x73625140] %v3520_v7 }
 0xf59   :  { %v3552_v28 = vcombine.high %v3548_v5, %v3548_v5  ;;  %3564 = vst [vmem:[%s7393_s3 + $0x3e] sm:$0x1] %v3551_v26  ;;  %3567 = vst [vmem:[%s7393_s3 + $0x6e] sm:$0x1] %v3550_v25 }
 0xf5b   :  { %3568 = vst [vmem:[%s7393_s3 + $0x7e] sm:$0x1] %v3552_v28 }
0x1024   :  { %v3639_v31 = vpop.f32.mrb[30].mxu0  ;;  %v3710_v18 = vpop.f32.mrb[30].mxu1 }
0x1025   :  { %v3714_v37 = vadd.f32 %v3940_v24, %v3639_v31  ;;  %v3641_v39 = vpop.f32.mrb[31].mxu0  ;;  %v4780_v30 = vpop.f32.mrb[31].mxu1  ;;  %v3728_v48 = vadd.f32 %v7149_v20, %v3710_v18 }
0x1026   :  { %v3721_v42 = vadd.f32 %v3941_v27, %v3641_v39 }
0x1027   :  { %v3943_v1 = vmul.f32 -1.442695, %v3714_v37 }
0x1028   :  { %v3944_v45 = vmul.f32 -1.442695, %v3721_v42 }
0x1029   :  { %5831 = vpow2.f32 %v3943_v1 }
0x102a   :  { %5833 = vpow2.f32 %v3944_v45 }
0x1033   :  { %v5832_v38 = vpop.eup %5831 }
0x1034   :  { %v3718_v46 = vadd.f32 1.0, %v5832_v38  ;;  %v5834_v47 = vpop.eup %5833 }
0x1035   :  { %v3725_v40 = vadd.f32 1.0, %v5834_v47 }
0x1036   :  { %5835 = vrcp.f32 %v3718_v46 }
0x1037   :  { %5837 = vrcp.f32 %v3725_v40 }
0x1040   :  { %v5836_v33 = vpop.eup %5835 }
0x1041   :  { %v3729_v29 = vmul.f32 %v5836_v33, %v3728_v48  ;;  %v5838_v51 = vpop.eup %5837 }
0x1042   :  { %v3732_v4 = vsub.f32 1.0, %v5838_v51  ;;  %v3734_v55 = vmul.f32 %v5838_v51, %v3502_v0 }
0x1043   :  { %v3730_v49 = vadd.f32 %v3942_v9, %v3729_v29 }
0x1045   :  { %5839 = vtanh.f32 %v3730_v49 }
0x104f   :  { %v5840_v10 = vpop.eup %5839 }
0x1050   :  { %v3733_v54 = vmul.f32 %v5840_v10, %v3732_v4 }
0x1052   :  { %v3735_v15 = vadd.f32 %v3734_v55, %v3733_v54 }
0x1054   :  { %v3737_v16 = vcombine.high %v3735_v15, %v3735_v15  ;;  %v3744_v21 = vrot.slane %v3735_v15, %v6148_v60 }
0x1056   :  { %v3751_v20 = vrot.slane %v3737_v16, %v6148_v60  ;;  %v3752_v23 = vcombine.high %v3744_v21, %v3744_v21  ;;  %v3760_v32 = vrot.slane %v3744_v21, %v6148_v60  ;;  %3945 = vst.sshfl [vmem:[%s7393_s3 + $0xf] sm:$0x1 pattern:$0x73625140] %v3744_v21 }
0x1058   :  { %v3753_v34 = vcombine.high %v3751_v20, %v3751_v20  ;;  %v3767_v35 = vrot.slane %v3751_v20, %v6148_v60  ;;  %v3774_v41 = vrot.slane %v3752_v23, %v6148_v60  ;;  %v3782_v43 = vcombine.high %v3760_v32, %v3760_v32  ;;  %3946 = vst.sshfl [vmem:[%s7393_s3 + $0x1f] sm:$0x1 pattern:$0x73625140] %v3752_v23 }
0x1059   :  { %3947 = vst.sshfl [vmem:[%s7393_s3 + $0x4f] sm:$0x1 pattern:$0x73625140] %v3751_v20 }
0x105a   :  { %v3781_v3 = vrot.slane %v3753_v34, %v6148_v60  ;;  %v3783_v44 = vcombine.high %v3767_v35, %v3767_v35  ;;  %v3784_v50 = vcombine.high %v3774_v41, %v3774_v41  ;;  %3796 = vst [vmem:[%s7393_s3 + $0x2f] sm:$0x1] %v3782_v43  ;;  %3948 = vst.sshfl [vmem:[%s7393_s3 + $0x5f] sm:$0x1 pattern:$0x73625140] %v3753_v34 }
0x105c   :  { %v3785_v52 = vcombine.high %v3781_v3, %v3781_v3  ;;  %3797 = vst [vmem:[%s7393_s3 + $0x3f] sm:$0x1] %v3784_v50  ;;  %3800 = vst [vmem:[%s7393_s3 + $0x6f] sm:$0x1] %v3783_v44 }
0x105e   :  { %3801 = vst [vmem:[%s7393_s3 + $0x7f] sm:$0x1] %v3785_v52 }

</bundles_post_ra>
